<compile_context>
chip_gen: v6e
topology: v6e:2x2x1
jax: 0.10.0
libtpu: 0.0.40
codegen_flags: <defaults>
</compile_context>

<pallas_src>
import numpy as np
import jax
import jax.numpy as jnp
from jax import lax
from jax.experimental import pallas as pl
from jax.experimental.pallas import tpu as pltpu

# ---- static model configuration (mirrors GRU_CNN2.__init__) ----
OBS_DIM = 8
ACT_DIM = 4
NETWORK_SCALE = 10
BATCH = 2
C_IN, H_IN, W_IN = 4, 16, 16
C_OUT, KH, KW = 8, 3, 3                          # cnn_layer ~ Conv2d(4, 8, k=3, stride=1)
H_OUT, W_OUT = H_IN - KH + 1, W_IN - KW + 1      # 14, 14
CNN_SIZE = C_OUT * H_OUT * W_OUT                 # cnn1.size() == 1568
HID1A = OBS_DIM * NETWORK_SCALE                  # 80
HID1 = CNN_SIZE + HID1A                          # 1648
HID3 = ACT_DIM * NETWORK_SCALE                   # 40
HID2 = int(np.sqrt(HID1 * HID3))                 # 256
LOGVAR_SPEED = 10 * HID3 // 48                   # 8

# ---- TPU-friendly padded layout constants ----
KKC = KH * KW * C_IN                             # 36  (im2col contraction dim)
KKC_PAD = 40                                     # pad to a multiple of 8 sublanes
HW = H_OUT * W_OUT                               # 196 (conv spatial, mapped to lanes)
HW_PAD = 256                                     # pad to a multiple of 128 lanes
CNN_PAD = C_OUT * HW_PAD                         # 2048 = 16*128, aligned gi K-dim


# ------------------------------ fused Pallas kernel -------------------------

def _fused_kernel(p_ref, xs_ref, s_ref,
                  wc_ref, bc_ref, w1_ref, b1_ref,
                  wih_a_ref, wih_b_ref, whh_ref, bih_ref, bhh_ref,
                  w3_ref, b3_ref, w4_ref, b4_ref, lv_ref,
                  act_ref, lv_out_ref, state_ref,
                  xi_ref):
    """conv + tanh -> (flatten) -> fc1 + tanh -> GRUCell -> fc3 + tanh -> fc4."""
    # ---- conv as per-batch (Cout, HW) MXU matmul, lane-dense, kept in VMEM ----
    for b in range(BATCH):
        tile = jnp.tanh(
            jnp.dot(wc_ref[...], p_ref[b], preferred_element_type=jnp.float32)
            + bc_ref[...])                                        # (C_OUT, HW_PAD)
        for c in range(C_OUT):
            # torch NCHW flatten order; the matching permutation (and the
            # hw-padding zeros) is baked into the wih_a rows at init time.
            xi_ref[b:b + 1, c * HW_PAD:(c + 1) * HW_PAD] = tile[c:c + 1, :]

    # ---- fc1 + tanh on the vector observation ----
    xs_h = jnp.tanh(
        jnp.dot(xs_ref[...], w1_ref[...], preferred_element_type=jnp.float32)
        + b1_ref[...])                                            # (B, HID1A)

    # ---- GRUCell: torch.cat((xi, xs), 1) @ W_ih.T as a split contraction ----
    gi = (jnp.dot(xi_ref[...].astype(jnp.bfloat16), wih_a_ref[...],
                  preferred_element_type=jnp.float32)
          + jnp.dot(xs_h, wih_b_ref[...], preferred_element_type=jnp.float32)
          + bih_ref[...])                                         # (B, 3*HID2)
    h_prev = s_ref[...]
    gh = (jnp.dot(h_prev.astype(jnp.bfloat16), whh_ref[...],
                  preferred_element_type=jnp.float32)
          + bhh_ref[...])                                         # (B, 3*HID2)

    # PyTorch GRUCell gate ordering: r, z, n
    r = jax.nn.sigmoid(gi[:, 0 * HID2:1 * HID2] + gh[:, 0 * HID2:1 * HID2])
    z = jax.nn.sigmoid(gi[:, 1 * HID2:2 * HID2] + gh[:, 1 * HID2:2 * HID2])
    n = jnp.tanh(gi[:, 2 * HID2:3 * HID2] + r * gh[:, 2 * HID2:3 * HID2])
    h = (1.0 - z) * n + z * h_prev                                # (B, HID2)

    # ---- fc3 + tanh, fc4 ----
    y = jnp.tanh(
        jnp.dot(h, w3_ref[...], preferred_element_type=jnp.float32) + b3_ref[...])
    y = jnp.dot(y, w4_ref[...], preferred_element_type=jnp.float32) + b4_ref[...]

    act_ref[...] = y
    state_ref[...] = h
    # log_vars = sum(log_vars, 0) - 1.0
    lv_out_ref[...] = jnp.sum(lv_ref[...], axis=0, keepdims=True) - 1.0


# ------------------------------- wrappers ------------------------------------

def _vmem_specs(n):
    return [pl.BlockSpec(memory_space=pltpu.MemorySpace.VMEM) for _ in range(n)]


def prepare_params(params):
    """One-time weight preprocessing (transpose / split / permute / pad / cast).

    Doing this once outside the per-step forward removes ~5 MB/step of HBM
    traffic for gru_w_ih.T, and absorbs the NCHW flatten permutation so the
    kernel consumes the conv scratch layout directly.
    """
    wc = jnp.transpose(params["conv_w"], (0, 2, 3, 1)).reshape(C_OUT, KKC)
    wc = jnp.pad(wc, ((0, 0), (0, KKC_PAD - KKC)))                # (Cout, KKC_PAD)
    wih_t = params["gru_w_ih"].T                                  # (HID1, 3*HID2)
    wih_a = wih_t[:CNN_SIZE].reshape(C_OUT, HW, 3 * HID2)
    wih_a = jnp.pad(wih_a, ((0, 0), (0, HW_PAD - HW), (0, 0)))    # zero rows for pad lanes
    wih_a = wih_a.reshape(CNN_PAD, 3 * HID2).astype(jnp.bfloat16)
    return dict(
        conv_w=wc,
        conv_b=params["conv_b"].reshape(C_OUT, 1),
        fc1_w=params["fc1_w"].T, fc1_b=params["fc1_b"].reshape(1, -1),
        wih_a=wih_a,                                              # bf16 (2048, 768)
        wih_b=wih_t[CNN_SIZE:],                                   # f32 (80, 768), tiny
        whh=params["gru_w_hh"].T.astype(jnp.bfloat16),            # bf16 (256, 768)
        bih=params["gru_b_ih"].reshape(1, -1),
        bhh=params["gru_b_hh"].reshape(1, -1),
        fc3_w=params["fc3_w"].T, fc3_b=params["fc3_b"].reshape(1, -1),
        fc4_w=params["fc4_w"].T, fc4_b=params["fc4_b"].reshape(1, -1),
        log_vars=params["log_vars"],
    )


def gru_cnn2_forward(prep, image_obs, vector_obs, states, masks=None, flags=None):
    # masks / flags are unused on the single-step path (recurrent_steps == 1),
    # exactly as in the PyTorch forward.
    # TODO(synk): the `unroll and recurrent_steps > 1` sequence path is not
    # implemented (default module has recurrent_steps=1, so it never runs).
    del masks, flags
    image_obs = image_obs.astype(jnp.float32)
    vector_obs = vector_obs.astype(jnp.float32)
    states = states.astype(jnp.float32)

    # im2col on the (tiny) activation only: (B, KKC, HW), spatial on lanes.
    x_nhwc = jnp.transpose(image_obs, (0, 2, 3, 1))               # (B, H, W, Cin)
    cols = [x_nhwc[:, kh:kh + H_OUT, kw:kw + W_OUT, :]
            for kh in range(KH) for kw in range(KW)]
    p = jnp.concatenate(cols, axis=-1)                            # (B,Ho,Wo,KKC)
    p = jnp.transpose(p, (0, 3, 1, 2)).reshape(BATCH, KKC, HW)
    p = jnp.pad(p, ((0, 0), (0, KKC_PAD - KKC), (0, HW_PAD - HW)))  # (B,40,256)

    inputs = (
        p, vector_obs, states,
        prep["conv_w"], prep["conv_b"], prep["fc1_w"], prep["fc1_b"],
        prep["wih_a"], prep["wih_b"], prep["whh"], prep["bih"], prep["bhh"],
        prep["fc3_w"], prep["fc3_b"], prep["fc4_w"], prep["fc4_b"],
        prep["log_vars"],
    )
    act, log_vars, new_state = pl.pallas_call(
        _fused_kernel,
        out_shape=(jax.ShapeDtypeStruct((BATCH, ACT_DIM), jnp.float32),
                   jax.ShapeDtypeStruct((1, ACT_DIM), jnp.float32),
                   jax.ShapeDtypeStruct((BATCH, HID2), jnp.float32)),
        in_specs=_vmem_specs(len(inputs)),
        out_specs=tuple(_vmem_specs(3)),
        scratch_shapes=[pltpu.VMEM((BATCH, CNN_PAD), jnp.float32)],
    )(*inputs)

    # forward() returns (x, log_vars, s) with log_vars of shape (act_dim,)
    return act, log_vars.reshape(ACT_DIM), new_state


# --------------------------- deterministic params ---------------------------

def init_params(key):
    ks = jax.random.split(key, 12)

    def u(k, shape, fan_in):
        bound = 1.0 / np.sqrt(fan_in)
        return jax.random.uniform(k, shape, jnp.float32, -bound, bound)

    return dict(
        conv_w=u(ks[0], (C_OUT, C_IN, KH, KW), C_IN * KH * KW),
        conv_b=u(ks[1], (C_OUT,), C_IN * KH * KW),
        fc1_w=u(ks[2], (HID1A, OBS_DIM), OBS_DIM),
        fc1_b=u(ks[3], (HID1A,), OBS_DIM),
        gru_w_ih=u(ks[4], (3 * HID2, HID1), HID2),
        gru_w_hh=u(ks[5], (3 * HID2, HID2), HID2),
        gru_b_ih=u(ks[6], (3 * HID2,), HID2),
        gru_b_hh=u(ks[7], (3 * HID2,), HID2),
        fc3_w=u(ks[8], (HID3, HID2), HID2),
        fc3_b=u(ks[9], (HID3,), HID2),
        fc4_w=u(ks[10], (ACT_DIM, HID3), HID3),
        fc4_b=u(ks[11], (ACT_DIM,), HID3),
        log_vars=jnp.zeros((LOGVAR_SPEED, ACT_DIM), jnp.float32),  # torch.zeros init
    )


# ----------------------------- pure-JAX reference ---------------------------

def reference_forward(params, image_obs, vector_obs, states):
    xs = jnp.tanh(vector_obs @ params["fc1_w"].T + params["fc1_b"])
    conv = lax.conv_general_dilated(
        image_obs, params["conv_w"], window_strides=(1, 1), padding="VALID",
        dimension_numbers=("NCHW", "OIHW", "NCHW"), precision=lax.Precision.HIGHEST)
    xi = jnp.tanh(conv + params["conv_b"][None, :, None, None])
    xi = xi.reshape(BATCH, CNN_SIZE)
    x = jnp.concatenate([xi, xs], axis=1)
    gi = x @ params["gru_w_ih"].T + params["gru_b_ih"]
    gh = states @ params["gru_w_hh"].T + params["gru_b_hh"]
    r = jax.nn.sigmoid(gi[:, :HID2] + gh[:, :HID2])
    z = jax.nn.sigmoid(gi[:, HID2:2 * HID2] + gh[:, HID2:2 * HID2])
    n = jnp.tanh(gi[:, 2 * HID2:] + r * gh[:, 2 * HID2:])
    h = (1.0 - z) * n + z * states
    y = jnp.tanh(h @ params["fc3_w"].T + params["fc3_b"])
    y = y @ params["fc4_w"].T + params["fc4_b"]
    lv = jnp.sum(params["log_vars"], axis=0) - 1.0
    return y, lv, h


if __name__ == "__main__":
    key = jax.random.PRNGKey(0)
    kp, k1, k2, k3 = jax.random.split(key, 4)
    params = init_params(kp)
    prep = jax.block_until_ready(prepare_params(params))   # one-time weight prep

    image_obs = jax.random.normal(k1, (BATCH, C_IN, H_IN, W_IN), jnp.float32)
    vector_obs = jax.random.normal(k2, (BATCH, OBS_DIM), jnp.float32)
    states = 0.1 * jax.random.normal(k3, (BATCH, HID2), jnp.float32)
    masks = jnp.ones((BATCH, 1), jnp.float32)   # unused on the single-step path

    fwd = jax.jit(gru_cnn2_forward)
    act, log_vars, new_state = jax.block_until_ready(
        fwd(prep, image_obs, vector_obs, states, masks, None))

    with jax.default_matmul_precision("highest"):
        ref_act, ref_lv, ref_h = reference_forward(params, image_obs, vector_obs, states)

    # bf16 GRU weights (f32 accumulation) -> slightly looser tolerance than pure f32.
    np.testing.assert_allclose(np.asarray(act), np.asarray(ref_act), rtol=1e-2, atol=1e-2)
    np.testing.assert_allclose(np.asarray(log_vars), np.asarray(ref_lv), rtol=1e-5, atol=1e-5)
    np.testing.assert_allclose(np.asarray(new_state), np.asarray(ref_h), rtol=1e-2, atol=1e-2)

    print("KERNEL_OK")
</pallas_src>

<mosaic_0001>
module attributes {stable_mosaic.version = 11 : i64} {
  func.func @_fused_kernel(%arg0: memref<2x40x256xf32, #tpu.memory_space<vmem>>, %arg1: memref<2x8xf32, #tpu.memory_space<vmem>>, %arg2: memref<2x256xf32, #tpu.memory_space<vmem>>, %arg3: memref<8x40xf32, #tpu.memory_space<vmem>>, %arg4: memref<8x1xf32, #tpu.memory_space<vmem>>, %arg5: memref<8x80xf32, #tpu.memory_space<vmem>>, %arg6: memref<1x80xf32, #tpu.memory_space<vmem>>, %arg7: memref<2048x768xbf16, #tpu.memory_space<vmem>>, %arg8: memref<80x768xf32, #tpu.memory_space<vmem>>, %arg9: memref<256x768xbf16, #tpu.memory_space<vmem>>, %arg10: memref<1x768xf32, #tpu.memory_space<vmem>>, %arg11: memref<1x768xf32, #tpu.memory_space<vmem>>, %arg12: memref<256x40xf32, #tpu.memory_space<vmem>>, %arg13: memref<1x40xf32, #tpu.memory_space<vmem>>, %arg14: memref<40x4xf32, #tpu.memory_space<vmem>>, %arg15: memref<1x4xf32, #tpu.memory_space<vmem>>, %arg16: memref<8x4xf32, #tpu.memory_space<vmem>>, %arg17: memref<2x4xf32, #tpu.memory_space<vmem>>, %arg18: memref<1x4xf32, #tpu.memory_space<vmem>>, %arg19: memref<2x256xf32, #tpu.memory_space<vmem>>, %arg20: memref<2x2048xf32, #tpu.memory_space<vmem>>) attributes {dimension_semantics = [], scalar_prefetch = 0 : i64, scratch_operands = 1 : i64, tpu.core_type = #tpu.core_type<tc>} {
    %c0 = arith.constant 0 : index
    %c0_0 = arith.constant 0 : index
    %0 = vector.load %arg3[%c0, %c0_0] : memref<8x40xf32, #tpu.memory_space<vmem>>, vector<8x40xf32>
    %c0_1 = arith.constant 0 : index
    %c0_2 = arith.constant 0 : index
    %c0_3 = arith.constant 0 : index
    %1 = vector.load %arg0[%c0_1, %c0_2, %c0_3] : memref<2x40x256xf32, #tpu.memory_space<vmem>>, vector<1x40x256xf32>
    %2 = vector.shape_cast %1 : vector<1x40x256xf32> to vector<40x256xf32>
    %cst = arith.constant dense<0.000000e+00> : vector<8x256xf32>
    %3 = tpu.matmul %0, %2, %cst {dimension_numbers = #tpu.dot_dimension_numbers<[1], [0], [0], [1], [0, 0, 1, 1], [], []>} : vector<8x40xf32>, vector<40x256xf32>, vector<8x256xf32> -> vector<8x256xf32>
    %c0_4 = arith.constant 0 : index
    %c0_5 = arith.constant 0 : index
    %4 = vector.load %arg4[%c0_4, %c0_5] : memref<8x1xf32, #tpu.memory_space<vmem>>, vector<8x1xf32>
    %5 = vector.broadcast %4 : vector<8x1xf32> to vector<8x256xf32>
    %6 = arith.addf %3, %5 : vector<8x256xf32>
    %7 = math.tanh %6 : vector<8x256xf32>
    %8 = vector.extract_strided_slice %7 {offsets = [0, 0], sizes = [1, 256], strides = [1, 1]} : vector<8x256xf32> to vector<1x256xf32>
    %c0_6 = arith.constant 0 : index
    %c0_7 = arith.constant 0 : index
    %9 = vector.load %arg20[%c0_6, %c0_7] : memref<2x2048xf32, #tpu.memory_space<vmem>>, vector<1x256xf32>
    tpu.vector_store %arg20[%c0_6, %c0_7], %8 {strides = array<i32>} : memref<2x2048xf32, #tpu.memory_space<vmem>>, vector<1x256xf32>,
    %10 = vector.extract_strided_slice %7 {offsets = [1, 0], sizes = [1, 256], strides = [1, 1]} : vector<8x256xf32> to vector<1x256xf32>
    %c0_8 = arith.constant 0 : index
    %c256 = arith.constant 256 : index
    %11 = vector.load %arg20[%c0_8, %c256] : memref<2x2048xf32, #tpu.memory_space<vmem>>, vector<1x256xf32>
    tpu.vector_store %arg20[%c0_8, %c256], %10 {strides = array<i32>} : memref<2x2048xf32, #tpu.memory_space<vmem>>, vector<1x256xf32>,
    %12 = vector.extract_strided_slice %7 {offsets = [2, 0], sizes = [1, 256], strides = [1, 1]} : vector<8x256xf32> to vector<1x256xf32>
    %c0_9 = arith.constant 0 : index
    %c512 = arith.constant 512 : index
    %13 = vector.load %arg20[%c0_9, %c512] : memref<2x2048xf32, #tpu.memory_space<vmem>>, vector<1x256xf32>
    tpu.vector_store %arg20[%c0_9, %c512], %12 {strides = array<i32>} : memref<2x2048xf32, #tpu.memory_space<vmem>>, vector<1x256xf32>,
    %14 = vector.extract_strided_slice %7 {offsets = [3, 0], sizes = [1, 256], strides = [1, 1]} : vector<8x256xf32> to vector<1x256xf32>
    %c0_10 = arith.constant 0 : index
    %c768 = arith.constant 768 : index
    %15 = vector.load %arg20[%c0_10, %c768] : memref<2x2048xf32, #tpu.memory_space<vmem>>, vector<1x256xf32>
    tpu.vector_store %arg20[%c0_10, %c768], %14 {strides = array<i32>} : memref<2x2048xf32, #tpu.memory_space<vmem>>, vector<1x256xf32>,
    %16 = vector.extract_strided_slice %7 {offsets = [4, 0], sizes = [1, 256], strides = [1, 1]} : vector<8x256xf32> to vector<1x256xf32>
    %c0_11 = arith.constant 0 : index
    %c1024 = arith.constant 1024 : index
    %17 = vector.load %arg20[%c0_11, %c1024] : memref<2x2048xf32, #tpu.memory_space<vmem>>, vector<1x256xf32>
    tpu.vector_store %arg20[%c0_11, %c1024], %16 {strides = array<i32>} : memref<2x2048xf32, #tpu.memory_space<vmem>>, vector<1x256xf32>,
    %18 = vector.extract_strided_slice %7 {offsets = [5, 0], sizes = [1, 256], strides = [1, 1]} : vector<8x256xf32> to vector<1x256xf32>
    %c0_12 = arith.constant 0 : index
    %c1280 = arith.constant 1280 : index
    %19 = vector.load %arg20[%c0_12, %c1280] : memref<2x2048xf32, #tpu.memory_space<vmem>>, vector<1x256xf32>
    tpu.vector_store %arg20[%c0_12, %c1280], %18 {strides = array<i32>} : memref<2x2048xf32, #tpu.memory_space<vmem>>, vector<1x256xf32>,
    %20 = vector.extract_strided_slice %7 {offsets = [6, 0], sizes = [1, 256], strides = [1, 1]} : vector<8x256xf32> to vector<1x256xf32>
    %c0_13 = arith.constant 0 : index
    %c1536 = arith.constant 1536 : index
    %21 = vector.load %arg20[%c0_13, %c1536] : memref<2x2048xf32, #tpu.memory_space<vmem>>, vector<1x256xf32>
    tpu.vector_store %arg20[%c0_13, %c1536], %20 {strides = array<i32>} : memref<2x2048xf32, #tpu.memory_space<vmem>>, vector<1x256xf32>,
    %22 = vector.extract_strided_slice %7 {offsets = [7, 0], sizes = [1, 256], strides = [1, 1]} : vector<8x256xf32> to vector<1x256xf32>
    %c0_14 = arith.constant 0 : index
    %c1792 = arith.constant 1792 : index
    %23 = vector.load %arg20[%c0_14, %c1792] : memref<2x2048xf32, #tpu.memory_space<vmem>>, vector<1x256xf32>
    tpu.vector_store %arg20[%c0_14, %c1792], %22 {strides = array<i32>} : memref<2x2048xf32, #tpu.memory_space<vmem>>, vector<1x256xf32>,
    %c0_15 = arith.constant 0 : index
    %c0_16 = arith.constant 0 : index
    %24 = vector.load %arg3[%c0_15, %c0_16] : memref<8x40xf32, #tpu.memory_space<vmem>>, vector<8x40xf32>
    %c1 = arith.constant 1 : index
    %c0_17 = arith.constant 0 : index
    %c0_18 = arith.constant 0 : index
    %25 = vector.load %arg0[%c1, %c0_17, %c0_18] : memref<2x40x256xf32, #tpu.memory_space<vmem>>, vector<1x40x256xf32>
    %26 = vector.shape_cast %25 : vector<1x40x256xf32> to vector<40x256xf32>
    %cst_19 = arith.constant dense<0.000000e+00> : vector<8x256xf32>
    %27 = tpu.matmul %24, %26, %cst_19 {dimension_numbers = #tpu.dot_dimension_numbers<[1], [0], [0], [1], [0, 0, 1, 1], [], []>} : vector<8x40xf32>, vector<40x256xf32>, vector<8x256xf32> -> vector<8x256xf32>
    %c0_20 = arith.constant 0 : index
    %c0_21 = arith.constant 0 : index
    %28 = vector.load %arg4[%c0_20, %c0_21] : memref<8x1xf32, #tpu.memory_space<vmem>>, vector<8x1xf32>
    %29 = vector.broadcast %28 : vector<8x1xf32> to vector<8x256xf32>
    %30 = arith.addf %27, %29 : vector<8x256xf32>
    %31 = math.tanh %30 : vector<8x256xf32>
    %32 = vector.extract_strided_slice %31 {offsets = [0, 0], sizes = [1, 256], strides = [1, 1]} : vector<8x256xf32> to vector<1x256xf32>
    %c1_22 = arith.constant 1 : index
    %c0_23 = arith.constant 0 : index
    %33 = vector.load %arg20[%c1_22, %c0_23] : memref<2x2048xf32, #tpu.memory_space<vmem>>, vector<1x256xf32>
    tpu.vector_store %arg20[%c1_22, %c0_23], %32 {strides = array<i32>} : memref<2x2048xf32, #tpu.memory_space<vmem>>, vector<1x256xf32>,
    %34 = vector.extract_strided_slice %31 {offsets = [1, 0], sizes = [1, 256], strides = [1, 1]} : vector<8x256xf32> to vector<1x256xf32>
    %c1_24 = arith.constant 1 : index
    %c256_25 = arith.constant 256 : index
    %35 = vector.load %arg20[%c1_24, %c256_25] : memref<2x2048xf32, #tpu.memory_space<vmem>>, vector<1x256xf32>
    tpu.vector_store %arg20[%c1_24, %c256_25], %34 {strides = array<i32>} : memref<2x2048xf32, #tpu.memory_space<vmem>>, vector<1x256xf32>,
    %36 = vector.extract_strided_slice %31 {offsets = [2, 0], sizes = [1, 256], strides = [1, 1]} : vector<8x256xf32> to vector<1x256xf32>
    %c1_26 = arith.constant 1 : index
    %c512_27 = arith.constant 512 : index
    %37 = vector.load %arg20[%c1_26, %c512_27] : memref<2x2048xf32, #tpu.memory_space<vmem>>, vector<1x256xf32>
    tpu.vector_store %arg20[%c1_26, %c512_27], %36 {strides = array<i32>} : memref<2x2048xf32, #tpu.memory_space<vmem>>, vector<1x256xf32>,
    %38 = vector.extract_strided_slice %31 {offsets = [3, 0], sizes = [1, 256], strides = [1, 1]} : vector<8x256xf32> to vector<1x256xf32>
    %c1_28 = arith.constant 1 : index
    %c768_29 = arith.constant 768 : index
    %39 = vector.load %arg20[%c1_28, %c768_29] : memref<2x2048xf32, #tpu.memory_space<vmem>>, vector<1x256xf32>
    tpu.vector_store %arg20[%c1_28, %c768_29], %38 {strides = array<i32>} : memref<2x2048xf32, #tpu.memory_space<vmem>>, vector<1x256xf32>,
    %40 = vector.extract_strided_slice %31 {offsets = [4, 0], sizes = [1, 256], strides = [1, 1]} : vector<8x256xf32> to vector<1x256xf32>
    %c1_30 = arith.constant 1 : index
    %c1024_31 = arith.constant 1024 : index
    %41 = vector.load %arg20[%c1_30, %c1024_31] : memref<2x2048xf32, #tpu.memory_space<vmem>>, vector<1x256xf32>
    tpu.vector_store %arg20[%c1_30, %c1024_31], %40 {strides = array<i32>} : memref<2x2048xf32, #tpu.memory_space<vmem>>, vector<1x256xf32>,
    %42 = vector.extract_strided_slice %31 {offsets = [5, 0], sizes = [1, 256], strides = [1, 1]} : vector<8x256xf32> to vector<1x256xf32>
    %c1_32 = arith.constant 1 : index
    %c1280_33 = arith.constant 1280 : index
    %43 = vector.load %arg20[%c1_32, %c1280_33] : memref<2x2048xf32, #tpu.memory_space<vmem>>, vector<1x256xf32>
    tpu.vector_store %arg20[%c1_32, %c1280_33], %42 {strides = array<i32>} : memref<2x2048xf32, #tpu.memory_space<vmem>>, vector<1x256xf32>,
    %44 = vector.extract_strided_slice %31 {offsets = [6, 0], sizes = [1, 256], strides = [1, 1]} : vector<8x256xf32> to vector<1x256xf32>
    %c1_34 = arith.constant 1 : index
    %c1536_35 = arith.constant 1536 : index
    %45 = vector.load %arg20[%c1_34, %c1536_35] : memref<2x2048xf32, #tpu.memory_space<vmem>>, vector<1x256xf32>
    tpu.vector_store %arg20[%c1_34, %c1536_35], %44 {strides = array<i32>} : memref<2x2048xf32, #tpu.memory_space<vmem>>, vector<1x256xf32>,
    %46 = vector.extract_strided_slice %31 {offsets = [7, 0], sizes = [1, 256], strides = [1, 1]} : vector<8x256xf32> to vector<1x256xf32>
    %c1_36 = arith.constant 1 : index
    %c1792_37 = arith.constant 1792 : index
    %47 = vector.load %arg20[%c1_36, %c1792_37] : memref<2x2048xf32, #tpu.memory_space<vmem>>, vector<1x256xf32>
    tpu.vector_store %arg20[%c1_36, %c1792_37], %46 {strides = array<i32>} : memref<2x2048xf32, #tpu.memory_space<vmem>>, vector<1x256xf32>,
    %c0_38 = arith.constant 0 : index
    %c0_39 = arith.constant 0 : index
    %48 = vector.load %arg1[%c0_38, %c0_39] : memref<2x8xf32, #tpu.memory_space<vmem>>, vector<2x8xf32>
    %c0_40 = arith.constant 0 : index
    %c0_41 = arith.constant 0 : index
    %49 = vector.load %arg5[%c0_40, %c0_41] : memref<8x80xf32, #tpu.memory_space<vmem>>, vector<8x80xf32>
    %cst_42 = arith.constant dense<0.000000e+00> : vector<2x80xf32>
    %50 = tpu.matmul %48, %49, %cst_42 {dimension_numbers = #tpu.dot_dimension_numbers<[1], [0], [0], [1], [0, 0, 1, 1], [], []>} : vector<2x8xf32>, vector<8x80xf32>, vector<2x80xf32> -> vector<2x80xf32>
    %c0_43 = arith.constant 0 : index
    %c0_44 = arith.constant 0 : index
    %51 = vector.load %arg6[%c0_43, %c0_44] : memref<1x80xf32, #tpu.memory_space<vmem>>, vector<1x80xf32>
    %52 = vector.broadcast %51 : vector<1x80xf32> to vector<2x80xf32>
    %53 = arith.addf %50, %52 : vector<2x80xf32>
    %54 = math.tanh %53 : vector<2x80xf32>
    %c0_45 = arith.constant 0 : index
    %c0_46 = arith.constant 0 : index
    %55 = vector.load %arg20[%c0_45, %c0_46] : memref<2x2048xf32, #tpu.memory_space<vmem>>, vector<2x2048xf32>
    %56 = arith.truncf %55 : vector<2x2048xf32> to vector<2x2048xbf16>
    %c0_47 = arith.constant 0 : index
    %c0_48 = arith.constant 0 : index
    %57 = vector.load %arg7[%c0_47, %c0_48] : memref<2048x768xbf16, #tpu.memory_space<vmem>>, vector<2048x768xbf16>
    %cst_49 = arith.constant dense<0.000000e+00> : vector<2x768xf32>
    %58 = tpu.matmul %56, %57, %cst_49 {dimension_numbers = #tpu.dot_dimension_numbers<[1], [0], [0], [1], [0, 0, 1, 1], [], []>} : vector<2x2048xbf16>, vector<2048x768xbf16>, vector<2x768xf32> -> vector<2x768xf32>
    %c0_50 = arith.constant 0 : index
    %c0_51 = arith.constant 0 : index
    %59 = vector.load %arg8[%c0_50, %c0_51] : memref<80x768xf32, #tpu.memory_space<vmem>>, vector<80x768xf32>
    %cst_52 = arith.constant dense<0.000000e+00> : vector<2x768xf32>
    %60 = tpu.matmul %54, %59, %cst_52 {dimension_numbers = #tpu.dot_dimension_numbers<[1], [0], [0], [1], [0, 0, 1, 1], [], []>} : vector<2x80xf32>, vector<80x768xf32>, vector<2x768xf32> -> vector<2x768xf32>
    %61 = arith.addf %58, %60 : vector<2x768xf32>
    %c0_53 = arith.constant 0 : index
    %c0_54 = arith.constant 0 : index
    %62 = vector.load %arg10[%c0_53, %c0_54] : memref<1x768xf32, #tpu.memory_space<vmem>>, vector<1x768xf32>
    %63 = vector.broadcast %62 : vector<1x768xf32> to vector<2x768xf32>
    %64 = arith.addf %61, %63 : vector<2x768xf32>
    %c0_55 = arith.constant 0 : index
    %c0_56 = arith.constant 0 : index
    %65 = vector.load %arg2[%c0_55, %c0_56] : memref<2x256xf32, #tpu.memory_space<vmem>>, vector<2x256xf32>
    %66 = arith.truncf %65 : vector<2x256xf32> to vector<2x256xbf16>
    %c0_57 = arith.constant 0 : index
    %c0_58 = arith.constant 0 : index
    %67 = vector.load %arg9[%c0_57, %c0_58] : memref<256x768xbf16, #tpu.memory_space<vmem>>, vector<256x768xbf16>
    %cst_59 = arith.constant dense<0.000000e+00> : vector<2x768xf32>
    %68 = tpu.matmul %66, %67, %cst_59 {dimension_numbers = #tpu.dot_dimension_numbers<[1], [0], [0], [1], [0, 0, 1, 1], [], []>} : vector<2x256xbf16>, vector<256x768xbf16>, vector<2x768xf32> -> vector<2x768xf32>
    %c0_60 = arith.constant 0 : index
    %c0_61 = arith.constant 0 : index
    %69 = vector.load %arg11[%c0_60, %c0_61] : memref<1x768xf32, #tpu.memory_space<vmem>>, vector<1x768xf32>
    %70 = vector.broadcast %69 : vector<1x768xf32> to vector<2x768xf32>
    %71 = arith.addf %68, %70 : vector<2x768xf32>
    %72 = vector.extract_strided_slice %64 {offsets = [0, 0], sizes = [2, 256], strides = [1, 1]} : vector<2x768xf32> to vector<2x256xf32>
    %73 = vector.extract_strided_slice %71 {offsets = [0, 0], sizes = [2, 256], strides = [1, 1]} : vector<2x768xf32> to vector<2x256xf32>
    %74 = arith.addf %72, %73 : vector<2x256xf32>
    %75 = arith.negf %74 : vector<2x256xf32>
    %76 = math.exp %75 : vector<2x256xf32>
    %cst_62 = arith.constant 1.000000e+00 : f32
    %77 = vector.broadcast %cst_62 : f32 to vector<2x256xf32>
    %78 = arith.addf %77, %76 : vector<2x256xf32>
    %79 = arith.divf %77, %78 : vector<2x256xf32>
    %80 = vector.extract_strided_slice %64 {offsets = [0, 256], sizes = [2, 256], strides = [1, 1]} : vector<2x768xf32> to vector<2x256xf32>
    %81 = vector.extract_strided_slice %71 {offsets = [0, 256], sizes = [2, 256], strides = [1, 1]} : vector<2x768xf32> to vector<2x256xf32>
    %82 = arith.addf %80, %81 : vector<2x256xf32>
    %83 = arith.negf %82 : vector<2x256xf32>
    %84 = math.exp %83 : vector<2x256xf32>
    %cst_63 = arith.constant 1.000000e+00 : f32
    %85 = vector.broadcast %cst_63 : f32 to vector<2x256xf32>
    %86 = arith.addf %85, %84 : vector<2x256xf32>
    %87 = arith.divf %85, %86 : vector<2x256xf32>
    %88 = vector.extract_strided_slice %64 {offsets = [0, 512], sizes = [2, 256], strides = [1, 1]} : vector<2x768xf32> to vector<2x256xf32>
    %89 = vector.extract_strided_slice %71 {offsets = [0, 512], sizes = [2, 256], strides = [1, 1]} : vector<2x768xf32> to vector<2x256xf32>
    %90 = arith.mulf %79, %89 : vector<2x256xf32>
    %91 = arith.addf %88, %90 : vector<2x256xf32>
    %92 = math.tanh %91 : vector<2x256xf32>
    %cst_64 = arith.constant 1.000000e+00 : f32
    %93 = vector.broadcast %cst_64 : f32 to vector<2x256xf32>
    %94 = arith.subf %93, %87 : vector<2x256xf32>
    %95 = arith.mulf %94, %92 : vector<2x256xf32>
    %96 = arith.mulf %87, %65 : vector<2x256xf32>
    %97 = arith.addf %95, %96 : vector<2x256xf32>
    %c0_65 = arith.constant 0 : index
    %c0_66 = arith.constant 0 : index
    %98 = vector.load %arg12[%c0_65, %c0_66] : memref<256x40xf32, #tpu.memory_space<vmem>>, vector<256x40xf32>
    %cst_67 = arith.constant dense<0.000000e+00> : vector<2x40xf32>
    %99 = tpu.matmul %97, %98, %cst_67 {dimension_numbers = #tpu.dot_dimension_numbers<[1], [0], [0], [1], [0, 0, 1, 1], [], []>} : vector<2x256xf32>, vector<256x40xf32>, vector<2x40xf32> -> vector<2x40xf32>
    %c0_68 = arith.constant 0 : index
    %c0_69 = arith.constant 0 : index
    %100 = vector.load %arg13[%c0_68, %c0_69] : memref<1x40xf32, #tpu.memory_space<vmem>>, vector<1x40xf32>
    %101 = vector.broadcast %100 : vector<1x40xf32> to vector<2x40xf32>
    %102 = arith.addf %99, %101 : vector<2x40xf32>
    %103 = math.tanh %102 : vector<2x40xf32>
    %c0_70 = arith.constant 0 : index
    %c0_71 = arith.constant 0 : index
    %104 = vector.load %arg14[%c0_70, %c0_71] : memref<40x4xf32, #tpu.memory_space<vmem>>, vector<40x4xf32>
    %cst_72 = arith.constant dense<0.000000e+00> : vector<2x4xf32>
    %105 = tpu.matmul %103, %104, %cst_72 {dimension_numbers = #tpu.dot_dimension_numbers<[1], [0], [0], [1], [0, 0, 1, 1], [], []>} : vector<2x40xf32>, vector<40x4xf32>, vector<2x4xf32> -> vector<2x4xf32>
    %c0_73 = arith.constant 0 : index
    %c0_74 = arith.constant 0 : index
    %106 = vector.load %arg15[%c0_73, %c0_74] : memref<1x4xf32, #tpu.memory_space<vmem>>, vector<1x4xf32>
    %107 = vector.broadcast %106 : vector<1x4xf32> to vector<2x4xf32>
    %108 = arith.addf %105, %107 : vector<2x4xf32>
    %c0_75 = arith.constant 0 : index
    %c0_76 = arith.constant 0 : index
    %109 = vector.load %arg17[%c0_75, %c0_76] : memref<2x4xf32, #tpu.memory_space<vmem>>, vector<2x4xf32>
    tpu.vector_store %arg17[%c0_75, %c0_76], %108 {strides = array<i32>} : memref<2x4xf32, #tpu.memory_space<vmem>>, vector<2x4xf32>,
    %c0_77 = arith.constant 0 : index
    %c0_78 = arith.constant 0 : index
    %110 = vector.load %arg19[%c0_77, %c0_78] : memref<2x256xf32, #tpu.memory_space<vmem>>, vector<2x256xf32>
    tpu.vector_store %arg19[%c0_77, %c0_78], %97 {strides = array<i32>} : memref<2x256xf32, #tpu.memory_space<vmem>>, vector<2x256xf32>,
    %c0_79 = arith.constant 0 : index
    %c0_80 = arith.constant 0 : index
    %111 = vector.load %arg16[%c0_79, %c0_80] : memref<8x4xf32, #tpu.memory_space<vmem>>, vector<8x4xf32>
    %cst_81 = arith.constant dense<0.000000e+00> : vector<4xf32>
    %112 = vector.multi_reduction <add>, %111, %cst_81 [0] : vector<8x4xf32> to vector<4xf32>
    %113 = vector.shape_cast %112 : vector<4xf32> to vector<1x4xf32>
    %cst_82 = arith.constant 1.000000e+00 : f32
    %114 = vector.broadcast %cst_82 : f32 to vector<1x4xf32>
    %115 = arith.subf %113, %114 : vector<1x4xf32>
    %c0_83 = arith.constant 0 : index
    %c0_84 = arith.constant 0 : index
    %116 = vector.load %arg18[%c0_83, %c0_84] : memref<1x4xf32, #tpu.memory_space<vmem>>, vector<1x4xf32>
    tpu.vector_store %arg18[%c0_83, %c0_84], %115 {strides = array<i32>} : memref<1x4xf32, #tpu.memory_space<vmem>>, vector<1x4xf32>,
    return
  }
}

</mosaic_0001>

<bundles_post_ra>
// kernel: gru_cnn2_forward.1
= control target key start
LH: loop header
LB: loop body
LE: loop exit
PB: predicated region body
PF: predicated region fallthrough
CT: control target
= control target key end

     0   :  { %s13309_s0 = inlined_call_operand.vmem [shape: f32[2,40,256], index: 0, kind: input, shape index: {}]   ;;  %s13310_s1 = inlined_call_operand.vmem [shape: f32[2,8], index: 1, kind: input, shape index: {}]   ;;  %s13311_s2 = inlined_call_operand.vmem [shape: f32[2,256], index: 2, kind: input, shape index: {}]   ;;  %s13312_s3 = inlined_call_operand.vmem [shape: f32[8,40], index: 3, kind: input, shape index: {}]   ;;  %s13313_s4 = inlined_call_operand.vmem [shape: f32[8,1], index: 4, kind: input, shape index: {}]   ;;  %s13314_s5 = inlined_call_operand.vmem [shape: f32[8,80], index: 5, kind: input, shape index: {}]   ;;  %s13315_s6 = inlined_call_operand.vmem [shape: f32[1,80], index: 6, kind: input, shape index: {}]   ;;  %s13316_s7 = inlined_call_operand.vmem [shape: bf16[2048,768], index: 7, kind: input, shape index: {}]   ;;  %s13317_s8 = inlined_call_operand.vmem [shape: f32[80,768], index: 8, kind: input, shape index: {}]   ;;  %s13318_s9 = inlined_call_operand.vmem [shape: bf16[256,768], index: 9, kind: input, shape index: {}]   ;;  %s13319_s10 = inlined_call_operand.vmem [shape: f32[1,768], index: 10, kind: input, shape index: {}]   ;;  %s13320_s11 = inlined_call_operand.vmem [shape: f32[1,768], index: 11, kind: input, shape index: {}]   ;;  %s13321_s12 = inlined_call_operand.vmem [shape: f32[256,40], index: 12, kind: input, shape index: {}]   ;;  %s13322_s13 = inlined_call_operand.vmem [shape: f32[1,40], index: 13, kind: input, shape index: {}]   ;;  %s13323_s14 = inlined_call_operand.vmem [shape: f32[40,4], index: 14, kind: input, shape index: {}]   ;;  %s13324_s15 = inlined_call_operand.vmem [shape: f32[1,4], index: 15, kind: input, shape index: {}]   ;;  %s13325_s16 = inlined_call_operand.vmem [shape: f32[8,4], index: 16, kind: input, shape index: {}]   ;;  %s13326_s17 = inlined_call_operand.hbm [shape: f32[2,4], index: 17, kind: output, shape index: {0}]   ;;  %s13327_s18 = inlined_call_operand.hbm [shape: f32[1,4], index: 18, kind: output, shape index: {1}]   ;;  %s13328_s19 = inlined_call_operand.hbm [shape: f32[2,256], index: 19, kind: output, shape index: {2}]  }
   0x1   :  { %13330 = sst [smem:[#allocation10_spill]] %s13309_s0 }
   0x2   :  { %13331 = sst [smem:[#allocation11_spill]] %s13310_s1 }
   0x3   :  { %13332 = sst [smem:[#allocation12_spill]] %s13311_s2 }
   0x4   :  { %13333 = sst [smem:[#allocation13_spill]] %s13312_s3 }
   0x5   :  { %25 = vsyncpa [#allocation4], 0  ;;  %s13334_s20 = sld [smem:[#allocation10_spill]]  ;;  %vm78_vm0 = vcmask 326656   ;;  %v405_v21 = vld [vmem:[%s13314_s5] sm:$0xff]  ;;  %v9909_v22 = vmov 0.0  }
   0x6   :  { %s13335_s0 = sld [smem:[#allocation13_spill]]  ;;  %146 = vmatprep.mubr.f32.mxu0 %v9909_v22  ;;  %v72_v23 = vld [vmem:[%s13313_s4] sm:$0xff]  ;;  %319 = vmatprep.mubr.f32.mxu1 %v9909_v22  ;;  %vm9910_vm1 = vmmov 0   ;;  %vm413_vm2 = vcmask 64512   ;;  %v9911_v25 = vmov 0   ;;  %v1419_v26 = vld [vmem:[%s13317_s8 + $0x1b8] sm:$0xff] }
   0x7   :  { %s13336_s23 = sld [smem:[#allocation11_spill]]  ;;  %8512 = vset.pattern.permute.xlu0 %v9911_v25  ;;  %v1421_v27 = vld [vmem:[%s13317_s8 + $0x1c8] sm:$0xff]  ;;  %v1418_v28 = vld [vmem:[%s13317_s8 + $0x1b0] sm:$0xff]  ;;  %v1420_v29 = vld [vmem:[%s13317_s8 + $0x1c0] sm:$0xff]  ;;  %vm1424_vm3 = vcmask 654336  }
   0x8   :  { %75 = vperm.xlu0 %8512, %v72_v23   ;;  %v1413_v30 = vld [vmem:[%s13317_s8 + $0x188] sm:$0xff]  ;;  %v1415_v31 = vld [vmem:[%s13317_s8 + $0x198] sm:$0xff]  ;;  %v1412_v32 = vld [vmem:[%s13317_s8 + $0x180] sm:$0xff] }
   0x9   :  { %v1414_v33 = vld [vmem:[%s13317_s8 + $0x190] sm:$0xff]  ;;  %v1407_v34 = vld [vmem:[%s13317_s8 + $0x158] sm:$0xff]  ;;  %v1409_v35 = vld [vmem:[%s13317_s8 + $0x168] sm:$0xff] }
   0xa   :  { %v1406_v36 = vld [vmem:[%s13317_s8 + $0x150] sm:$0xff]  ;;  %v1408_v37 = vld [vmem:[%s13317_s8 + $0x160] sm:$0xff]  ;;  %v1401_v38 = vld [vmem:[%s13317_s8 + $0x128] sm:$0xff] }
   0xb   :  { %v71_v0 = vld [vmem:[%s13334_s20 + $0x48] sm:$0xff]  ;;  %v7562_v1 = vld [vmem:[%s13334_s20 + $0x98] sm:$0xff]  ;;  %v70_v2 = vld [vmem:[%s13334_s20 + $0x40] sm:$0xff] }
   0xc   :  { %104 = vmatprep.subr.mxu0 %v71_v0  ;;  %277 = vmatprep.subr.mxu1 %v7562_v1  ;;  %v7561_v3 = vld [vmem:[%s13334_s20 + $0x90] sm:$0xff]  ;;  %v69_v4 = vld [vmem:[%s13334_s20 + $0x38] sm:$0xff]  ;;  %v7560_v5 = vld [vmem:[%s13334_s20 + $0x88] sm:$0xff] }
   0xd   :  { %105 = vmatpush1.msra.mxu0 %v70_v2  ;;  %278 = vmatpush1.msra.mxu1 %v7561_v3  ;;  %v68_v6 = vld [vmem:[%s13334_s20 + $0x30] sm:$0xff]  ;;  %v7559_v7 = vld [vmem:[%s13334_s20 + $0x80] sm:$0xff]  ;;  %v67_v8 = vld [vmem:[%s13334_s20 + $0x28] sm:$0xff] }
   0xe   :  { %106 = vmatprep.subr.mxu0 %v69_v4  ;;  %279 = vmatprep.subr.mxu1 %v7560_v5  ;;  %v7558_v9 = vld [vmem:[%s13334_s20 + $0x78] sm:$0xff]  ;;  %v66_v10 = vld [vmem:[%s13334_s20 + $0x20] sm:$0xff]  ;;  %v7557_v11 = vld [vmem:[%s13334_s20 + $0x70] sm:$0xff] }
   0xf   :  { %107 = vmatpush1.msra.mxu0 %v68_v6  ;;  %280 = vmatpush1.msra.mxu1 %v7559_v7  ;;  %v65_v12 = vld [vmem:[%s13334_s20 + $0x18] sm:$0xff]  ;;  %v7556_v13 = vld [vmem:[%s13334_s20 + $0x68] sm:$0xff]  ;;  %v64_v14 = vld [vmem:[%s13334_s20 + $0x10] sm:$0xff] }
  0x10   :  { %108 = vmatprep.subr.mxu0 %v67_v8  ;;  %281 = vmatprep.subr.mxu1 %v7558_v9  ;;  %v7555_v15 = vld [vmem:[%s13334_s20 + $0x60] sm:$0xff]  ;;  %v63_v16 = vld [vmem:[%s13334_s20 + $0x8] sm:$0xff]  ;;  %v7554_v17 = vld [vmem:[%s13334_s20 + $0x58] sm:$0xff] }
  0x11   :  { %109 = vmatpush1.msra.mxu0 %v66_v10  ;;  %282 = vmatpush1.msra.mxu1 %v7557_v11  ;;  %v62_v18 = vld [vmem:[%s13334_s20] sm:$0xff]  ;;  %v7553_v19 = vld [vmem:[%s13334_s20 + $0x50] sm:$0xff]  ;;  %v1403_v39 = vld [vmem:[%s13317_s8 + $0x138] sm:$0xff] }
  0x12   :  { %110 = vmatprep.subr.mxu0 %v65_v12  ;;  %283 = vmatprep.subr.mxu1 %v7556_v13  ;;  %v61_v20 = vld [vmem:[%s13335_s0] sm:$0xff]  ;;  %v1402_v41 = vld [vmem:[%s13317_s8 + $0x130] sm:$0xff]  ;;  %v1395_v42 = vld [vmem:[%s13317_s8 + $0xf8] sm:$0xff] }
  0x13   :  { %111 = vmatpush1.msra.mxu0 %v64_v14  ;;  %284 = vmatpush1.msra.mxu1 %v7555_v15  ;;  %v404_v24 = vld [vmem:[%s13336_s23] sm:$0x3]  ;;  %v1397_v43 = vld [vmem:[%s13317_s8 + $0x108] sm:$0xff]  ;;  %v1394_v44 = vld [vmem:[%s13317_s8 + $0xf0] sm:$0xff] }
  0x14   :  { %112 = vmatprep.subr.mxu0 %v63_v16  ;;  %285 = vmatprep.subr.mxu1 %v7554_v17  ;;  %v1400_v40 = vld [vmem:[%s13317_s8 + $0x120] sm:$0xff]  ;;  %v1389_v46 = vld [vmem:[%s13317_s8 + $0xc8] sm:$0xff]  ;;  %v1391_v47 = vld [vmem:[%s13317_s8 + $0xd8] sm:$0xff] }
  0x15   :  { %113 = vmatpush1.msra.mxu0 %v62_v18  ;;  %286 = vmatpush1.msra.mxu1 %v7553_v19  ;;  %v1396_v45 = vld [vmem:[%s13317_s8 + $0x100] sm:$0xff]  ;;  %v1390_v49 = vld [vmem:[%s13317_s8 + $0xd0] sm:$0xff]  ;;  %v1383_v50 = vld [vmem:[%s13317_s8 + $0x98] sm:$0xff]  ;;  %v9912_v18 = vmov 1966171168  }
  0x16   :  { %7552 = vmatmul.mubr.msk.f32.vlgmr.msra.gmra.mxu0 %vm78_vm0, %v61_v20  ;;  %7563 = vmatmul.mubr.msk.f32.vlgmr.msra.gmra.mxu1 %vm78_vm0, %v61_v20  ;;  %v1388_v48 = vld [vmem:[%s13317_s8 + $0xc0] sm:$0xff]  ;;  %v1385_v51 = vld [vmem:[%s13317_s8 + $0xa8] sm:$0xff]  ;;  %v1382_v52 = vld [vmem:[%s13317_s8 + $0x90] sm:$0xff]  ;;  %v159_v19 = vunpack.c.l.s4 %v9912_v18  ;;  %v161_v20 = vlaneseq }
  0x17   :  { %8486 = vmatprep.subr.mxu1 %v9909_v22  ;;  %8488 = vmatprep.mubr.msk.f32.mxu1 %vm9910_vm1, %v9909_v22  ;;  %v1384_v53 = vld [vmem:[%s13317_s8 + $0xa0] sm:$0xff]  ;;  %v1377_v54 = vld [vmem:[%s13317_s8 + $0x68] sm:$0xff]  ;;  %v1379_v55 = vld [vmem:[%s13317_s8 + $0x78] sm:$0xff] }
  0x18   :  { %8487 = vmatpush3.msra.mxu1 %v405_v21  ;;  %1563 = vmatprep.mubr.f32.mxu0 %v9909_v22  ;;  %v1376_v56 = vld [vmem:[%s13317_s8 + $0x60] sm:$0xff]  ;;  %v1378_v57 = vld [vmem:[%s13317_s8 + $0x70] sm:$0xff]  ;;  %v1371_v58 = vld [vmem:[%s13317_s8 + $0x38] sm:$0xff]  ;;  %v160_v21 = vunpack.c.0.s8 %v159_v19  ;;  %vm10254_vm4 = vcmp.lt.s32.totalorder %v161_v20, 256 }
  0x19   :  { %249 = vperm.xlu0 %8512, %v72_v23   ;;  %1440 = vmatprep.subr.mxu1 %v1419_v26  ;;  %v1373_v59 = vld [vmem:[%s13317_s8 + $0x48] sm:$0xff]  ;;  %v1370_v60 = vld [vmem:[%s13317_s8 + $0x30] sm:$0xff]  ;;  %v1372_v61 = vld [vmem:[%s13317_s8 + $0x40] sm:$0xff]  ;;  %v10227_v23 = vshrl.u32 %v161_v20, 7 }
  0x1a   :  { %8489 = vmatmul.mubr.msk.f32.vlgmr.msra.gmra.mxu1 %vm413_vm2, %v404_v24  ;;  %1511 = vmatprep.subr.mxu0 %v1421_v27  ;;  %v1365_v62 = vld [vmem:[%s13317_s8 + $0x8] sm:$0xff]  ;;  %v1367_v63 = vld [vmem:[%s13317_s8 + $0x18] sm:$0xff]  ;;  %v1364_v0 = vld [vmem:[%s13317_s8] sm:$0xff] }
  0x1b   :  { %1492 = vmatprep.mubr.f32.mxu1 %v9909_v22  ;;  %1441 = vmatpush1.msra.mxu1 %v1418_v28  ;;  %v1366_v1 = vld [vmem:[%s13317_s8 + $0x10] sm:$0xff]  ;;  %v1423_v3 = vld [vmem:[%s13317_s8 + $0x1d8] sm:$0xff]  ;;  %v7564_v10 = vld [vmem:[%s13315_s6] ss:$0 sm:$0xff]  ;;  %v163_v27 = vsub.s32 %v160_v21, %v10227_v23 }
  0x1c   :  { %1512 = vmatpush1.msra.mxu0 %v1420_v29  ;;  %1442 = vmatprep.subr.mxu1 %v1413_v30  ;;  %v8515_v2 = vld [vmem:[%s13316_s7 + $0x154] ss:$24 sps:$4 sm:$0xff]   ;;  %v8513_v25 = vld [vmem:[%s13316_s7 + $0x150] ss:$24 sps:$4 sm:$0xff]   ;;  %v1380_v19 = vld [vmem:[%s13317_s8 + $0x80] sm:$0xff] }
  0x1d   :  { %1513 = vmatprep.subr.mxu0 %v1415_v31  ;;  %1443 = vmatpush1.msra.mxu1 %v1412_v32  ;;  %v1422_v28 = vld [vmem:[%s13317_s8 + $0x1d0] sm:$0xff]  ;;  %v1417_v30 = vld [vmem:[%s13317_s8 + $0x1a8] sm:$0xff] }
  0x1e   :  { %1514 = vmatpush1.msra.mxu0 %v1414_v33  ;;  %1444 = vmatprep.subr.mxu1 %v1407_v34  ;;  %v1416_v34 = vld [vmem:[%s13317_s8 + $0x1a0] sm:$0xff]  ;;  %v1381_v18 = vld [vmem:[%s13317_s8 + $0x88] sm:$0xff] }
  0x1f   :  { %1515 = vmatprep.subr.mxu0 %v1409_v35  ;;  %1445 = vmatpush1.msra.mxu1 %v1406_v36  ;;  %v8527_v20 = vld [vmem:[%s13316_s7 + $0x94] ss:$24 sps:$4 sm:$0xff]  }
  0x20   :  { %1516 = vmatpush1.msra.mxu0 %v1408_v37  ;;  %1446 = vmatprep.subr.mxu1 %v1401_v38 }
  0x21   :  { %1517 = vmatprep.subr.mxu0 %v1403_v39  ;;  %1447 = vmatpush1.msra.mxu1 %v1400_v40  ;;  %v1411_v40 = vld [vmem:[%s13317_s8 + $0x178] sm:$0xff] }
  0x22   :  { %1518 = vmatpush1.msra.mxu0 %v1402_v41  ;;  %1448 = vmatprep.subr.mxu1 %v1395_v42  ;;  %v8518_v41 = vld [vmem:[%s13316_s7 + $0x124] ss:$24 sps:$4 sm:$0xff]  }
  0x23   :  { %1519 = vmatprep.subr.mxu0 %v1397_v43  ;;  %1449 = vmatpush1.msra.mxu1 %v1394_v44  ;;  %v8540_v42 = vld [vmem:[%s13316_s7 + $0x424] ss:$24 sps:$4 sm:$0xff]  }
  0x24   :  { %1520 = vmatpush1.msra.mxu0 %v1396_v45  ;;  %1450 = vmatprep.subr.mxu1 %v1389_v46  ;;  %v8516_v45 = vld [vmem:[%s13316_s7 + $0x120] ss:$24 sps:$4 sm:$0xff]   ;;  %v1410_v46 = vld [vmem:[%s13317_s8 + $0x170] sm:$0xff] }
  0x25   :  { %1521 = vmatprep.subr.mxu0 %v1391_v47  ;;  %1451 = vmatpush1.msra.mxu1 %v1388_v48  ;;  %v9913_v47 = vmov 1983009808  }
  0x26   :  { %1522 = vmatpush1.msra.mxu0 %v1390_v49  ;;  %1452 = vmatprep.subr.mxu1 %v1383_v50  ;;  %v10264_v48 = vunpack.c.l.s4 %v9913_v47  ;;  %v8546_v47 = vld [vmem:[%s13316_s7 + $0x3f4] ss:$24 sps:$4 sm:$0xff]  }
  0x27   :  { %1523 = vmatprep.subr.mxu0 %v1385_v51  ;;  %1453 = vmatpush1.msra.mxu1 %v1382_v52 }
  0x28   :  { %1524 = vmatpush1.msra.mxu0 %v1384_v53  ;;  %1454 = vmatprep.subr.mxu1 %v1377_v54  ;;  %v1405_v53 = vld [vmem:[%s13317_s8 + $0x148] sm:$0xff] }
  0x29   :  { %1525 = vmatprep.subr.mxu0 %v1379_v55  ;;  %1455 = vmatpush1.msra.mxu1 %v1376_v56 }
  0x2a   :  { %1526 = vmatpush1.msra.mxu0 %v1378_v57  ;;  %1456 = vmatprep.subr.mxu1 %v1371_v58  ;;  %v1404_v58 = vld [vmem:[%s13317_s8 + $0x140] sm:$0xff] }
  0x2b   :  { %1527 = vmatprep.subr.mxu0 %v1373_v59  ;;  %1457 = vmatpush1.msra.mxu1 %v1370_v60  ;;  %v8521_v59 = vld [vmem:[%s13316_s7 + $0xf4] ss:$24 sps:$4 sm:$0xff]  }
  0x2c   :  { %1528 = vmatpush1.msra.mxu0 %v1372_v61  ;;  %1458 = vmatprep.subr.mxu1 %v1365_v62 }
  0x2d   :  { %1529 = vmatprep.subr.mxu0 %v1367_v63  ;;  %1459 = vmatpush1.msra.mxu1 %v1364_v0  ;;  %v1399_v0 = vld [vmem:[%s13317_s8 + $0x118] sm:$0xff] }
  0x2e   :  { %1530 = vmatpush1.msra.mxu0 %v1366_v1  ;;  %1582 = vmatprep.subr.mxu1 %v1423_v3  ;;  %v8519_v1 = vld [vmem:[%s13316_s7 + $0xf0] ss:$24 sps:$4 sm:$0xff]  }
  0x2f   :  { %5481 = vmatprep.subr.bf16.mxu0 %v8515_v2 }
  0x83   :  { %v76_v4 = vpop.permute.xlu0 %75 }
  0x94   :  { %v250_v5 = vpop.permute.xlu0 %249 }
  0xd6   :  { %v148_v6 = vpop.f32.mrf.mxu0  ;;  %v321_v7 = vpop.f32.mrf.mxu1 }
  0xd7   :  { %v149_v8 = vadd.f32 %v148_v6, %v76_v4  ;;  %v322_v9 = vadd.f32 %v321_v7, %v250_v5  ;;  %v1398_v6 = vld [vmem:[%s13317_s8 + $0x110] sm:$0xff] }
  0xd8   :  { %v150_v11 = vpop.f32.mrf.mxu0  ;;  %v323_v12 = vpop.f32.mrf.mxu1 }
  0xd9   :  { %9813 = vtanh.f32 %v149_v8  ;;  %v151_v13 = vadd.f32 %v150_v11, %v76_v4  ;;  %v324_v14 = vadd.f32 %v323_v12, %v250_v5  ;;  %v1392_v12 = vld [vmem:[%s13317_s8 + $0xe0] sm:$0xff] }
  0xda   :  { %9815 = vtanh.f32 %v322_v9  ;;  %v483_v15 = vpop.f32.mrf.mxu1  ;;  %v1393_v9 = vld [vmem:[%s13317_s8 + $0xe8] sm:$0xff] }
  0xdb   :  { %9817 = vtanh.f32 %v151_v13  ;;  %v484_v16 = vadd.f32 %v7564_v10, %v483_v15  ;;  %v8524_v13 = vld [vmem:[%s13316_s7 + $0xc4] ss:$24 sps:$4 sm:$0xff]  }
  0xdc   :  { %9819 = vtanh.f32 %v324_v14  ;;  %v8490_v17 = vpop.f32.mrf.mxu1  ;;  %v499_v14 = vunpack.c.0.s8 %v10264_v48  ;;  %v1387_v15 = vld [vmem:[%s13317_s8 + $0xb8] sm:$0xff]  ;;  %v8544_v48 = vld [vmem:[%s13316_s7 + $0x3f0] ss:$24 sps:$4 sm:$0xff]  }
  0xdd   :  { %9821 = vtanh.f32 %v484_v16  ;;  %v8522_v16 = vld [vmem:[%s13316_s7 + $0xc0] ss:$24 sps:$4 sm:$0xff]   ;;  %v1386_v17 = vld [vmem:[%s13317_s8 + $0xb0] sm:$0xff] }
  0xde   :  { %v10346_v21 = vsub.s32 %v499_v14, %v10227_v23  ;;  %v8591_v14 = vld [vmem:[%s13316_s7 + $0x184] ss:$24 sps:$4 sm:$0xff]  }
  0xe6   :  { %v9814_v24 = vpop.eup %9813 }
  0xe7   :  { %v9816_v26 = vpop.eup %9815 }
  0xe8   :  { %v9818_v29 = vpop.eup %9817 }
  0xe9   :  { %v9820_v31 = vpop.eup %9819  ;;  %v157_v32 = vcombine.low %v9814_v24, %v9818_v29  ;;  %v197_v33 = vcombine.high %v9814_v24, %v9818_v29  ;;  %v1375_v24 = vld [vmem:[%s13317_s8 + $0x58] sm:$0xff] }
  0xea   :  { %v10242_v35 = vpop.eup %9821  ;;  %v330_v36 = vcombine.low %v9816_v26, %v9820_v31  ;;  %v367_v37 = vcombine.high %v9816_v26, %v9820_v31  ;;  %v1374_v26 = vld [vmem:[%s13317_s8 + $0x50] sm:$0xff]  ;;  %v8530_v29 = vld [vmem:[%s13316_s7 + $0x64] ss:$24 sps:$4 sm:$0xff]  }
  0xeb   :  { %v164_v38 = vrot.slane %v157_v32, %v163_v27  ;;  %v204_v39 = vrot.slane %v197_v33, %v163_v27  ;;  %7566 = vmatmul.mubr.msk.f32.vlgmr.msra.gmra.mxu1 %vm1424_vm3, %v10242_v35  ;;  %7567 = vmatmul.mubr.msk.f32.vlgmr.msra.gmra.mxu0 %vm1424_vm3, %v10242_v35  ;;  %v1368_v32 = vld [vmem:[%s13317_s8 + $0x20] sm:$0xff] }
  0xec   :  { %v337_v43 = vrot.slane %v330_v36, %v163_v27  ;;  %v374_v44 = vrot.slane %v367_v37, %v163_v27  ;;  %1583 = vmatpush1.msra.mxu1 %v1422_v28  ;;  %5482 = vmatpush1.bf16.msra.mxu0 %v8513_v25  ;;  %v8525_v25 = vld [vmem:[%s13316_s7 + $0x90] ss:$24 sps:$4 sm:$0xff]   ;;  %v8528_v33 = vld [vmem:[%s13316_s7 + $0x60] ss:$24 sps:$4 sm:$0xff]  }
  0xed   :  { %v171_v49 = vrot.slane %v164_v38, %v163_v27  ;;  %v178_v50 = vcombine.high %v164_v38, %v164_v38  ;;  %v211_v51 = vrot.slane %v204_v39, %v163_v27  ;;  %v215_v52 = vcombine.high %v204_v39, %v204_v39  ;;  %1584 = vmatprep.subr.mxu1 %v1417_v30  ;;  %v1369_v28 = vld [vmem:[%s13317_s8 + $0x28] sm:$0xff] }
  0xee   :  { %v344_v54 = vrot.slane %v337_v43, %v163_v27  ;;  %v348_v55 = vcombine.high %v337_v43, %v337_v43  ;;  %v381_v56 = vrot.slane %v374_v44, %v163_v27  ;;  %v385_v57 = vcombine.high %v374_v44, %v374_v44  ;;  %1585 = vmatpush1.msra.mxu1 %v1416_v34  ;;  %v8533_v34 = vld [vmem:[%s13316_s7 + $0x454] ss:$24 sps:$4 sm:$0xff]   ;;  %v8531_v36 = vld [vmem:[%s13316_s7 + $0x450] ss:$24 sps:$4 sm:$0xff]  }
  0xef   :  { %177 = vst.msk [vmem:[#allocation2] ss:$2 sm:$0x3] %vm10254_vm4, %v171_v49  ;;  %v185_v60 = vrot.slane %v178_v50, %v163_v27  ;;  %v189_v61 = vcombine.high %v171_v49, %v171_v49  ;;  %214 = vst.msk [vmem:[#allocation2 + $0x10] ss:$2 sm:$0x3] %vm10254_vm4, %v211_v51  ;;  %v222_v62 = vrot.slane %v215_v52, %v163_v27  ;;  %1586 = vmatprep.subr.mxu1 %v1411_v40 }
  0xf0   :  { %v226_v63 = vcombine.high %v211_v51, %v211_v51  ;;  %347 = vst.msk [vmem:[#allocation2 + $0x1] ss:$2 sm:$0x3] %vm10254_vm4, %v344_v54  ;;  %v355_v2 = vrot.slane %v348_v55, %v163_v27  ;;  %v359_v3 = vcombine.high %v344_v54, %v344_v54  ;;  %384 = vst.msk [vmem:[#allocation2 + $0x11] ss:$2 sm:$0x3] %vm10254_vm4, %v381_v56  ;;  %5483 = vmatprep.subr.bf16.mxu0 %v8518_v41 }
  0xf1   :  { %v392_v4 = vrot.slane %v385_v57, %v163_v27  ;;  %v396_v5 = vcombine.high %v381_v56, %v381_v56  ;;  %188 = vst.msk [vmem:[#allocation2 + $0x4] ss:$2 sm:$0x3] %vm10254_vm4, %v185_v60  ;;  %192 = vst.msk [vmem:[#allocation2 + $0x8] ss:$2 sm:$0x3] %vm10254_vm4, %v189_v61  ;;  %v193_v7 = vcombine.high %v185_v60, %v185_v60  ;;  %1587 = vmatpush1.msra.mxu1 %v1410_v46 }
  0xf2   :  { %225 = vst.msk [vmem:[#allocation2 + $0x14] ss:$2 sm:$0x3] %vm10254_vm4, %v222_v62  ;;  %229 = vst.msk [vmem:[#allocation2 + $0x18] ss:$2 sm:$0x3] %vm10254_vm4, %v226_v63  ;;  %v230_v8 = vcombine.high %v222_v62, %v222_v62  ;;  %5484 = vmatpush1.bf16.msra.mxu0 %v8516_v45  ;;  %v363_v10 = vcombine.high %v355_v2, %v355_v2  ;;  %1588 = vmatprep.subr.mxu1 %v1405_v53 }
  0xf3   :  { %358 = vst.msk [vmem:[#allocation2 + $0x5] ss:$2 sm:$0x3] %vm10254_vm4, %v355_v2  ;;  %362 = vst.msk [vmem:[#allocation2 + $0x9] ss:$2 sm:$0x3] %vm10254_vm4, %v359_v3  ;;  %v400_v11 = vcombine.high %v392_v4, %v392_v4  ;;  %5485 = vmatprep.subr.bf16.mxu0 %v8521_v59  ;;  %1589 = vmatpush1.msra.mxu1 %v1404_v58 }
  0xf4   :  { %395 = vst.msk [vmem:[#allocation2 + $0x15] ss:$2 sm:$0x3] %vm10254_vm4, %v392_v4  ;;  %399 = vst.msk [vmem:[#allocation2 + $0x19] ss:$2 sm:$0x3] %vm10254_vm4, %v396_v5  ;;  %1634 = vmatprep.mubr.f32.mxu1 %v9909_v22  ;;  %1590 = vmatprep.subr.mxu1 %v1399_v0 }
  0xf5   :  { %196 = vst.msk [vmem:[#allocation2 + $0xc] ss:$2 sm:$0x3] %vm10254_vm4, %v193_v7  ;;  %233 = vst.msk [vmem:[#allocation2 + $0x1c] ss:$2 sm:$0x3] %vm10254_vm4, %v230_v8  ;;  %1591 = vmatpush1.msra.mxu1 %v1398_v6 }
  0xf6   :  { %366 = vst.msk [vmem:[#allocation2 + $0xd] ss:$2 sm:$0x3] %vm10254_vm4, %v363_v10  ;;  %403 = vst.msk [vmem:[#allocation2 + $0x1d] ss:$2 sm:$0x3] %vm10254_vm4, %v400_v11  ;;  %5486 = vmatpush1.bf16.msra.mxu0 %v8519_v1  ;;  %1592 = vmatprep.subr.mxu1 %v1393_v9 }
  0xf7   :  { %5487 = vmatprep.subr.bf16.mxu0 %v8524_v13  ;;  %1593 = vmatpush1.msra.mxu1 %v1392_v12  ;;  %v8537_v41 = vld [vmem:[%s13316_s7 + $0x34] ss:$24 sps:$4 sm:$0xff]   ;;  %v8535_v44 = vld [vmem:[%s13316_s7 + $0x30] ss:$24 sps:$4 sm:$0xff]   ;;  %v8538_v45 = vld [vmem:[%s13316_s7 + $0x420] ss:$24 sps:$4 sm:$0xff]  }
  0xf8   :  { %1594 = vmatprep.subr.mxu1 %v1387_v15  ;;  %v8541_v46 = vld [vmem:[%s13316_s7] ss:$24 sps:$4 sm:$0xff]   ;;  %v8549_v49 = vld [vmem:[%s13316_s7 + $0x2d4] ss:$24 sps:$4 sm:$0xff]   ;;  %v8547_v50 = vld [vmem:[%s13316_s7 + $0x2d0] ss:$24 sps:$4 sm:$0xff]  }
  0xf9   :  { %1595 = vmatpush1.msra.mxu1 %v1386_v17  ;;  %v8552_v51 = vld [vmem:[%s13316_s7 + $0x3c4] ss:$24 sps:$4 sm:$0xff]   ;;  %v8550_v52 = vld [vmem:[%s13316_s7 + $0x3c0] ss:$24 sps:$4 sm:$0xff]   ;;  %v8558_v55 = vld [vmem:[%s13316_s7 + $0x394] ss:$24 sps:$4 sm:$0xff]  }
  0xfa   :  { %5488 = vmatpush1.bf16.msra.mxu0 %v8522_v16  ;;  %v488_v27 = vld [vmem:[#allocation2] sm:$0xff]  ;;  %1596 = vmatprep.subr.mxu1 %v1381_v18  ;;  %v8556_v56 = vld [vmem:[%s13316_s7 + $0x390] ss:$24 sps:$4 sm:$0xff]   ;;  %v8561_v57 = vld [vmem:[%s13316_s7 + $0x274] ss:$24 sps:$4 sm:$0xff]  }
  0xfb   :  { %5489 = vmatprep.subr.bf16.mxu0 %v8527_v20  ;;  %v10364_v30 = vrot.slane %v488_v27, %v10346_v21  ;;  %v496_v31 = vcombine.high %v488_v27, %v488_v27  ;;  %1597 = vmatpush1.msra.mxu1 %v1380_v19  ;;  %v8555_v53 = vld [vmem:[%s13316_s7 + $0x2a4] ss:$24 sps:$4 sm:$0xff]   ;;  %v8553_v54 = vld [vmem:[%s13316_s7 + $0x2a0] ss:$24 sps:$4 sm:$0xff]   ;;  %v8559_v58 = vld [vmem:[%s13316_s7 + $0x270] ss:$24 sps:$4 sm:$0xff]  }
  0xfc   :  { %1598 = vmatprep.subr.mxu1 %v1375_v24  ;;  %v8564_v59 = vld [vmem:[%s13316_s7 + $0x364] ss:$24 sps:$4 sm:$0xff]   ;;  %v8562_v60 = vld [vmem:[%s13316_s7 + $0x360] ss:$24 sps:$4 sm:$0xff]   ;;  %v8570_v63 = vld [vmem:[%s13316_s7 + $0x334] ss:$24 sps:$4 sm:$0xff]  }
  0xfd   :  { %v511_v37 = vcombine.high %v10364_v30, %v10364_v30  ;;  %v10381_v38 = vrot.slane %v496_v31, %v10346_v21  ;;  %1599 = vmatpush1.msra.mxu1 %v1374_v26  ;;  %v8567_v61 = vld [vmem:[%s13316_s7 + $0x244] ss:$24 sps:$4 sm:$0xff]   ;;  %v8565_v62 = vld [vmem:[%s13316_s7 + $0x240] ss:$24 sps:$4 sm:$0xff]   ;;  %v8568_v0 = vld [vmem:[%s13316_s7 + $0x330] ss:$24 sps:$4 sm:$0xff]  }
  0xfe   :  { %5490 = vmatpush1.bf16.msra.mxu0 %v8525_v25  ;;  %1600 = vmatprep.subr.mxu1 %v1369_v28  ;;  %v8573_v1 = vld [vmem:[%s13316_s7 + $0x214] ss:$24 sps:$4 sm:$0xff]   ;;  %v8571_v2 = vld [vmem:[%s13316_s7 + $0x210] ss:$24 sps:$4 sm:$0xff]   ;;  %v8576_v3 = vld [vmem:[%s13316_s7 + $0x304] ss:$24 sps:$4 sm:$0xff]  }
  0xff   :  { %5491 = vmatprep.subr.bf16.mxu0 %v8530_v29  ;;  %v10383_v39 = vpack.c.bf16 %v511_v37, %v511_v37  ;;  %v512_v40 = vcombine.high %v10381_v38, %v10381_v38  ;;  %1601 = vmatpush1.msra.mxu1 %v1368_v32  ;;  %v8574_v4 = vld [vmem:[%s13316_s7 + $0x300] ss:$24 sps:$4 sm:$0xff]   ;;  %v8579_v5 = vld [vmem:[%s13316_s7 + $0x1e4] ss:$24 sps:$4 sm:$0xff]   ;;  %v8582_v7 = vld [vmem:[%s13316_s7 + $0x5d4] ss:$24 sps:$4 sm:$0xff]   ;;  %v10538_v29 = vpack.c.bf16 %v10364_v30, %v10364_v30 }
 0x100   :  { %7568 = vmatmul.mubr.msk.f32.vlgmr.msra.gmra.mxu1 %vm1424_vm3, %v10242_v35  ;;  %5522 = vmatprep.subr.bf16.mxu1 %v8533_v34  ;;  %v8543_v35 = vld [vmem:[%s13316_s7 + $0x4] ss:$24 sps:$4 sm:$0xff]   ;;  %v8577_v6 = vld [vmem:[%s13316_s7 + $0x1e0] ss:$24 sps:$4 sm:$0xff]   ;;  %v8580_v8 = vld [vmem:[%s13316_s7 + $0x5d0] ss:$24 sps:$4 sm:$0xff]  }
 0x101   :  { %v10395_v43 = vpack.c.bf16 %v512_v40, %v512_v40  ;;  %5513 = vmatprep.mubr.bf16.mxu0 %v10383_v39  ;;  %5523 = vmatpush1.bf16.msra.mxu1 %v8531_v36  ;;  %v8585_v9 = vld [vmem:[%s13316_s7 + $0x1b4] ss:$24 sps:$4 sm:$0xff]   ;;  %v8588_v10 = vld [vmem:[%s13316_s7 + $0x5a4] ss:$24 sps:$4 sm:$0xff]   ;;  %v8583_v11 = vld [vmem:[%s13316_s7 + $0x1b0] ss:$24 sps:$4 sm:$0xff]  }
 0x102   :  { %5492 = vmatpush1.bf16.msra.mxu0 %v8528_v33  ;;  %5524 = vmatprep.subr.bf16.mxu1 %v8540_v42  ;;  %v489_v12 = vld [vmem:[#allocation2 + $0x8] sm:$0xff]  ;;  %v8586_v13 = vld [vmem:[%s13316_s7 + $0x5a0] ss:$24 sps:$4 sm:$0xff]   ;;  %v8597_v19 = vld [vmem:[%s13316_s7 + $0x544] ss:$24 sps:$4 sm:$0xff]  }
 0x103   :  { %5554 = vmatprep.mubr.bf16.mxu1 %v10395_v43  ;;  %5493 = vmatprep.subr.bf16.mxu0 %v8537_v41  ;;  %v8589_v15 = vld [vmem:[%s13316_s7 + $0x180] ss:$24 sps:$4 sm:$0xff]   ;;  %v8594_v16 = vld [vmem:[%s13316_s7 + $0x574] ss:$24 sps:$4 sm:$0xff]   ;;  %v10511_v17 = vrot.slane %v489_v12, %v10346_v21  ;;  %v8592_v18 = vld [vmem:[%s13316_s7 + $0x570] ss:$24 sps:$4 sm:$0xff]  }
 0x104   :  { %v8600_v20 = vld [vmem:[%s13316_s7 + $0x754] ss:$24 sps:$4 sm:$0xff]   ;;  %v8598_v24 = vld [vmem:[%s13316_s7 + $0x750] ss:$24 sps:$4 sm:$0xff]   ;;  %v8595_v26 = vld [vmem:[%s13316_s7 + $0x540] ss:$24 sps:$4 sm:$0xff]  }
 0x105   :  { %5525 = vmatpush1.bf16.msra.mxu1 %v8538_v45  ;;  %v528_v25 = vcombine.high %v10511_v17, %v10511_v17  ;;  %v8606_v27 = vld [vmem:[%s13316_s7 + $0x724] ss:$24 sps:$4 sm:$0xff]   ;;  %v8603_v28 = vld [vmem:[%s13316_s7 + $0x514] ss:$24 sps:$4 sm:$0xff]   ;;  %v8604_v32 = vld [vmem:[%s13316_s7 + $0x720] ss:$24 sps:$4 sm:$0xff]  }
 0x106   :  { %5494 = vmatpush1.bf16.msra.mxu0 %v8535_v44  ;;  %5526 = vmatprep.subr.bf16.mxu1 %v8546_v47  ;;  %v8601_v33 = vld [vmem:[%s13316_s7 + $0x510] ss:$24 sps:$4 sm:$0xff]   ;;  %v8612_v30 = vld [vmem:[%s13316_s7 + $0x6f4] ss:$24 sps:$4 sm:$0xff]   ;;  %v8609_v34 = vld [vmem:[%s13316_s7 + $0x4e4] ss:$24 sps:$4 sm:$0xff]   ;;  %v513_v44 = vcombine.high %v489_v12, %v489_v12 }
 0x107   :  { %5495 = vmatprep.subr.bf16.mxu0 %v8543_v35  ;;  %v10540_v31 = vpack.c.bf16 %v528_v25, %v528_v25  ;;  %v8610_v36 = vld [vmem:[%s13316_s7 + $0x6f0] ss:$24 sps:$4 sm:$0xff]   ;;  %v8607_v37 = vld [vmem:[%s13316_s7 + $0x4e0] ss:$24 sps:$4 sm:$0xff]   ;;  %v8618_v40 = vld [vmem:[%s13316_s7 + $0x6c4] ss:$24 sps:$4 sm:$0xff]  }
 0x108   :  { %v8615_v41 = vld [vmem:[%s13316_s7 + $0x4b4] ss:$24 sps:$4 sm:$0xff]   ;;  %v8616_v42 = vld [vmem:[%s13316_s7 + $0x6c0] ss:$24 sps:$4 sm:$0xff]   ;;  %v8613_v45 = vld [vmem:[%s13316_s7 + $0x4b0] ss:$24 sps:$4 sm:$0xff]  }
 0x109   :  { %5527 = vmatpush1.bf16.msra.mxu1 %v8544_v48  ;;  %v8624_v35 = vld [vmem:[%s13316_s7 + $0x694] ss:$24 sps:$4 sm:$0xff]   ;;  %v8622_v47 = vld [vmem:[%s13316_s7 + $0x690] ss:$24 sps:$4 sm:$0xff]   ;;  %v10584_v48 = vrot.slane %v513_v44, %v10346_v21  ;;  %v8664_v12 = vld [vmem:[%s13316_s7 + $0x844] ss:$24 sps:$4 sm:$0xff]  }
 0x10a   :  { %5496 = vmatpush1.bf16.msra.mxu0 %v8541_v46  ;;  %5528 = vmatprep.subr.bf16.mxu1 %v8552_v51  ;;  %v8621_v46 = vld [vmem:[%s13316_s7 + $0x484] ss:$24 sps:$4 sm:$0xff]   ;;  %v8625_v51 = vld [vmem:[%s13316_s7 + $0x660] ss:$24 sps:$4 sm:$0xff]  }
 0x10b   :  { %5497 = vmatprep.subr.bf16.mxu0 %v8549_v49  ;;  %v8619_v49 = vld [vmem:[%s13316_s7 + $0x480] ss:$24 sps:$4 sm:$0xff]   ;;  %v8694_v44 = vld [vmem:[%s13316_s7 + $0xb44] ss:$24 sps:$4 sm:$0xff]  }
 0x10c   :  { %v8674_v25 = vld [vmem:[%s13316_s7 + $0x7e0] ss:$24 sps:$4 sm:$0xff]  }
 0x10d   :  { %5529 = vmatpush1.bf16.msra.mxu1 %v8550_v52  ;;  %v8630_v52 = vld [vmem:[%s13316_s7 + $0xa54] ss:$24 sps:$4 sm:$0xff]  }
 0x10e   :  { %5498 = vmatpush2.bf16.msra.mxu0 %v8547_v50  ;;  %5530 = vmatprep.subr.bf16.mxu1 %v8558_v55  ;;  %v8627_v50 = vld [vmem:[%s13316_s7 + $0x664] ss:$24 sps:$4 sm:$0xff]   ;;  %v8634_v55 = vld [vmem:[%s13316_s7 + $0x634] ss:$24 sps:$4 sm:$0xff]  }
 0x10f   :  { %5499 = vmatprep.subr.bf16.mxu0 %v8555_v53  ;;  %v8628_v53 = vld [vmem:[%s13316_s7 + $0xa50] ss:$24 sps:$4 sm:$0xff]  }
 0x111   :  { %5531 = vmatpush1.bf16.msra.mxu1 %v8556_v56  ;;  %v8637_v56 = vld [vmem:[%s13316_s7 + $0xa24] ss:$24 sps:$4 sm:$0xff]  }
 0x112   :  { %5500 = vmatpush2.bf16.msra.mxu0 %v8553_v54  ;;  %5532 = vmatprep.subr.bf16.mxu1 %v8564_v59  ;;  %v529_v54 = vcombine.high %v10584_v48, %v10584_v48  ;;  %v8632_v59 = vld [vmem:[%s13316_s7 + $0x630] ss:$24 sps:$4 sm:$0xff]  }
 0x113   :  { %5501 = vmatprep.subr.bf16.mxu0 %v8561_v57  ;;  %v10611_v57 = vpack.c.bf16 %v10381_v38, %v10381_v38  ;;  %v8640_v38 = vld [vmem:[%s13316_s7 + $0x604] ss:$24 sps:$4 sm:$0xff]  }
 0x115   :  { %5533 = vmatpush1.bf16.msra.mxu1 %v8562_v60  ;;  %v8635_v60 = vld [vmem:[%s13316_s7 + $0xa20] ss:$24 sps:$4 sm:$0xff]  }
 0x116   :  { %5502 = vmatpush2.bf16.msra.mxu0 %v8559_v58  ;;  %5534 = vmatprep.subr.bf16.mxu1 %v8570_v63  ;;  %v10613_v58 = vpack.c.bf16 %v529_v54, %v529_v54  ;;  %v8641_v63 = vld [vmem:[%s13316_s7 + $0x9f0] ss:$24 sps:$4 sm:$0xff]   ;;  %v8701_v54 = vld [vmem:[%s13316_s7 + $0xd20] ss:$24 sps:$4 sm:$0xff]  }
 0x117   :  { %5503 = vmatprep.subr.bf16.mxu0 %v8567_v61  ;;  %v8638_v61 = vld [vmem:[%s13316_s7 + $0x600] ss:$24 sps:$4 sm:$0xff]  }
 0x119   :  { %5535 = vmatpush1.bf16.msra.mxu1 %v8568_v0  ;;  %v8646_v0 = vld [vmem:[%s13316_s7 + $0x8d4] ss:$24 sps:$4 sm:$0xff]  }
 0x11a   :  { %5504 = vmatpush2.bf16.msra.mxu0 %v8565_v62  ;;  %5536 = vmatprep.subr.bf16.mxu1 %v8576_v3  ;;  %v8643_v62 = vld [vmem:[%s13316_s7 + $0x9f4] ss:$24 sps:$4 sm:$0xff]   ;;  %v8647_v3 = vld [vmem:[%s13316_s7 + $0x9c0] ss:$24 sps:$4 sm:$0xff]  }
 0x11b   :  { %5505 = vmatprep.subr.bf16.mxu0 %v8573_v1  ;;  %v8644_v1 = vld [vmem:[%s13316_s7 + $0x8d0] ss:$24 sps:$4 sm:$0xff]  }
 0x11d   :  { %5537 = vmatpush1.bf16.msra.mxu1 %v8574_v4  ;;  %v8652_v4 = vld [vmem:[%s13316_s7 + $0x8a4] ss:$24 sps:$4 sm:$0xff]  }
 0x11e   :  { %5506 = vmatpush2.bf16.msra.mxu0 %v8571_v2  ;;  %5538 = vmatprep.subr.bf16.mxu1 %v8582_v7  ;;  %v8649_v2 = vld [vmem:[%s13316_s7 + $0x9c4] ss:$24 sps:$4 sm:$0xff]   ;;  %v8653_v7 = vld [vmem:[%s13316_s7 + $0x990] ss:$24 sps:$4 sm:$0xff]  }
 0x11f   :  { %5507 = vmatprep.subr.bf16.mxu0 %v8579_v5  ;;  %v8650_v5 = vld [vmem:[%s13316_s7 + $0x8a0] ss:$24 sps:$4 sm:$0xff]  }
 0x121   :  { %5539 = vmatpush2.bf16.msra.mxu1 %v8580_v8  ;;  %v8658_v8 = vld [vmem:[%s13316_s7 + $0x874] ss:$24 sps:$4 sm:$0xff]  }
 0x122   :  { %5508 = vmatpush2.bf16.msra.mxu0 %v8577_v6  ;;  %5540 = vmatprep.subr.bf16.mxu1 %v8588_v10  ;;  %v8655_v6 = vld [vmem:[%s13316_s7 + $0x994] ss:$24 sps:$4 sm:$0xff]   ;;  %v8661_v10 = vld [vmem:[%s13316_s7 + $0x964] ss:$24 sps:$4 sm:$0xff]  }
 0x123   :  { %5509 = vmatprep.subr.bf16.mxu0 %v8585_v9  ;;  %v8656_v9 = vld [vmem:[%s13316_s7 + $0x870] ss:$24 sps:$4 sm:$0xff]  }
 0x125   :  { %5541 = vmatpush2.bf16.msra.mxu1 %v8586_v13  ;;  %v8662_v13 = vld [vmem:[%s13316_s7 + $0x840] ss:$24 sps:$4 sm:$0xff]  }
 0x126   :  { %5510 = vmatpush2.bf16.msra.mxu0 %v8583_v11  ;;  %5542 = vmatprep.subr.bf16.mxu1 %v8594_v16  ;;  %v8659_v11 = vld [vmem:[%s13316_s7 + $0x960] ss:$24 sps:$4 sm:$0xff]   ;;  %v8670_v16 = vld [vmem:[%s13316_s7 + $0x814] ss:$24 sps:$4 sm:$0xff]  }
 0x127   :  { %5511 = vmatprep.subr.bf16.mxu0 %v8591_v14  ;;  %v8667_v14 = vld [vmem:[%s13316_s7 + $0x934] ss:$24 sps:$4 sm:$0xff]  }
 0x129   :  { %5543 = vmatpush2.bf16.msra.mxu1 %v8592_v18  ;;  %v8668_v18 = vld [vmem:[%s13316_s7 + $0x810] ss:$24 sps:$4 sm:$0xff]  }
 0x12a   :  { %5512 = vmatpush2.bf16.msra.mxu0 %v8589_v15  ;;  %5544 = vmatprep.subr.bf16.mxu1 %v8597_v19  ;;  %v8665_v15 = vld [vmem:[%s13316_s7 + $0x930] ss:$24 sps:$4 sm:$0xff]   ;;  %v8673_v19 = vld [vmem:[%s13316_s7 + $0x904] ss:$24 sps:$4 sm:$0xff]  }
 0x12b   :  { %5563 = vmatprep.subr.bf16.mxu0 %v8600_v20  ;;  %v8671_v20 = vld [vmem:[%s13316_s7 + $0x900] ss:$24 sps:$4 sm:$0xff]  }
 0x12d   :  { %5514 = vmatmul.mubr.bf16.vlgmr.msra.gmra.mxu0 %v10538_v29  ;;  %5545 = vmatpush2.bf16.msra.mxu1 %v8595_v26  ;;  %v8679_v26 = vld [vmem:[%s13316_s7 + $0xbd4] ss:$24 sps:$4 sm:$0xff]  }
 0x12e   :  { %5564 = vmatpush1.bf16.msra.mxu0 %v8598_v24  ;;  %5595 = vmatprep.mubr.bf16.mxu0 %v10540_v31  ;;  %v8676_v24 = vld [vmem:[%s13316_s7 + $0x7e4] ss:$24 sps:$4 sm:$0xff]  }
 0x12f   :  { %5565 = vmatprep.subr.bf16.mxu0 %v8606_v27  ;;  %5546 = vmatprep.subr.bf16.mxu1 %v8603_v28  ;;  %v8677_v27 = vld [vmem:[%s13316_s7 + $0xbd0] ss:$24 sps:$4 sm:$0xff]   ;;  %v8682_v28 = vld [vmem:[%s13316_s7 + $0x7b4] ss:$24 sps:$4 sm:$0xff]  }
 0x131   :  { %5547 = vmatpush2.bf16.msra.mxu1 %v8601_v33  ;;  %v8680_v33 = vld [vmem:[%s13316_s7 + $0x7b0] ss:$24 sps:$4 sm:$0xff]  }
 0x132   :  { %5566 = vmatpush1.bf16.msra.mxu0 %v8604_v32  ;;  %5548 = vmatprep.subr.bf16.mxu1 %v8609_v34  ;;  %v8685_v32 = vld [vmem:[%s13316_s7 + $0xba4] ss:$24 sps:$4 sm:$0xff]   ;;  %v8683_v34 = vld [vmem:[%s13316_s7 + $0xba0] ss:$24 sps:$4 sm:$0xff]  }
 0x133   :  { %5567 = vmatprep.subr.bf16.mxu0 %v8612_v30  ;;  %v490_v30 = vld [vmem:[#allocation2 + $0x10] sm:$0xff] }
 0x135   :  { %5549 = vmatpush2.bf16.msra.mxu1 %v8607_v37  ;;  %v8686_v37 = vld [vmem:[%s13316_s7 + $0x780] ss:$24 sps:$4 sm:$0xff]  }
 0x136   :  { %5568 = vmatpush1.bf16.msra.mxu0 %v8610_v36  ;;  %5550 = vmatprep.subr.bf16.mxu1 %v8615_v41  ;;  %v8688_v36 = vld [vmem:[%s13316_s7 + $0x784] ss:$24 sps:$4 sm:$0xff]   ;;  %v10729_v41 = vrot.slane %v490_v30, %v10346_v21 }
 0x137   :  { %5569 = vmatprep.subr.bf16.mxu0 %v8618_v40  ;;  %v8691_v40 = vld [vmem:[%s13316_s7 + $0xb74] ss:$24 sps:$4 sm:$0xff]  }
 0x139   :  { %5551 = vmatpush2.bf16.msra.mxu1 %v8613_v45  ;;  %v8697_v45 = vld [vmem:[%s13316_s7 + $0xd54] ss:$24 sps:$4 sm:$0xff]  }
 0x13a   :  { %5570 = vmatpush1.bf16.msra.mxu0 %v8616_v42  ;;  %5552 = vmatprep.subr.bf16.mxu1 %v8621_v46  ;;  %v8689_v42 = vld [vmem:[%s13316_s7 + $0xb70] ss:$24 sps:$4 sm:$0xff]   ;;  %v545_v46 = vcombine.high %v10729_v41, %v10729_v41 }
 0x13b   :  { %5571 = vmatprep.subr.bf16.mxu0 %v8624_v35  ;;  %v8695_v35 = vld [vmem:[%s13316_s7 + $0xd50] ss:$24 sps:$4 sm:$0xff]  }
 0x13d   :  { %5553 = vmatpush2.bf16.msra.mxu1 %v8619_v49  ;;  %v8703_v49 = vld [vmem:[%s13316_s7 + $0xd24] ss:$24 sps:$4 sm:$0xff]  }
 0x13e   :  { %5572 = vmatpush1.bf16.msra.mxu0 %v8622_v47  ;;  %5604 = vmatprep.subr.bf16.mxu1 %v8630_v52  ;;  %v8692_v47 = vld [vmem:[%s13316_s7 + $0xb40] ss:$24 sps:$4 sm:$0xff]   ;;  %v10758_v52 = vpack.c.bf16 %v545_v46, %v545_v46  ;;  %v8765_v46 = vld [vmem:[%s13316_s7 + $0xe10] ss:$24 sps:$4 sm:$0xff]  }
 0x13f   :  { %5573 = vmatprep.subr.bf16.mxu0 %v8627_v50  ;;  %v8700_v50 = vld [vmem:[%s13316_s7 + $0xb14] ss:$24 sps:$4 sm:$0xff]  }
 0x140   :  { %5555 = vmatmul.mubr.bf16.vlgmr.msra.gmra.mxu1 %v10611_v57 }
 0x141   :  { %5605 = vmatpush1.bf16.msra.mxu1 %v8628_v53  ;;  %5636 = vmatprep.mubr.bf16.mxu1 %v10613_v58  ;;  %v8698_v53 = vld [vmem:[%s13316_s7 + $0xb10] ss:$24 sps:$4 sm:$0xff]  }
 0x142   :  { %5574 = vmatpush1.bf16.msra.mxu0 %v8625_v51  ;;  %5606 = vmatprep.subr.bf16.mxu1 %v8637_v56  ;;  %v10756_v51 = vpack.c.bf16 %v10511_v17, %v10511_v17  ;;  %v8706_v17 = vld [vmem:[%s13316_s7 + $0xae4] ss:$24 sps:$4 sm:$0xff]   ;;  %v8707_v56 = vld [vmem:[%s13316_s7 + $0xcf0] ss:$24 sps:$4 sm:$0xff]  }
 0x143   :  { %5575 = vmatprep.subr.bf16.mxu0 %v8634_v55  ;;  %v8709_v55 = vld [vmem:[%s13316_s7 + $0xcf4] ss:$24 sps:$4 sm:$0xff]  }
 0x145   :  { %5607 = vmatpush1.bf16.msra.mxu1 %v8635_v60  ;;  %v8715_v60 = vld [vmem:[%s13316_s7 + $0xcc4] ss:$24 sps:$4 sm:$0xff]  }
 0x146   :  { %5576 = vmatpush1.bf16.msra.mxu0 %v8632_v59  ;;  %5608 = vmatprep.subr.bf16.mxu1 %v8643_v62  ;;  %v8704_v59 = vld [vmem:[%s13316_s7 + $0xae0] ss:$24 sps:$4 sm:$0xff]   ;;  %v530_v62 = vcombine.high %v490_v30, %v490_v30  ;;  %v8755_v30 = vld [vmem:[%s13316_s7 + $0xe74] ss:$24 sps:$4 sm:$0xff]  }
 0x147   :  { %5577 = vmatprep.subr.bf16.mxu0 %v8640_v38  ;;  %v8712_v38 = vld [vmem:[%s13316_s7 + $0xab4] ss:$24 sps:$4 sm:$0xff]  }
 0x149   :  { %5609 = vmatpush1.bf16.msra.mxu1 %v8641_v63  ;;  %v8710_v63 = vld [vmem:[%s13316_s7 + $0xab0] ss:$24 sps:$4 sm:$0xff]  }
 0x14a   :  { %5578 = vmatpush1.bf16.msra.mxu0 %v8638_v61  ;;  %5610 = vmatprep.subr.bf16.mxu1 %v8649_v2  ;;  %v8713_v61 = vld [vmem:[%s13316_s7 + $0xcc0] ss:$24 sps:$4 sm:$0xff]   ;;  %v8719_v2 = vld [vmem:[%s13316_s7 + $0xc90] ss:$24 sps:$4 sm:$0xff]  }
 0x14b   :  { %5579 = vmatprep.subr.bf16.mxu0 %v8646_v0  ;;  %v8721_v0 = vld [vmem:[%s13316_s7 + $0xc94] ss:$24 sps:$4 sm:$0xff]  }
 0x14d   :  { %5611 = vmatpush1.bf16.msra.mxu1 %v8647_v3  ;;  %v10802_v3 = vrot.slane %v530_v62, %v10346_v21  ;;  %v8783_v62 = vld [vmem:[%s13316_s7 + $0xd80] ss:$24 sps:$4 sm:$0xff]  }
 0x14e   :  { %5580 = vmatpush2.bf16.msra.mxu0 %v8644_v1  ;;  %5612 = vmatprep.subr.bf16.mxu1 %v8655_v6  ;;  %v8718_v1 = vld [vmem:[%s13316_s7 + $0xa84] ss:$24 sps:$4 sm:$0xff]   ;;  %v8722_v6 = vld [vmem:[%s13316_s7 + $0xc60] ss:$24 sps:$4 sm:$0xff]  }
 0x14f   :  { %5581 = vmatprep.subr.bf16.mxu0 %v8652_v4  ;;  %v8716_v4 = vld [vmem:[%s13316_s7 + $0xa80] ss:$24 sps:$4 sm:$0xff]  }
 0x151   :  { %5613 = vmatpush1.bf16.msra.mxu1 %v8653_v7  ;;  %v8727_v7 = vld [vmem:[%s13316_s7 + $0x1054] ss:$24 sps:$4 sm:$0xff]  }
 0x152   :  { %5582 = vmatpush2.bf16.msra.mxu0 %v8650_v5  ;;  %5614 = vmatprep.subr.bf16.mxu1 %v8661_v10  ;;  %v8724_v5 = vld [vmem:[%s13316_s7 + $0xc64] ss:$24 sps:$4 sm:$0xff]   ;;  %v8731_v10 = vld [vmem:[%s13316_s7 + $0xc34] ss:$24 sps:$4 sm:$0xff]  }
 0x153   :  { %5583 = vmatprep.subr.bf16.mxu0 %v8658_v8  ;;  %v8725_v8 = vld [vmem:[%s13316_s7 + $0x1050] ss:$24 sps:$4 sm:$0xff]  }
 0x155   :  { %5615 = vmatpush1.bf16.msra.mxu1 %v8659_v11  ;;  %v8734_v11 = vld [vmem:[%s13316_s7 + $0x1024] ss:$24 sps:$4 sm:$0xff]  }
 0x156   :  { %5584 = vmatpush2.bf16.msra.mxu0 %v8656_v9  ;;  %5616 = vmatprep.subr.bf16.mxu1 %v8667_v14  ;;  %v546_v9 = vcombine.high %v10802_v3, %v10802_v3 }
 0x157   :  { %5585 = vmatprep.subr.bf16.mxu0 %v8664_v12  ;;  %v10829_v12 = vpack.c.bf16 %v10584_v48, %v10584_v48  ;;  %v8737_v48 = vld [vmem:[%s13316_s7 + $0xc04] ss:$24 sps:$4 sm:$0xff]  }
 0x158   :  { %v10834_v14 = vpack.c.bf16 %v546_v9, %v546_v9  ;;  %v8797_v9 = vld [vmem:[%s13316_s7 + $0x1114] ss:$24 sps:$4 sm:$0xff]  }
 0x159   :  { %5617 = vmatpush1.bf16.msra.mxu1 %v8665_v15  ;;  %v8732_v15 = vld [vmem:[%s13316_s7 + $0x1020] ss:$24 sps:$4 sm:$0xff]  }
 0x15a   :  { %5586 = vmatpush2.bf16.msra.mxu0 %v8662_v13  ;;  %5618 = vmatprep.subr.bf16.mxu1 %v8673_v19  ;;  %v8729_v13 = vld [vmem:[%s13316_s7 + $0xc30] ss:$24 sps:$4 sm:$0xff]  }
 0x15b   :  { %5587 = vmatprep.subr.bf16.mxu0 %v8670_v16  ;;  %v8740_v16 = vld [vmem:[%s13316_s7 + $0xff4] ss:$24 sps:$4 sm:$0xff]   ;;  %v8738_v19 = vld [vmem:[%s13316_s7 + $0xff0] ss:$24 sps:$4 sm:$0xff]  }
 0x15d   :  { %5619 = vmatpush1.bf16.msra.mxu1 %v8671_v20  ;;  %v8743_v20 = vld [vmem:[%s13316_s7 + $0xed4] ss:$24 sps:$4 sm:$0xff]  }
 0x15e   :  { %5588 = vmatpush2.bf16.msra.mxu0 %v8668_v18  ;;  %5620 = vmatprep.subr.bf16.mxu1 %v8679_v26  ;;  %v8735_v18 = vld [vmem:[%s13316_s7 + $0xc00] ss:$24 sps:$4 sm:$0xff]  }
 0x15f   :  { %5589 = vmatprep.subr.bf16.mxu0 %v8676_v24  ;;  %v8746_v24 = vld [vmem:[%s13316_s7 + $0xfc4] ss:$24 sps:$4 sm:$0xff]   ;;  %v8744_v26 = vld [vmem:[%s13316_s7 + $0xfc0] ss:$24 sps:$4 sm:$0xff]  }
 0x161   :  { %5621 = vmatpush2.bf16.msra.mxu1 %v8677_v27  ;;  %v8749_v27 = vld [vmem:[%s13316_s7 + $0xea4] ss:$24 sps:$4 sm:$0xff]  }
 0x162   :  { %5590 = vmatpush2.bf16.msra.mxu0 %v8674_v25  ;;  %5622 = vmatprep.subr.bf16.mxu1 %v8685_v32  ;;  %v8741_v25 = vld [vmem:[%s13316_s7 + $0xed0] ss:$24 sps:$4 sm:$0xff]   ;;  %v8752_v32 = vld [vmem:[%s13316_s7 + $0xf94] ss:$24 sps:$4 sm:$0xff]  }
 0x163   :  { %5591 = vmatprep.subr.bf16.mxu0 %v8682_v28  ;;  %v8747_v28 = vld [vmem:[%s13316_s7 + $0xea0] ss:$24 sps:$4 sm:$0xff]  }
 0x165   :  { %5623 = vmatpush2.bf16.msra.mxu1 %v8683_v34  ;;  %v8753_v34 = vld [vmem:[%s13316_s7 + $0xe70] ss:$24 sps:$4 sm:$0xff]  }
 0x166   :  { %5592 = vmatpush2.bf16.msra.mxu0 %v8680_v33  ;;  %5624 = vmatprep.subr.bf16.mxu1 %v8691_v40  ;;  %v8750_v33 = vld [vmem:[%s13316_s7 + $0xf90] ss:$24 sps:$4 sm:$0xff]   ;;  %v8761_v40 = vld [vmem:[%s13316_s7 + $0xe44] ss:$24 sps:$4 sm:$0xff]  }
 0x167   :  { %5593 = vmatprep.subr.bf16.mxu0 %v8688_v36  ;;  %v8758_v36 = vld [vmem:[%s13316_s7 + $0xf64] ss:$24 sps:$4 sm:$0xff]  }
 0x169   :  { %5625 = vmatpush2.bf16.msra.mxu1 %v8689_v42  ;;  %v8759_v42 = vld [vmem:[%s13316_s7 + $0xe40] ss:$24 sps:$4 sm:$0xff]  }
 0x16a   :  { %5594 = vmatpush2.bf16.msra.mxu0 %v8686_v37  ;;  %5626 = vmatprep.subr.bf16.mxu1 %v8694_v44  ;;  %v8756_v37 = vld [vmem:[%s13316_s7 + $0xf60] ss:$24 sps:$4 sm:$0xff]   ;;  %v8764_v44 = vld [vmem:[%s13316_s7 + $0xf34] ss:$24 sps:$4 sm:$0xff]  }
 0x16b   :  { %5645 = vmatprep.subr.bf16.mxu0 %v8697_v45  ;;  %v8762_v45 = vld [vmem:[%s13316_s7 + $0xf30] ss:$24 sps:$4 sm:$0xff]  }
 0x16d   :  { %5596 = vmatmul.mubr.bf16.vlgmr.msra.gmra.mxu0 %v10756_v51  ;;  %5627 = vmatpush2.bf16.msra.mxu1 %v8692_v47  ;;  %v8770_v47 = vld [vmem:[%s13316_s7 + $0xf04] ss:$24 sps:$4 sm:$0xff]  }
 0x16e   :  { %5646 = vmatpush1.bf16.msra.mxu0 %v8695_v35  ;;  %5677 = vmatprep.mubr.bf16.mxu0 %v10758_v52  ;;  %v8767_v35 = vld [vmem:[%s13316_s7 + $0xe14] ss:$24 sps:$4 sm:$0xff]  }
 0x16f   :  { %5647 = vmatprep.subr.bf16.mxu0 %v8703_v49  ;;  %5628 = vmatprep.subr.bf16.mxu1 %v8700_v50  ;;  %v8768_v49 = vld [vmem:[%s13316_s7 + $0xf00] ss:$24 sps:$4 sm:$0xff]   ;;  %v8773_v50 = vld [vmem:[%s13316_s7 + $0xde4] ss:$24 sps:$4 sm:$0xff]  }
 0x171   :  { %5629 = vmatpush2.bf16.msra.mxu1 %v8698_v53  ;;  %v8771_v53 = vld [vmem:[%s13316_s7 + $0xde0] ss:$24 sps:$4 sm:$0xff]  }
 0x172   :  { %5648 = vmatpush1.bf16.msra.mxu0 %v8701_v54  ;;  %5630 = vmatprep.subr.bf16.mxu1 %v8706_v17  ;;  %v8776_v54 = vld [vmem:[%s13316_s7 + $0x11d4] ss:$24 sps:$4 sm:$0xff]   ;;  %v8774_v17 = vld [vmem:[%s13316_s7 + $0x11d0] ss:$24 sps:$4 sm:$0xff]  }
 0x173   :  { %5649 = vmatprep.subr.bf16.mxu0 %v8709_v55  ;;  %v8779_v55 = vld [vmem:[%s13316_s7 + $0xdb4] ss:$24 sps:$4 sm:$0xff]  }
 0x175   :  { %5631 = vmatpush2.bf16.msra.mxu1 %v8704_v59  ;;  %v8777_v59 = vld [vmem:[%s13316_s7 + $0xdb0] ss:$24 sps:$4 sm:$0xff]  }
 0x176   :  { %5650 = vmatpush1.bf16.msra.mxu0 %v8707_v56  ;;  %5632 = vmatprep.subr.bf16.mxu1 %v8712_v38  ;;  %v491_v56 = vld [vmem:[#allocation2 + $0x18] sm:$0xff] }
 0x177   :  { %5651 = vmatprep.subr.bf16.mxu0 %v8715_v60  ;;  %v8782_v60 = vld [vmem:[%s13316_s7 + $0x11a4] ss:$24 sps:$4 sm:$0xff]   ;;  %v8780_v38 = vld [vmem:[%s13316_s7 + $0x11a0] ss:$24 sps:$4 sm:$0xff]  }
 0x179   :  { %5633 = vmatpush2.bf16.msra.mxu1 %v8710_v63  ;;  %v8788_v63 = vld [vmem:[%s13316_s7 + $0x1174] ss:$24 sps:$4 sm:$0xff]  }
 0x17a   :  { %5652 = vmatpush1.bf16.msra.mxu0 %v8713_v61  ;;  %5634 = vmatprep.subr.bf16.mxu1 %v8718_v1  ;;  %v8785_v61 = vld [vmem:[%s13316_s7 + $0xd84] ss:$24 sps:$4 sm:$0xff]   ;;  %v8786_v1 = vld [vmem:[%s13316_s7 + $0x1170] ss:$24 sps:$4 sm:$0xff]  }
 0x17b   :  { %5653 = vmatprep.subr.bf16.mxu0 %v8721_v0  ;;  %v10947_v0 = vrot.slane %v491_v56, %v10346_v21 }
 0x17d   :  { %5635 = vmatpush2.bf16.msra.mxu1 %v8716_v4  ;;  %v8794_v4 = vld [vmem:[%s13316_s7 + $0x1354] ss:$24 sps:$4 sm:$0xff]  }
 0x17e   :  { %5654 = vmatpush1.bf16.msra.mxu0 %v8719_v2  ;;  %5686 = vmatprep.subr.bf16.mxu1 %v8727_v7  ;;  %v8791_v2 = vld [vmem:[%s13316_s7 + $0x1144] ss:$24 sps:$4 sm:$0xff]   ;;  %v8789_v7 = vld [vmem:[%s13316_s7 + $0x1140] ss:$24 sps:$4 sm:$0xff]  }
 0x17f   :  { %5655 = vmatprep.subr.bf16.mxu0 %v8724_v5  ;;  %v8792_v5 = vld [vmem:[%s13316_s7 + $0x1350] ss:$24 sps:$4 sm:$0xff]  }
 0x180   :  { %5637 = vmatmul.mubr.bf16.vlgmr.msra.gmra.mxu1 %v10829_v12 }
 0x181   :  { %5687 = vmatpush1.bf16.msra.mxu1 %v8725_v8  ;;  %5718 = vmatprep.mubr.bf16.mxu1 %v10834_v14  ;;  %v8800_v8 = vld [vmem:[%s13316_s7 + $0x1324] ss:$24 sps:$4 sm:$0xff]  }
 0x182   :  { %5656 = vmatpush1.bf16.msra.mxu0 %v8722_v6  ;;  %5688 = vmatprep.subr.bf16.mxu1 %v8734_v11  ;;  %v562_v6 = vcombine.high %v10947_v0, %v10947_v0 }
 0x183   :  { %5657 = vmatprep.subr.bf16.mxu0 %v8731_v10  ;;  %v10974_v10 = vpack.c.bf16 %v10729_v41, %v10729_v41  ;;  %v8803_v41 = vld [vmem:[%s13316_s7 + $0x10e4] ss:$24 sps:$4 sm:$0xff]  }
 0x184   :  { %v10976_v11 = vpack.c.bf16 %v562_v6, %v562_v6 }
 0x185   :  { %5689 = vmatpush1.bf16.msra.mxu1 %v8732_v15  ;;  %v8798_v15 = vld [vmem:[%s13316_s7 + $0x1320] ss:$24 sps:$4 sm:$0xff]  }
 0x186   :  { %5658 = vmatpush1.bf16.msra.mxu0 %v8729_v13  ;;  %5690 = vmatprep.subr.bf16.mxu1 %v8740_v16  ;;  %v8795_v13 = vld [vmem:[%s13316_s7 + $0x1110] ss:$24 sps:$4 sm:$0xff]  }
 0x187   :  { %5659 = vmatprep.subr.bf16.mxu0 %v8737_v48  ;;  %v8806_v48 = vld [vmem:[%s13316_s7 + $0x12f4] ss:$24 sps:$4 sm:$0xff]   ;;  %v8804_v16 = vld [vmem:[%s13316_s7 + $0x12f0] ss:$24 sps:$4 sm:$0xff]  }
 0x189   :  { %5691 = vmatpush1.bf16.msra.mxu1 %v8738_v19 }
 0x18a   :  { %5660 = vmatpush1.bf16.msra.mxu0 %v8735_v18  ;;  %5692 = vmatprep.subr.bf16.mxu1 %v8746_v24 }
 0x18b   :  { %5661 = vmatprep.subr.bf16.mxu0 %v8743_v20 }
 0x18d   :  { %5693 = vmatpush1.bf16.msra.mxu1 %v8744_v26 }
 0x18e   :  { %5662 = vmatpush2.bf16.msra.mxu0 %v8741_v25  ;;  %5694 = vmatprep.subr.bf16.mxu1 %v8752_v32 }
 0x18f   :  { %5663 = vmatprep.subr.bf16.mxu0 %v8749_v27 }
 0x191   :  { %5695 = vmatpush1.bf16.msra.mxu1 %v8750_v33 }
 0x192   :  { %5664 = vmatpush2.bf16.msra.mxu0 %v8747_v28  ;;  %5696 = vmatprep.subr.bf16.mxu1 %v8758_v36 }
 0x193   :  { %5665 = vmatprep.subr.bf16.mxu0 %v8755_v30 }
 0x195   :  { %5697 = vmatpush1.bf16.msra.mxu1 %v8756_v37 }
 0x196   :  { %5666 = vmatpush2.bf16.msra.mxu0 %v8753_v34  ;;  %5698 = vmatprep.subr.bf16.mxu1 %v8764_v44 }
 0x197   :  { %5667 = vmatprep.subr.bf16.mxu0 %v8761_v40 }
 0x199   :  { %5699 = vmatpush1.bf16.msra.mxu1 %v8762_v45 }
 0x19a   :  { %5668 = vmatpush2.bf16.msra.mxu0 %v8759_v42  ;;  %5700 = vmatprep.subr.bf16.mxu1 %v8770_v47 }
 0x19b   :  { %5669 = vmatprep.subr.bf16.mxu0 %v8767_v35 }
 0x19d   :  { %5701 = vmatpush1.bf16.msra.mxu1 %v8768_v49 }
 0x19e   :  { %5670 = vmatpush2.bf16.msra.mxu0 %v8765_v46  ;;  %5702 = vmatprep.subr.bf16.mxu1 %v8776_v54 }
 0x19f   :  { %5671 = vmatprep.subr.bf16.mxu0 %v8773_v50 }
 0x1a1   :  { %5703 = vmatpush2.bf16.msra.mxu1 %v8774_v17 }
 0x1a2   :  { %5672 = vmatpush2.bf16.msra.mxu0 %v8771_v53  ;;  %5704 = vmatprep.subr.bf16.mxu1 %v8782_v60 }
 0x1a3   :  { %5673 = vmatprep.subr.bf16.mxu0 %v8779_v55 }
 0x1a5   :  { %5705 = vmatpush2.bf16.msra.mxu1 %v8780_v38 }
 0x1a6   :  { %5674 = vmatpush2.bf16.msra.mxu0 %v8777_v59  ;;  %5706 = vmatprep.subr.bf16.mxu1 %v8788_v63 }
 0x1a7   :  { %5675 = vmatprep.subr.bf16.mxu0 %v8785_v61 }
 0x1a9   :  { %5707 = vmatpush2.bf16.msra.mxu1 %v8786_v1 }
 0x1aa   :  { %5676 = vmatpush2.bf16.msra.mxu0 %v8783_v62  ;;  %5708 = vmatprep.subr.bf16.mxu1 %v8791_v2 }
 0x1ab   :  { %5727 = vmatprep.subr.bf16.mxu0 %v8794_v4 }
 0x1ad   :  { %5678 = vmatmul.mubr.bf16.vlgmr.msra.gmra.mxu0 %v10974_v10  ;;  %5709 = vmatpush2.bf16.msra.mxu1 %v8789_v7 }
 0x1ae   :  { %5728 = vmatpush1.bf16.msra.mxu0 %v8792_v5  ;;  %5759 = vmatprep.mubr.bf16.mxu0 %v10976_v11 }
 0x1af   :  { %5729 = vmatprep.subr.bf16.mxu0 %v8800_v8  ;;  %5710 = vmatprep.subr.bf16.mxu1 %v8797_v9 }
 0x1b2   :  { %5730 = vmatpush1.bf16.msra.mxu0 %v8798_v15 }
 0x1b3   :  { %26 = vsyncpa [#allocation6], 0  ;;  %5711 = vmatpush2.bf16.msra.mxu1 %v8795_v13  ;;  %v8801_v18 = vld [vmem:[%s13316_s7 + $0x10e0] ss:$24 sps:$4 sm:$0xff]   ;;  %5731 = vmatprep.subr.bf16.mxu0 %v8806_v48  ;;  %v8812_v19 = vld [vmem:[%s13316_s7 + $0x12c4] ss:$24 sps:$4 sm:$0xff]   ;;  %v547_v24 = vcombine.high %v491_v56, %v491_v56  ;;  %v11041_v42 = vpack.c.bf16 %v10802_v3, %v10802_v3 }
 0x1b4   :  { %5712 = vmatprep.subr.bf16.mxu1 %v8803_v41  ;;  %v8809_v20 = vld [vmem:[%s13316_s7 + $0x10b4] ss:$24 sps:$4 sm:$0xff]   ;;  %v8810_v25 = vld [vmem:[%s13316_s7 + $0x12c0] ss:$24 sps:$4 sm:$0xff]   ;;  %v8807_v26 = vld [vmem:[%s13316_s7 + $0x10b0] ss:$24 sps:$4 sm:$0xff]  }
 0x1b5   :  { %v8818_v27 = vld [vmem:[%s13316_s7 + $0x1294] ss:$24 sps:$4 sm:$0xff]   ;;  %v8815_v28 = vld [vmem:[%s13316_s7 + $0x1084] ss:$24 sps:$4 sm:$0xff]   ;;  %v11017_v32 = vrot.slane %v547_v24, %v10346_v21  ;;  %v8816_v33 = vld [vmem:[%s13316_s7 + $0x1290] ss:$24 sps:$4 sm:$0xff]  }
 0x1b6   :  { %5732 = vmatpush1.bf16.msra.mxu0 %v8804_v16  ;;  %v8813_v30 = vld [vmem:[%s13316_s7 + $0x1080] ss:$24 sps:$4 sm:$0xff]   ;;  %v8821_v34 = vld [vmem:[%s13316_s7 + $0x1264] ss:$24 sps:$4 sm:$0xff]   ;;  %v8824_v21 = vld [vmem:[%s13316_s7 + $0x1654] ss:$24 sps:$4 sm:$0xff]  }
 0x1b7   :  { %5713 = vmatpush2.bf16.msra.mxu1 %v8801_v18  ;;  %5733 = vmatprep.subr.bf16.mxu0 %v8812_v19  ;;  %v563_v36 = vcombine.high %v11017_v32, %v11017_v32  ;;  %v8819_v37 = vld [vmem:[%s13316_s7 + $0x1260] ss:$24 sps:$4 sm:$0xff]   ;;  %v8822_v40 = vld [vmem:[%s13316_s7 + $0x1650] ss:$24 sps:$4 sm:$0xff]   ;;  %v8828_v44 = vld [vmem:[%s13316_s7 + $0x1234] ss:$24 sps:$4 sm:$0xff]  }
 0x1b8   :  { %5714 = vmatprep.subr.bf16.mxu1 %v8809_v20  ;;  %v8831_v45 = vld [vmem:[%s13316_s7 + $0x1624] ss:$24 sps:$4 sm:$0xff]   ;;  %v8826_v46 = vld [vmem:[%s13316_s7 + $0x1230] ss:$24 sps:$4 sm:$0xff]   ;;  %v8829_v3 = vld [vmem:[%s13316_s7 + $0x1620] ss:$24 sps:$4 sm:$0xff]  }
 0x1b9   :  { %v11049_v35 = vpack.c.bf16 %v563_v36, %v563_v36  ;;  %v8834_v47 = vld [vmem:[%s13316_s7 + $0x1204] ss:$24 sps:$4 sm:$0xff]   ;;  %v8837_v49 = vld [vmem:[%s13316_s7 + $0x15f4] ss:$24 sps:$4 sm:$0xff]   ;;  %v8832_v50 = vld [vmem:[%s13316_s7 + $0x1200] ss:$24 sps:$4 sm:$0xff]  }
 0x1ba   :  { %5734 = vmatpush1.bf16.msra.mxu0 %v8810_v25  ;;  %v8835_v53 = vld [vmem:[%s13316_s7 + $0x15f0] ss:$24 sps:$4 sm:$0xff]   ;;  %v8840_v54 = vld [vmem:[%s13316_s7 + $0x14d4] ss:$24 sps:$4 sm:$0xff]   ;;  %v8843_v17 = vld [vmem:[%s13316_s7 + $0x15c4] ss:$24 sps:$4 sm:$0xff]  }
 0x1bb   :  { %5715 = vmatpush2.bf16.msra.mxu1 %v8807_v26  ;;  %5735 = vmatprep.subr.bf16.mxu0 %v8818_v27  ;;  %v8838_v55 = vld [vmem:[%s13316_s7 + $0x14d0] ss:$24 sps:$4 sm:$0xff]   ;;  %v8841_v56 = vld [vmem:[%s13316_s7 + $0x15c0] ss:$24 sps:$4 sm:$0xff]   ;;  %v8846_v59 = vld [vmem:[%s13316_s7 + $0x14a4] ss:$24 sps:$4 sm:$0xff]  }
 0x1bc   :  { %5716 = vmatprep.subr.bf16.mxu1 %v8815_v28  ;;  %v8849_v60 = vld [vmem:[%s13316_s7 + $0x1594] ss:$24 sps:$4 sm:$0xff]   ;;  %v8844_v38 = vld [vmem:[%s13316_s7 + $0x14a0] ss:$24 sps:$4 sm:$0xff]   ;;  %v8847_v61 = vld [vmem:[%s13316_s7 + $0x1590] ss:$24 sps:$4 sm:$0xff]  }
 0x1bd   :  { %v8852_v62 = vld [vmem:[%s13316_s7 + $0x1474] ss:$24 sps:$4 sm:$0xff]   ;;  %v8855_v63 = vld [vmem:[%s13316_s7 + $0x1564] ss:$24 sps:$4 sm:$0xff]   ;;  %v8850_v1 = vld [vmem:[%s13316_s7 + $0x1470] ss:$24 sps:$4 sm:$0xff]  }
 0x1be   :  { %5736 = vmatpush1.bf16.msra.mxu0 %v8816_v33  ;;  %v8853_v2 = vld [vmem:[%s13316_s7 + $0x1560] ss:$24 sps:$4 sm:$0xff]   ;;  %v8858_v4 = vld [vmem:[%s13316_s7 + $0x1444] ss:$24 sps:$4 sm:$0xff]   ;;  %v8861_v5 = vld [vmem:[%s13316_s7 + $0x1534] ss:$24 sps:$4 sm:$0xff]   ;;  %v11164_v33 = vpop.f32.mrf.mxu0 }
 0x1bf   :  { %5717 = vmatpush2.bf16.msra.mxu1 %v8813_v30  ;;  %5737 = vmatprep.subr.bf16.mxu0 %v8821_v34  ;;  %v8856_v6 = vld [vmem:[%s13316_s7 + $0x1440] ss:$24 sps:$4 sm:$0xff]   ;;  %v8859_v7 = vld [vmem:[%s13316_s7 + $0x1530] ss:$24 sps:$4 sm:$0xff]   ;;  %v8864_v8 = vld [vmem:[%s13316_s7 + $0x1414] ss:$24 sps:$4 sm:$0xff]  }
 0x1c0   :  { %5768 = vmatprep.subr.bf16.mxu1 %v8824_v21  ;;  %v8867_v9 = vld [vmem:[%s13316_s7 + $0x1504] ss:$24 sps:$4 sm:$0xff]   ;;  %v8862_v13 = vld [vmem:[%s13316_s7 + $0x1410] ss:$24 sps:$4 sm:$0xff]   ;;  %v8865_v15 = vld [vmem:[%s13316_s7 + $0x1500] ss:$24 sps:$4 sm:$0xff]  }
 0x1c1   :  { %v8870_v41 = vld [vmem:[%s13316_s7 + $0x13e4] ss:$24 sps:$4 sm:$0xff]   ;;  %v8873_v48 = vld [vmem:[%s13316_s7 + $0x17d4] ss:$24 sps:$4 sm:$0xff]   ;;  %v8868_v16 = vld [vmem:[%s13316_s7 + $0x13e0] ss:$24 sps:$4 sm:$0xff]  }
 0x1c2   :  { %5719 = vmatmul.mubr.bf16.vlgmr.msra.gmra.mxu1 %v11041_v42  ;;  %5738 = vmatpush1.bf16.msra.mxu0 %v8819_v37  ;;  %v8871_v18 = vld [vmem:[%s13316_s7 + $0x17d0] ss:$24 sps:$4 sm:$0xff]   ;;  %v8876_v19 = vld [vmem:[%s13316_s7 + $0x13b4] ss:$24 sps:$4 sm:$0xff]   ;;  %v8879_v20 = vld [vmem:[%s13316_s7 + $0x17a4] ss:$24 sps:$4 sm:$0xff]   ;;  %v1494_v37 = vpop.f32.mrf.mxu1 }
 0x1c3   :  { %5769 = vmatpush1.bf16.msra.mxu1 %v8822_v40  ;;  %5800 = vmatprep.mubr.bf16.mxu1 %v11049_v35  ;;  %v8874_v24 = vld [vmem:[%s13316_s7 + $0x13b0] ss:$24 sps:$4 sm:$0xff]   ;;  %v8877_v25 = vld [vmem:[%s13316_s7 + $0x17a0] ss:$24 sps:$4 sm:$0xff]   ;;  %v8882_v26 = vld [vmem:[%s13316_s7 + $0x1384] ss:$24 sps:$4 sm:$0xff]   ;;  %v11178_v40 = vpop.f32.mrf.mxu0 }
 0x1c4   :  { %5739 = vmatprep.subr.bf16.mxu0 %v8828_v44  ;;  %5770 = vmatprep.subr.bf16.mxu1 %v8831_v45  ;;  %v8885_v27 = vld [vmem:[%s13316_s7 + $0x1774] ss:$24 sps:$4 sm:$0xff]   ;;  %v8880_v28 = vld [vmem:[%s13316_s7 + $0x1380] ss:$24 sps:$4 sm:$0xff]   ;;  %v8883_v30 = vld [vmem:[%s13316_s7 + $0x1770] ss:$24 sps:$4 sm:$0xff]   ;;  %v11182_v44 = vpack.c.bf16 %v10947_v0, %v10947_v0 }
 0x1c5   :  { %v8891_v34 = vld [vmem:[%s13316_s7 + $0x15c] ss:$24 sps:$4 sm:$0xff]   ;;  %v8889_v36 = vld [vmem:[%s13316_s7 + $0x158] ss:$24 sps:$4 sm:$0xff]   ;;  %v8895_v0 = vld [vmem:[%s13316_s7 + $0x128] ss:$24 sps:$4 sm:$0xff]  }
 0x1c6   :  { %5740 = vmatpush1.bf16.msra.mxu0 %v8826_v46  ;;  %v8888_v21 = vld [vmem:[%s13316_s7 + $0x1744] ss:$24 sps:$4 sm:$0xff]   ;;  %v8886_v45 = vld [vmem:[%s13316_s7 + $0x1740] ss:$24 sps:$4 sm:$0xff]   ;;  %s13339_s21 = sld [smem:[#allocation12_spill]]  ;;  %vm7500_vm5 = vcmask 31744  }
 0x1c7   :  { %5771 = vmatpush1.bf16.msra.mxu1 %v8829_v3  ;;  %5741 = vmatprep.subr.bf16.mxu0 %v8834_v47  ;;  %v8897_v46 = vld [vmem:[%s13316_s7 + $0x12c] ss:$24 sps:$4 sm:$0xff]   ;;  %vm7509_vm6 = vcmask 24576   ;;  %s9915_s0 = smov [#allocation7]  }
 0x1c8   :  { %5772 = vmatprep.subr.bf16.mxu1 %v8837_v49  ;;  %v8894_v3 = vld [vmem:[%s13316_s7 + $0x1714] ss:$24 sps:$4 sm:$0xff]  }
 0x1ca   :  { %5742 = vmatpush1.bf16.msra.mxu0 %v8832_v50  ;;  %v1496_v50 = vpop.f32.mrf.mxu1 }
 0x1cb   :  { %5773 = vmatpush1.bf16.msra.mxu1 %v8835_v53  ;;  %5743 = vmatprep.subr.bf16.mxu0 %v8840_v54  ;;  %v8892_v54 = vld [vmem:[%s13316_s7 + $0x1710] ss:$24 sps:$4 sm:$0xff]  }
 0x1cc   :  { %5774 = vmatprep.subr.bf16.mxu1 %v8843_v17  ;;  %v8903_v17 = vld [vmem:[%s13316_s7 + $0xfc] ss:$24 sps:$4 sm:$0xff]  }
 0x1ce   :  { %5744 = vmatpush2.bf16.msra.mxu0 %v8838_v55 }
 0x1cf   :  { %5775 = vmatpush1.bf16.msra.mxu1 %v8841_v56  ;;  %5745 = vmatprep.subr.bf16.mxu0 %v8846_v59  ;;  %v8900_v56 = vld [vmem:[%s13316_s7 + $0x16e4] ss:$24 sps:$4 sm:$0xff]  }
 0x1d0   :  { %5776 = vmatprep.subr.bf16.mxu1 %v8849_v60  ;;  %v8901_v60 = vld [vmem:[%s13316_s7 + $0xf8] ss:$24 sps:$4 sm:$0xff]  }
 0x1d2   :  { %5746 = vmatpush2.bf16.msra.mxu0 %v8844_v38 }
 0x1d3   :  { %5777 = vmatpush1.bf16.msra.mxu1 %v8847_v61  ;;  %5747 = vmatprep.subr.bf16.mxu0 %v8852_v62  ;;  %v8898_v61 = vld [vmem:[%s13316_s7 + $0x16e0] ss:$24 sps:$4 sm:$0xff]   ;;  %v8909_v62 = vld [vmem:[%s13316_s7 + $0xcc] ss:$24 sps:$4 sm:$0xff]  }
 0x1d4   :  { %5778 = vmatprep.subr.bf16.mxu1 %v8855_v63  ;;  %v8906_v63 = vld [vmem:[%s13316_s7 + $0x16b4] ss:$24 sps:$4 sm:$0xff]  }
 0x1d6   :  { %5748 = vmatpush2.bf16.msra.mxu0 %v8850_v1  ;;  %v8907_v1 = vld [vmem:[%s13316_s7 + $0xc8] ss:$24 sps:$4 sm:$0xff]  }
 0x1d7   :  { %5779 = vmatpush1.bf16.msra.mxu1 %v8853_v2  ;;  %5749 = vmatprep.subr.bf16.mxu0 %v8858_v4  ;;  %v8904_v2 = vld [vmem:[%s13316_s7 + $0x16b0] ss:$24 sps:$4 sm:$0xff]   ;;  %v8915_v4 = vld [vmem:[%s13316_s7 + $0x9c] ss:$24 sps:$4 sm:$0xff]  }
 0x1d8   :  { %5780 = vmatprep.subr.bf16.mxu1 %v8861_v5  ;;  %v8912_v5 = vld [vmem:[%s13316_s7 + $0x1684] ss:$24 sps:$4 sm:$0xff]  }
 0x1da   :  { %5750 = vmatpush2.bf16.msra.mxu0 %v8856_v6  ;;  %v8913_v6 = vld [vmem:[%s13316_s7 + $0x98] ss:$24 sps:$4 sm:$0xff]  }
 0x1db   :  { %5781 = vmatpush1.bf16.msra.mxu1 %v8859_v7  ;;  %5751 = vmatprep.subr.bf16.mxu0 %v8864_v8  ;;  %v8910_v7 = vld [vmem:[%s13316_s7 + $0x1680] ss:$24 sps:$4 sm:$0xff]   ;;  %v8918_v8 = vld [vmem:[%s13316_s7 + $0x6c] ss:$24 sps:$4 sm:$0xff]  }
 0x1dc   :  { %5782 = vmatprep.subr.bf16.mxu1 %v8867_v9  ;;  %v11240_v9 = vpop.f32.mrf.mxu1 }
 0x1de   :  { %5752 = vmatpush2.bf16.msra.mxu0 %v8862_v13  ;;  %v8921_v13 = vld [vmem:[%s13316_s7 + $0x45c] ss:$24 sps:$4 sm:$0xff]  }
 0x1df   :  { %5783 = vmatpush1.bf16.msra.mxu1 %v8865_v15  ;;  %5753 = vmatprep.subr.bf16.mxu0 %v8870_v41  ;;  %v8916_v15 = vld [vmem:[%s13316_s7 + $0x68] ss:$24 sps:$4 sm:$0xff]   ;;  %v8919_v41 = vld [vmem:[%s13316_s7 + $0x458] ss:$24 sps:$4 sm:$0xff]  }
 0x1e0   :  { %5784 = vmatprep.subr.bf16.mxu1 %v8873_v48  ;;  %v11251_v48 = vpop.f32.mrf.mxu1 }
 0x1e2   :  { %5754 = vmatpush2.bf16.msra.mxu0 %v8868_v16  ;;  %v11255_v16 = vpack.c.bf16 %v11017_v32, %v11017_v32  ;;  %v8925_v32 = vld [vmem:[%s13316_s7 + $0x428] ss:$24 sps:$4 sm:$0xff]  }
 0x1e3   :  { %5785 = vmatpush2.bf16.msra.mxu1 %v8871_v18  ;;  %5755 = vmatprep.subr.bf16.mxu0 %v8876_v19  ;;  %v8924_v18 = vld [vmem:[%s13316_s7 + $0x3c] ss:$24 sps:$4 sm:$0xff]   ;;  %v8927_v19 = vld [vmem:[%s13316_s7 + $0x42c] ss:$24 sps:$4 sm:$0xff]  }
 0x1e4   :  { %5786 = vmatprep.subr.bf16.mxu1 %v8879_v20 }
 0x1e6   :  { %5756 = vmatpush2.bf16.msra.mxu0 %v8874_v24  ;;  %v8922_v24 = vld [vmem:[%s13316_s7 + $0x38] ss:$24 sps:$4 sm:$0xff]  }
 0x1e7   :  { %5787 = vmatpush2.bf16.msra.mxu1 %v8877_v25  ;;  %5757 = vmatprep.subr.bf16.mxu0 %v8882_v26  ;;  %v8930_v26 = vld [vmem:[%s13316_s7 + $0xc] ss:$24 sps:$4 sm:$0xff]  }
 0x1e8   :  { %5788 = vmatprep.subr.bf16.mxu1 %v8885_v27 }
 0x1ea   :  { %5758 = vmatpush2.bf16.msra.mxu0 %v8880_v28  ;;  %v8933_v28 = vld [vmem:[%s13316_s7 + $0x3fc] ss:$24 sps:$4 sm:$0xff]  }
 0x1eb   :  { %5789 = vmatpush2.bf16.msra.mxu1 %v8883_v30  ;;  %5809 = vmatprep.subr.bf16.mxu0 %v8891_v34 }
 0x1ec   :  { %5790 = vmatprep.subr.bf16.mxu1 %v8888_v21  ;;  %v8928_v21 = vld [vmem:[%s13316_s7 + $0x8] ss:$24 sps:$4 sm:$0xff]  }
 0x1ed   :  { %v5515_v47 = vpop.f32.mrf.mxu0  ;;  %5760 = vmatmul.mubr.bf16.vlgmr.msra.gmra.mxu0 %v11182_v44 }
 0x1ee   :  { %v5516_v49 = vadd.f32 %v5515_v47, %v1494_v37  ;;  %5810 = vmatpush1.bf16.msra.mxu0 %v8889_v36  ;;  %5841 = vmatprep.mubr.bf16.mxu0 %v10383_v39  ;;  %v8931_v36 = vld [vmem:[%s13316_s7 + $0x3f8] ss:$24 sps:$4 sm:$0xff]   ;;  %v8936_v37 = vld [vmem:[%s13316_s7 + $0x2dc] ss:$24 sps:$4 sm:$0xff]   ;;  %v8937_v47 = vld [vmem:[%s13316_s7 + $0x3c8] ss:$24 sps:$4 sm:$0xff]  }
 0x1ef   :  { %5791 = vmatpush2.bf16.msra.mxu1 %v8886_v45  ;;  %v5517_v53 = vpop.f32.mrf.mxu0  ;;  %5811 = vmatprep.subr.bf16.mxu0 %v8897_v46  ;;  %v8939_v46 = vld [vmem:[%s13316_s7 + $0x3cc] ss:$24 sps:$4 sm:$0xff]  }
 0x1f0   :  { %v5518_v55 = vadd.f32 %v5517_v53, %v1496_v50  ;;  %5792 = vmatprep.subr.bf16.mxu1 %v8894_v3  ;;  %v8934_v3 = vld [vmem:[%s13316_s7 + $0x2d8] ss:$24 sps:$4 sm:$0xff]   ;;  %v8940_v50 = vld [vmem:[%s13316_s7 + $0x2a8] ss:$24 sps:$4 sm:$0xff]  }
 0x1f1   :  { %v5519_v59 = vpop.f32.mrf.mxu0  ;;  %v8943_v53 = vld [vmem:[%s13316_s7 + $0x398] ss:$24 sps:$4 sm:$0xff]  }
 0x1f2   :  { %5812 = vmatpush1.bf16.msra.mxu0 %v8895_v0  ;;  %v8945_v0 = vld [vmem:[%s13316_s7 + $0x39c] ss:$24 sps:$4 sm:$0xff]   ;;  %v8954_v59 = vld [vmem:[%s13316_s7 + $0x24c] ss:$24 sps:$4 sm:$0xff]  }
 0x1f3   :  { %5793 = vmatpush2.bf16.msra.mxu1 %v8892_v54  ;;  %v5520_v38 = vpop.f32.mrf.mxu0  ;;  %5813 = vmatprep.subr.bf16.mxu0 %v8903_v17  ;;  %v8948_v54 = vld [vmem:[%s13316_s7 + $0x27c] ss:$24 sps:$4 sm:$0xff]   ;;  %v8951_v17 = vld [vmem:[%s13316_s7 + $0x36c] ss:$24 sps:$4 sm:$0xff]  }
 0x1f4   :  { %5794 = vmatprep.subr.bf16.mxu1 %v8900_v56  ;;  %v8949_v56 = vld [vmem:[%s13316_s7 + $0x368] ss:$24 sps:$4 sm:$0xff]  }
 0x1f5   :  { %v8952_v38 = vld [vmem:[%s13316_s7 + $0x248] ss:$24 sps:$4 sm:$0xff]  }
 0x1f6   :  { %5814 = vmatpush1.bf16.msra.mxu0 %v8901_v60  ;;  %v8957_v60 = vld [vmem:[%s13316_s7 + $0x33c] ss:$24 sps:$4 sm:$0xff]  }
 0x1f7   :  { %5795 = vmatpush2.bf16.msra.mxu1 %v8898_v61  ;;  %5815 = vmatprep.subr.bf16.mxu0 %v8909_v62  ;;  %v8955_v61 = vld [vmem:[%s13316_s7 + $0x338] ss:$24 sps:$4 sm:$0xff]   ;;  %v8960_v62 = vld [vmem:[%s13316_s7 + $0x21c] ss:$24 sps:$4 sm:$0xff]  }
 0x1f8   :  { %5796 = vmatprep.subr.bf16.mxu1 %v8906_v63  ;;  %v8963_v63 = vld [vmem:[%s13316_s7 + $0x30c] ss:$24 sps:$4 sm:$0xff]  }
 0x1fa   :  { %5816 = vmatpush1.bf16.msra.mxu0 %v8907_v1  ;;  %v8958_v1 = vld [vmem:[%s13316_s7 + $0x218] ss:$24 sps:$4 sm:$0xff]  }
 0x1fb   :  { %5797 = vmatpush2.bf16.msra.mxu1 %v8904_v2  ;;  %5817 = vmatprep.subr.bf16.mxu0 %v8915_v4  ;;  %v8961_v2 = vld [vmem:[%s13316_s7 + $0x308] ss:$24 sps:$4 sm:$0xff]   ;;  %v8966_v4 = vld [vmem:[%s13316_s7 + $0x1ec] ss:$24 sps:$4 sm:$0xff]  }
 0x1fc   :  { %5798 = vmatprep.subr.bf16.mxu1 %v8912_v5  ;;  %v8969_v5 = vld [vmem:[%s13316_s7 + $0x5dc] ss:$24 sps:$4 sm:$0xff]  }
 0x1fe   :  { %5818 = vmatpush1.bf16.msra.mxu0 %v8913_v6  ;;  %v8964_v6 = vld [vmem:[%s13316_s7 + $0x1e8] ss:$24 sps:$4 sm:$0xff]  }
 0x1ff   :  { %5799 = vmatpush2.bf16.msra.mxu1 %v8910_v7  ;;  %5819 = vmatprep.subr.bf16.mxu0 %v8918_v8  ;;  %v8967_v7 = vld [vmem:[%s13316_s7 + $0x5d8] ss:$24 sps:$4 sm:$0xff]   ;;  %v8972_v8 = vld [vmem:[%s13316_s7 + $0x1bc] ss:$24 sps:$4 sm:$0xff]  }
 0x200   :  { %5850 = vmatprep.subr.bf16.mxu1 %v8921_v13  ;;  %v5556_v20 = vpop.f32.mrf.mxu1  ;;  %v8975_v13 = vld [vmem:[%s13316_s7 + $0x5ac] ss:$24 sps:$4 sm:$0xff]  }
 0x201   :  { %v11267_v25 = vadd.f32 %v5556_v20, %v5516_v49  ;;  %v8942_v49 = vld [vmem:[%s13316_s7 + $0x2ac] ss:$24 sps:$4 sm:$0xff]   ;;  %v8976_v20 = vld [vmem:[%s13316_s7 + $0x188] ss:$24 sps:$4 sm:$0xff]  }
 0x202   :  { %5801 = vmatmul.mubr.bf16.vlgmr.msra.gmra.mxu1 %v11255_v16  ;;  %5820 = vmatpush1.bf16.msra.mxu0 %v8916_v15  ;;  %v5558_v27 = vpop.f32.mrf.mxu1  ;;  %v8970_v15 = vld [vmem:[%s13316_s7 + $0x1b8] ss:$24 sps:$4 sm:$0xff]  }
 0x203   :  { %5851 = vmatpush1.bf16.msra.mxu1 %v8919_v41  ;;  %5882 = vmatprep.mubr.bf16.mxu1 %v10395_v43  ;;  %v11279_v30 = vadd.f32 %v5558_v27, %v5518_v55  ;;  %v8946_v55 = vld [vmem:[%s13316_s7 + $0x278] ss:$24 sps:$4 sm:$0xff]   ;;  %v8973_v41 = vld [vmem:[%s13316_s7 + $0x5a8] ss:$24 sps:$4 sm:$0xff]  }
 0x204   :  { %5821 = vmatprep.subr.bf16.mxu0 %v8924_v18  ;;  %5852 = vmatprep.subr.bf16.mxu1 %v8927_v19  ;;  %v5560_v34 = vpop.f32.mrf.mxu1  ;;  %v8978_v18 = vld [vmem:[%s13316_s7 + $0x18c] ss:$24 sps:$4 sm:$0xff]   ;;  %v8981_v19 = vld [vmem:[%s13316_s7 + $0x57c] ss:$24 sps:$4 sm:$0xff]   ;;  %v8985_v27 = vld [vmem:[%s13316_s7 + $0x758] ss:$24 sps:$4 sm:$0xff]  }
 0x205   :  { %v8993_v34 = vld [vmem:[%s13316_s7 + $0x72c] ss:$24 sps:$4 sm:$0xff]  }
 0x206   :  { %5822 = vmatpush1.bf16.msra.mxu0 %v8922_v24  ;;  %v5561_v45 = vpop.f32.mrf.mxu1  ;;  %v8979_v24 = vld [vmem:[%s13316_s7 + $0x578] ss:$24 sps:$4 sm:$0xff]  }
 0x207   :  { %5853 = vmatpush1.bf16.msra.mxu1 %v8925_v32  ;;  %5823 = vmatprep.subr.bf16.mxu0 %v8930_v26  ;;  %v8987_v32 = vld [vmem:[%s13316_s7 + $0x75c] ss:$24 sps:$4 sm:$0xff]   ;;  %v8984_v26 = vld [vmem:[%s13316_s7 + $0x54c] ss:$24 sps:$4 sm:$0xff]   ;;  %v8991_v45 = vld [vmem:[%s13316_s7 + $0x728] ss:$24 sps:$4 sm:$0xff]  }
 0x208   :  { %5854 = vmatprep.subr.bf16.mxu1 %v8933_v28  ;;  %v8982_v28 = vld [vmem:[%s13316_s7 + $0x548] ss:$24 sps:$4 sm:$0xff]  }
 0x20a   :  { %5824 = vmatpush1.bf16.msra.mxu0 %v8928_v21  ;;  %v8990_v21 = vld [vmem:[%s13316_s7 + $0x51c] ss:$24 sps:$4 sm:$0xff]  }
 0x20b   :  { %5855 = vmatpush1.bf16.msra.mxu1 %v8931_v36  ;;  %5825 = vmatprep.subr.bf16.mxu0 %v8936_v37 }
 0x20c   :  { %5856 = vmatprep.subr.bf16.mxu1 %v8939_v46 }
 0x20e   :  { %5826 = vmatpush2.bf16.msra.mxu0 %v8934_v3  ;;  %v8988_v3 = vld [vmem:[%s13316_s7 + $0x518] ss:$24 sps:$4 sm:$0xff]  }
 0x20f   :  { %5857 = vmatpush1.bf16.msra.mxu1 %v8937_v47  ;;  %5827 = vmatprep.subr.bf16.mxu0 %v8942_v49  ;;  %v8999_v47 = vld [vmem:[%s13316_s7 + $0x6fc] ss:$24 sps:$4 sm:$0xff]   ;;  %v8996_v49 = vld [vmem:[%s13316_s7 + $0x4ec] ss:$24 sps:$4 sm:$0xff]  }
 0x210   :  { %5858 = vmatprep.subr.bf16.mxu1 %v8945_v0 }
 0x212   :  { %5828 = vmatpush2.bf16.msra.mxu0 %v8940_v50  ;;  %v8997_v50 = vld [vmem:[%s13316_s7 + $0x6f8] ss:$24 sps:$4 sm:$0xff]  }
 0x213   :  { %5859 = vmatpush1.bf16.msra.mxu1 %v8943_v53  ;;  %5829 = vmatprep.subr.bf16.mxu0 %v8948_v54  ;;  %v8994_v54 = vld [vmem:[%s13316_s7 + $0x4e8] ss:$24 sps:$4 sm:$0xff]  }
 0x214   :  { %5860 = vmatprep.subr.bf16.mxu1 %v8951_v17  ;;  %v9002_v17 = vld [vmem:[%s13316_s7 + $0x4bc] ss:$24 sps:$4 sm:$0xff]  }
 0x216   :  { %5830 = vmatpush2.bf16.msra.mxu0 %v8946_v55  ;;  %v9003_v55 = vld [vmem:[%s13316_s7 + $0x6c8] ss:$24 sps:$4 sm:$0xff]  }
 0x217   :  { %5861 = vmatpush1.bf16.msra.mxu1 %v8949_v56  ;;  %5831 = vmatprep.subr.bf16.mxu0 %v8954_v59  ;;  %v9000_v56 = vld [vmem:[%s13316_s7 + $0x4b8] ss:$24 sps:$4 sm:$0xff]   ;;  %v9011_v59 = vld [vmem:[%s13316_s7 + $0x69c] ss:$24 sps:$4 sm:$0xff]  }
 0x218   :  { %5862 = vmatprep.subr.bf16.mxu1 %v8957_v60  ;;  %v9008_v60 = vld [vmem:[%s13316_s7 + $0x48c] ss:$24 sps:$4 sm:$0xff]  }
 0x21a   :  { %5832 = vmatpush2.bf16.msra.mxu0 %v8952_v38  ;;  %v9009_v38 = vld [vmem:[%s13316_s7 + $0x698] ss:$24 sps:$4 sm:$0xff]  }
 0x21b   :  { %5863 = vmatpush1.bf16.msra.mxu1 %v8955_v61  ;;  %5833 = vmatprep.subr.bf16.mxu0 %v8960_v62  ;;  %v9006_v61 = vld [vmem:[%s13316_s7 + $0x488] ss:$24 sps:$4 sm:$0xff]   ;;  %v9014_v62 = vld [vmem:[%s13316_s7 + $0x66c] ss:$24 sps:$4 sm:$0xff]  }
 0x21c   :  { %5864 = vmatprep.subr.bf16.mxu1 %v8963_v63  ;;  %v9017_v63 = vld [vmem:[%s13316_s7 + $0xa5c] ss:$24 sps:$4 sm:$0xff]  }
 0x21e   :  { %5834 = vmatpush2.bf16.msra.mxu0 %v8958_v1  ;;  %v9012_v1 = vld [vmem:[%s13316_s7 + $0x668] ss:$24 sps:$4 sm:$0xff]  }
 0x21f   :  { %5865 = vmatpush1.bf16.msra.mxu1 %v8961_v2  ;;  %5835 = vmatprep.subr.bf16.mxu0 %v8966_v4  ;;  %v9015_v2 = vld [vmem:[%s13316_s7 + $0xa58] ss:$24 sps:$4 sm:$0xff]   ;;  %v9020_v4 = vld [vmem:[%s13316_s7 + $0x63c] ss:$24 sps:$4 sm:$0xff]  }
 0x220   :  { %5866 = vmatprep.subr.bf16.mxu1 %v8969_v5  ;;  %v9023_v5 = vld [vmem:[%s13316_s7 + $0xa2c] ss:$24 sps:$4 sm:$0xff]  }
 0x222   :  { %5836 = vmatpush2.bf16.msra.mxu0 %v8964_v6 }
 0x223   :  { %5867 = vmatpush2.bf16.msra.mxu1 %v8967_v7  ;;  %5837 = vmatprep.subr.bf16.mxu0 %v8972_v8  ;;  %v9018_v7 = vld [vmem:[%s13316_s7 + $0x638] ss:$24 sps:$4 sm:$0xff]  }
 0x224   :  { %5868 = vmatprep.subr.bf16.mxu1 %v8975_v13  ;;  %v9021_v13 = vld [vmem:[%s13316_s7 + $0xa28] ss:$24 sps:$4 sm:$0xff]  }
 0x226   :  { %5838 = vmatpush2.bf16.msra.mxu0 %v8970_v15  ;;  %v9026_v15 = vld [vmem:[%s13316_s7 + $0x60c] ss:$24 sps:$4 sm:$0xff]  }
 0x227   :  { %5869 = vmatpush2.bf16.msra.mxu1 %v8973_v41  ;;  %5839 = vmatprep.subr.bf16.mxu0 %v8978_v18  ;;  %v9029_v18 = vld [vmem:[%s13316_s7 + $0x9fc] ss:$24 sps:$4 sm:$0xff]  }
 0x228   :  { %5870 = vmatprep.subr.bf16.mxu1 %v8981_v19 }
 0x22a   :  { %5840 = vmatpush2.bf16.msra.mxu0 %v8976_v20 }
 0x22b   :  { %5871 = vmatpush2.bf16.msra.mxu1 %v8979_v24  ;;  %5891 = vmatprep.subr.bf16.mxu0 %v8987_v32  ;;  %v9024_v24 = vld [vmem:[%s13316_s7 + $0x608] ss:$24 sps:$4 sm:$0xff]   ;;  %v9027_v32 = vld [vmem:[%s13316_s7 + $0x9f8] ss:$24 sps:$4 sm:$0xff]  }
 0x22c   :  { %5872 = vmatprep.subr.bf16.mxu1 %v8984_v26  ;;  %v9032_v26 = vld [vmem:[%s13316_s7 + $0x8dc] ss:$24 sps:$4 sm:$0xff]  }
 0x22d   :  { %v5597_v36 = vpop.f32.mrf.mxu0  ;;  %5842 = vmatmul.mubr.bf16.vlgmr.msra.gmra.mxu0 %v10538_v29 }
 0x22e   :  { %v5598_v37 = vadd.f32 %v5597_v36, %v11267_v25  ;;  %5892 = vmatpush1.bf16.msra.mxu0 %v8985_v27  ;;  %5923 = vmatprep.mubr.bf16.mxu0 %v10540_v31  ;;  %v9038_v36 = vld [vmem:[%s13316_s7 + $0x8ac] ss:$24 sps:$4 sm:$0xff]  }
 0x22f   :  { %5873 = vmatpush2.bf16.msra.mxu1 %v8982_v28  ;;  %v5599_v46 = vpop.f32.mrf.mxu0  ;;  %5893 = vmatprep.subr.bf16.mxu0 %v8993_v34  ;;  %v9035_v28 = vld [vmem:[%s13316_s7 + $0x9cc] ss:$24 sps:$4 sm:$0xff]   ;;  %v9030_v34 = vld [vmem:[%s13316_s7 + $0x8d8] ss:$24 sps:$4 sm:$0xff]  }
 0x230   :  { %v5600_v25 = vadd.f32 %v5599_v46, %v11279_v30  ;;  %5874 = vmatprep.subr.bf16.mxu1 %v8990_v21  ;;  %v9005_v30 = vld [vmem:[%s13316_s7 + $0x6cc] ss:$24 sps:$4 sm:$0xff]   ;;  %v9033_v21 = vld [vmem:[%s13316_s7 + $0x9c8] ss:$24 sps:$4 sm:$0xff]   ;;  %v9039_v46 = vld [vmem:[%s13316_s7 + $0x998] ss:$24 sps:$4 sm:$0xff]  }
 0x231   :  { %v5601_v0 = vpop.f32.mrf.mxu0 }
 0x232   :  { %5894 = vmatpush1.bf16.msra.mxu0 %v8991_v45  ;;  %v9036_v45 = vld [vmem:[%s13316_s7 + $0x8a8] ss:$24 sps:$4 sm:$0xff]   ;;  %v9050_v0 = vld [vmem:[%s13316_s7 + $0x84c] ss:$24 sps:$4 sm:$0xff]  }
 0x233   :  { %5875 = vmatpush2.bf16.msra.mxu1 %v8988_v3  ;;  %v5602_v53 = vpop.f32.mrf.mxu0  ;;  %5895 = vmatprep.subr.bf16.mxu0 %v8999_v47  ;;  %v9044_v3 = vld [vmem:[%s13316_s7 + $0x87c] ss:$24 sps:$4 sm:$0xff]   ;;  %v9047_v47 = vld [vmem:[%s13316_s7 + $0x96c] ss:$24 sps:$4 sm:$0xff]  }
 0x234   :  { %5876 = vmatprep.subr.bf16.mxu1 %v8996_v49  ;;  %v9045_v49 = vld [vmem:[%s13316_s7 + $0x968] ss:$24 sps:$4 sm:$0xff]  }
 0x235   :  { %v9048_v53 = vld [vmem:[%s13316_s7 + $0x848] ss:$24 sps:$4 sm:$0xff]  }
 0x236   :  { %5896 = vmatpush1.bf16.msra.mxu0 %v8997_v50  ;;  %v9053_v50 = vld [vmem:[%s13316_s7 + $0x93c] ss:$24 sps:$4 sm:$0xff]  }
 0x237   :  { %5877 = vmatpush2.bf16.msra.mxu1 %v8994_v54  ;;  %5897 = vmatprep.subr.bf16.mxu0 %v9005_v30  ;;  %v9051_v54 = vld [vmem:[%s13316_s7 + $0x938] ss:$24 sps:$4 sm:$0xff]   ;;  %v9056_v30 = vld [vmem:[%s13316_s7 + $0x81c] ss:$24 sps:$4 sm:$0xff]  }
 0x238   :  { %5878 = vmatprep.subr.bf16.mxu1 %v9002_v17  ;;  %v9059_v17 = vld [vmem:[%s13316_s7 + $0x90c] ss:$24 sps:$4 sm:$0xff]  }
 0x23a   :  { %5898 = vmatpush1.bf16.msra.mxu0 %v9003_v55  ;;  %v9054_v55 = vld [vmem:[%s13316_s7 + $0x818] ss:$24 sps:$4 sm:$0xff]  }
 0x23b   :  { %5879 = vmatpush2.bf16.msra.mxu1 %v9000_v56  ;;  %5899 = vmatprep.subr.bf16.mxu0 %v9011_v59  ;;  %v9057_v56 = vld [vmem:[%s13316_s7 + $0x908] ss:$24 sps:$4 sm:$0xff]   ;;  %v9062_v59 = vld [vmem:[%s13316_s7 + $0x7ec] ss:$24 sps:$4 sm:$0xff]  }
 0x23c   :  { %5880 = vmatprep.subr.bf16.mxu1 %v9008_v60  ;;  %v9065_v60 = vld [vmem:[%s13316_s7 + $0xbdc] ss:$24 sps:$4 sm:$0xff]  }
 0x23e   :  { %5900 = vmatpush1.bf16.msra.mxu0 %v9009_v38  ;;  %v9060_v38 = vld [vmem:[%s13316_s7 + $0x7e8] ss:$24 sps:$4 sm:$0xff]  }
 0x23f   :  { %5881 = vmatpush2.bf16.msra.mxu1 %v9006_v61  ;;  %5901 = vmatprep.subr.bf16.mxu0 %v9014_v62  ;;  %v9063_v61 = vld [vmem:[%s13316_s7 + $0xbd8] ss:$24 sps:$4 sm:$0xff]   ;;  %v9068_v62 = vld [vmem:[%s13316_s7 + $0x7bc] ss:$24 sps:$4 sm:$0xff]  }
 0x240   :  { %5932 = vmatprep.subr.bf16.mxu1 %v9017_v63  ;;  %v5638_v6 = vpop.f32.mrf.mxu1  ;;  %v9071_v63 = vld [vmem:[%s13316_s7 + $0xbac] ss:$24 sps:$4 sm:$0xff]  }
 0x241   :  { %v11469_v8 = vadd.f32 %v5638_v6, %v5598_v37  ;;  %v9041_v37 = vld [vmem:[%s13316_s7 + $0x99c] ss:$24 sps:$4 sm:$0xff]   ;;  %v9072_v6 = vld [vmem:[%s13316_s7 + $0x788] ss:$24 sps:$4 sm:$0xff]  }
 0x242   :  { %5883 = vmatmul.mubr.bf16.vlgmr.msra.gmra.mxu1 %v10611_v57  ;;  %5902 = vmatpush1.bf16.msra.mxu0 %v9012_v1  ;;  %v5640_v41 = vpop.f32.mrf.mxu1  ;;  %v9066_v1 = vld [vmem:[%s13316_s7 + $0x7b8] ss:$24 sps:$4 sm:$0xff]  }
 0x243   :  { %5933 = vmatpush1.bf16.msra.mxu1 %v9015_v2  ;;  %5964 = vmatprep.mubr.bf16.mxu1 %v10613_v58  ;;  %v11481_v19 = vadd.f32 %v5640_v41, %v5600_v25  ;;  %v9042_v25 = vld [vmem:[%s13316_s7 + $0x878] ss:$24 sps:$4 sm:$0xff]   ;;  %v9069_v2 = vld [vmem:[%s13316_s7 + $0xba8] ss:$24 sps:$4 sm:$0xff]  }
 0x244   :  { %5903 = vmatprep.subr.bf16.mxu0 %v9020_v4  ;;  %5934 = vmatprep.subr.bf16.mxu1 %v9023_v5  ;;  %v5642_v20 = vpop.f32.mrf.mxu1  ;;  %v9074_v4 = vld [vmem:[%s13316_s7 + $0x78c] ss:$24 sps:$4 sm:$0xff]   ;;  %v9077_v5 = vld [vmem:[%s13316_s7 + $0xb7c] ss:$24 sps:$4 sm:$0xff]   ;;  %v9081_v41 = vld [vmem:[%s13316_s7 + $0xd58] ss:$24 sps:$4 sm:$0xff]  }
 0x245   :  { %v9089_v20 = vld [vmem:[%s13316_s7 + $0xd2c] ss:$24 sps:$4 sm:$0xff]  }
 0x246   :  { %5904 = vmatpush1.bf16.msra.mxu0 %v9018_v7  ;;  %v5643_v27 = vpop.f32.mrf.mxu1  ;;  %v9075_v7 = vld [vmem:[%s13316_s7 + $0xb78] ss:$24 sps:$4 sm:$0xff]  }
 0x247   :  { %5935 = vmatpush1.bf16.msra.mxu1 %v9021_v13  ;;  %5905 = vmatprep.subr.bf16.mxu0 %v9026_v15  ;;  %v9083_v13 = vld [vmem:[%s13316_s7 + $0xd5c] ss:$24 sps:$4 sm:$0xff]   ;;  %v9080_v15 = vld [vmem:[%s13316_s7 + $0xb4c] ss:$24 sps:$4 sm:$0xff]   ;;  %v9087_v27 = vld [vmem:[%s13316_s7 + $0xd28] ss:$24 sps:$4 sm:$0xff]  }
 0x248   :  { %5936 = vmatprep.subr.bf16.mxu1 %v9029_v18  ;;  %v9078_v18 = vld [vmem:[%s13316_s7 + $0xb48] ss:$24 sps:$4 sm:$0xff]  }
 0x24a   :  { %5906 = vmatpush1.bf16.msra.mxu0 %v9024_v24  ;;  %v9086_v24 = vld [vmem:[%s13316_s7 + $0xb1c] ss:$24 sps:$4 sm:$0xff]  }
 0x24b   :  { %5937 = vmatpush1.bf16.msra.mxu1 %v9027_v32  ;;  %5907 = vmatprep.subr.bf16.mxu0 %v9032_v26 }
 0x24c   :  { %5938 = vmatprep.subr.bf16.mxu1 %v9035_v28 }
 0x24e   :  { %5908 = vmatpush2.bf16.msra.mxu0 %v9030_v34  ;;  %v9084_v34 = vld [vmem:[%s13316_s7 + $0xb18] ss:$24 sps:$4 sm:$0xff]  }
 0x24f   :  { %5939 = vmatpush1.bf16.msra.mxu1 %v9033_v21  ;;  %5909 = vmatprep.subr.bf16.mxu0 %v9038_v36  ;;  %v9095_v21 = vld [vmem:[%s13316_s7 + $0xcfc] ss:$24 sps:$4 sm:$0xff]   ;;  %v9092_v36 = vld [vmem:[%s13316_s7 + $0xaec] ss:$24 sps:$4 sm:$0xff]  }
 0x250   :  { %5940 = vmatprep.subr.bf16.mxu1 %v9041_v37 }
 0x252   :  { %5910 = vmatpush2.bf16.msra.mxu0 %v9036_v45  ;;  %v9093_v45 = vld [vmem:[%s13316_s7 + $0xcf8] ss:$24 sps:$4 sm:$0xff]  }
 0x253   :  { %5941 = vmatpush1.bf16.msra.mxu1 %v9039_v46  ;;  %5911 = vmatprep.subr.bf16.mxu0 %v9044_v3  ;;  %v9090_v3 = vld [vmem:[%s13316_s7 + $0xae8] ss:$24 sps:$4 sm:$0xff]  }
 0x254   :  { %5942 = vmatprep.subr.bf16.mxu1 %v9047_v47  ;;  %v9098_v47 = vld [vmem:[%s13316_s7 + $0xabc] ss:$24 sps:$4 sm:$0xff]  }
 0x256   :  { %5912 = vmatpush2.bf16.msra.mxu0 %v9042_v25  ;;  %v9099_v25 = vld [vmem:[%s13316_s7 + $0xcc8] ss:$24 sps:$4 sm:$0xff]  }
 0x257   :  { %5943 = vmatpush1.bf16.msra.mxu1 %v9045_v49  ;;  %5913 = vmatprep.subr.bf16.mxu0 %v9050_v0  ;;  %v9096_v49 = vld [vmem:[%s13316_s7 + $0xab8] ss:$24 sps:$4 sm:$0xff]   ;;  %v9107_v0 = vld [vmem:[%s13316_s7 + $0xc9c] ss:$24 sps:$4 sm:$0xff]  }
 0x258   :  { %5944 = vmatprep.subr.bf16.mxu1 %v9053_v50  ;;  %v9104_v50 = vld [vmem:[%s13316_s7 + $0xa8c] ss:$24 sps:$4 sm:$0xff]  }
 0x25a   :  { %5914 = vmatpush2.bf16.msra.mxu0 %v9048_v53  ;;  %v9105_v53 = vld [vmem:[%s13316_s7 + $0xc98] ss:$24 sps:$4 sm:$0xff]  }
 0x25b   :  { %5945 = vmatpush1.bf16.msra.mxu1 %v9051_v54  ;;  %5915 = vmatprep.subr.bf16.mxu0 %v9056_v30  ;;  %v9102_v54 = vld [vmem:[%s13316_s7 + $0xa88] ss:$24 sps:$4 sm:$0xff]   ;;  %v9110_v30 = vld [vmem:[%s13316_s7 + $0xc6c] ss:$24 sps:$4 sm:$0xff]  }
 0x25c   :  { %5946 = vmatprep.subr.bf16.mxu1 %v9059_v17  ;;  %v9113_v17 = vld [vmem:[%s13316_s7 + $0x105c] ss:$24 sps:$4 sm:$0xff]  }
 0x25e   :  { %5916 = vmatpush2.bf16.msra.mxu0 %v9054_v55  ;;  %v9108_v55 = vld [vmem:[%s13316_s7 + $0xc68] ss:$24 sps:$4 sm:$0xff]  }
 0x25f   :  { %5947 = vmatpush1.bf16.msra.mxu1 %v9057_v56  ;;  %5917 = vmatprep.subr.bf16.mxu0 %v9062_v59  ;;  %v9111_v56 = vld [vmem:[%s13316_s7 + $0x1058] ss:$24 sps:$4 sm:$0xff]   ;;  %v9116_v59 = vld [vmem:[%s13316_s7 + $0xc3c] ss:$24 sps:$4 sm:$0xff]  }
 0x260   :  { %5948 = vmatprep.subr.bf16.mxu1 %v9065_v60  ;;  %v9119_v60 = vld [vmem:[%s13316_s7 + $0x102c] ss:$24 sps:$4 sm:$0xff]  }
 0x262   :  { %5918 = vmatpush2.bf16.msra.mxu0 %v9060_v38 }
 0x263   :  { %5949 = vmatpush2.bf16.msra.mxu1 %v9063_v61  ;;  %5919 = vmatprep.subr.bf16.mxu0 %v9068_v62  ;;  %v9114_v61 = vld [vmem:[%s13316_s7 + $0xc38] ss:$24 sps:$4 sm:$0xff]  }
 0x264   :  { %5950 = vmatprep.subr.bf16.mxu1 %v9071_v63  ;;  %v9117_v63 = vld [vmem:[%s13316_s7 + $0x1028] ss:$24 sps:$4 sm:$0xff]  }
 0x266   :  { %5920 = vmatpush2.bf16.msra.mxu0 %v9066_v1  ;;  %v9122_v1 = vld [vmem:[%s13316_s7 + $0xc0c] ss:$24 sps:$4 sm:$0xff]  }
 0x267   :  { %5951 = vmatpush2.bf16.msra.mxu1 %v9069_v2  ;;  %5921 = vmatprep.subr.bf16.mxu0 %v9074_v4  ;;  %v9125_v4 = vld [vmem:[%s13316_s7 + $0xffc] ss:$24 sps:$4 sm:$0xff]  }
 0x268   :  { %5952 = vmatprep.subr.bf16.mxu1 %v9077_v5 }
 0x26a   :  { %5922 = vmatpush2.bf16.msra.mxu0 %v9072_v6 }
 0x26b   :  { %5953 = vmatpush2.bf16.msra.mxu1 %v9075_v7  ;;  %5973 = vmatprep.subr.bf16.mxu0 %v9083_v13  ;;  %v9120_v7 = vld [vmem:[%s13316_s7 + $0xc08] ss:$24 sps:$4 sm:$0xff]   ;;  %v9123_v13 = vld [vmem:[%s13316_s7 + $0xff8] ss:$24 sps:$4 sm:$0xff]  }
 0x26c   :  { %5954 = vmatprep.subr.bf16.mxu1 %v9080_v15  ;;  %v9128_v15 = vld [vmem:[%s13316_s7 + $0xedc] ss:$24 sps:$4 sm:$0xff]  }
 0x26d   :  { %v5679_v32 = vpop.f32.mrf.mxu0  ;;  %5924 = vmatmul.mubr.bf16.vlgmr.msra.gmra.mxu0 %v10756_v51 }
 0x26e   :  { %v5680_v26 = vadd.f32 %v5679_v32, %v11469_v8  ;;  %5974 = vmatpush1.bf16.msra.mxu0 %v9081_v41  ;;  %6005 = vmatprep.mubr.bf16.mxu0 %v10758_v52  ;;  %v9134_v32 = vld [vmem:[%s13316_s7 + $0xeac] ss:$24 sps:$4 sm:$0xff]  }
 0x26f   :  { %5955 = vmatpush2.bf16.msra.mxu1 %v9078_v18  ;;  %v5681_v28 = vpop.f32.mrf.mxu0  ;;  %5975 = vmatprep.subr.bf16.mxu0 %v9089_v20  ;;  %v9131_v18 = vld [vmem:[%s13316_s7 + $0xfcc] ss:$24 sps:$4 sm:$0xff]   ;;  %v9126_v20 = vld [vmem:[%s13316_s7 + $0xed8] ss:$24 sps:$4 sm:$0xff]  }
 0x270   :  { %v5682_v8 = vadd.f32 %v5681_v28, %v11481_v19  ;;  %5956 = vmatprep.subr.bf16.mxu1 %v9086_v24  ;;  %v9101_v19 = vld [vmem:[%s13316_s7 + $0xccc] ss:$24 sps:$4 sm:$0xff]   ;;  %v9129_v24 = vld [vmem:[%s13316_s7 + $0xfc8] ss:$24 sps:$4 sm:$0xff]   ;;  %v9135_v28 = vld [vmem:[%s13316_s7 + $0xf98] ss:$24 sps:$4 sm:$0xff]  }
 0x271   :  { %v5683_v37 = vpop.f32.mrf.mxu0 }
 0x272   :  { %5976 = vmatpush1.bf16.msra.mxu0 %v9087_v27  ;;  %v9132_v27 = vld [vmem:[%s13316_s7 + $0xea8] ss:$24 sps:$4 sm:$0xff]   ;;  %v9146_v37 = vld [vmem:[%s13316_s7 + $0xe4c] ss:$24 sps:$4 sm:$0xff]  }
 0x273   :  { %5957 = vmatpush2.bf16.msra.mxu1 %v9084_v34  ;;  %v5684_v46 = vpop.f32.mrf.mxu0  ;;  %5977 = vmatprep.subr.bf16.mxu0 %v9095_v21  ;;  %v9140_v34 = vld [vmem:[%s13316_s7 + $0xe7c] ss:$24 sps:$4 sm:$0xff]   ;;  %v9143_v21 = vld [vmem:[%s13316_s7 + $0xf6c] ss:$24 sps:$4 sm:$0xff]  }
 0x274   :  { %5958 = vmatprep.subr.bf16.mxu1 %v9092_v36  ;;  %v9141_v36 = vld [vmem:[%s13316_s7 + $0xf68] ss:$24 sps:$4 sm:$0xff]  }
 0x275   :  { %v9144_v46 = vld [vmem:[%s13316_s7 + $0xe48] ss:$24 sps:$4 sm:$0xff]  }
 0x276   :  { %5978 = vmatpush1.bf16.msra.mxu0 %v9093_v45  ;;  %v9149_v45 = vld [vmem:[%s13316_s7 + $0xf3c] ss:$24 sps:$4 sm:$0xff]  }
 0x277   :  { %5959 = vmatpush2.bf16.msra.mxu1 %v9090_v3  ;;  %5979 = vmatprep.subr.bf16.mxu0 %v9101_v19  ;;  %v9147_v3 = vld [vmem:[%s13316_s7 + $0xf38] ss:$24 sps:$4 sm:$0xff]   ;;  %v9152_v19 = vld [vmem:[%s13316_s7 + $0xe1c] ss:$24 sps:$4 sm:$0xff]  }
 0x278   :  { %5960 = vmatprep.subr.bf16.mxu1 %v9098_v47  ;;  %v9155_v47 = vld [vmem:[%s13316_s7 + $0xf0c] ss:$24 sps:$4 sm:$0xff]  }
 0x27a   :  { %5980 = vmatpush1.bf16.msra.mxu0 %v9099_v25  ;;  %v9150_v25 = vld [vmem:[%s13316_s7 + $0xe18] ss:$24 sps:$4 sm:$0xff]  }
 0x27b   :  { %5961 = vmatpush2.bf16.msra.mxu1 %v9096_v49  ;;  %5981 = vmatprep.subr.bf16.mxu0 %v9107_v0  ;;  %v9153_v49 = vld [vmem:[%s13316_s7 + $0xf08] ss:$24 sps:$4 sm:$0xff]   ;;  %v9158_v0 = vld [vmem:[%s13316_s7 + $0xdec] ss:$24 sps:$4 sm:$0xff]  }
 0x27c   :  { %5962 = vmatprep.subr.bf16.mxu1 %v9104_v50  ;;  %v9161_v50 = vld [vmem:[%s13316_s7 + $0x11dc] ss:$24 sps:$4 sm:$0xff]  }
 0x27e   :  { %5982 = vmatpush1.bf16.msra.mxu0 %v9105_v53  ;;  %v9156_v53 = vld [vmem:[%s13316_s7 + $0xde8] ss:$24 sps:$4 sm:$0xff]  }
 0x27f   :  { %5963 = vmatpush2.bf16.msra.mxu1 %v9102_v54  ;;  %5983 = vmatprep.subr.bf16.mxu0 %v9110_v30  ;;  %v9159_v54 = vld [vmem:[%s13316_s7 + $0x11d8] ss:$24 sps:$4 sm:$0xff]   ;;  %v9164_v30 = vld [vmem:[%s13316_s7 + $0xdbc] ss:$24 sps:$4 sm:$0xff]  }
 0x280   :  { %6014 = vmatprep.subr.bf16.mxu1 %v9113_v17  ;;  %v9167_v17 = vld [vmem:[%s13316_s7 + $0x11ac] ss:$24 sps:$4 sm:$0xff]  }
 0x282   :  { %v5720_v38 = vpop.f32.mrf.mxu1  ;;  %5965 = vmatmul.mubr.bf16.vlgmr.msra.gmra.mxu1 %v10829_v12  ;;  %5984 = vmatpush1.bf16.msra.mxu0 %v9108_v55  ;;  %v9162_v55 = vld [vmem:[%s13316_s7 + $0xdb8] ss:$24 sps:$4 sm:$0xff]  }
 0x283   :  { %v11671_v62 = vadd.f32 %v5720_v38, %v5680_v26  ;;  %6015 = vmatpush1.bf16.msra.mxu1 %v9111_v56  ;;  %6046 = vmatprep.mubr.bf16.mxu1 %v10834_v14  ;;  %v9137_v26 = vld [vmem:[%s13316_s7 + $0xf9c] ss:$24 sps:$4 sm:$0xff]   ;;  %v9165_v56 = vld [vmem:[%s13316_s7 + $0x11a8] ss:$24 sps:$4 sm:$0xff]  }
 0x284   :  { %v5722_v2 = vpop.f32.mrf.mxu1  ;;  %5985 = vmatprep.subr.bf16.mxu0 %v9116_v59  ;;  %6016 = vmatprep.subr.bf16.mxu1 %v9119_v60  ;;  %v9170_v59 = vld [vmem:[%s13316_s7 + $0xd8c] ss:$24 sps:$4 sm:$0xff]   ;;  %v9173_v60 = vld [vmem:[%s13316_s7 + $0x117c] ss:$24 sps:$4 sm:$0xff]   ;;  %v9168_v38 = vld [vmem:[%s13316_s7 + $0xd88] ss:$24 sps:$4 sm:$0xff]  }
 0x285   :  { %v11683_v5 = vadd.f32 %v5722_v2, %v5682_v8  ;;  %v9138_v8 = vld [vmem:[%s13316_s7 + $0xe78] ss:$24 sps:$4 sm:$0xff]  }
 0x286   :  { %v5724_v6 = vpop.f32.mrf.mxu1  ;;  %5986 = vmatpush1.bf16.msra.mxu0 %v9114_v61  ;;  %v9171_v61 = vld [vmem:[%s13316_s7 + $0x1178] ss:$24 sps:$4 sm:$0xff]  }
 0x287   :  { %6017 = vmatpush1.bf16.msra.mxu1 %v9117_v63  ;;  %5987 = vmatprep.subr.bf16.mxu0 %v9122_v1  ;;  %v9179_v63 = vld [vmem:[%s13316_s7 + $0x135c] ss:$24 sps:$4 sm:$0xff]   ;;  %v9176_v1 = vld [vmem:[%s13316_s7 + $0x114c] ss:$24 sps:$4 sm:$0xff]   ;;  %v9177_v2 = vld [vmem:[%s13316_s7 + $0x1358] ss:$24 sps:$4 sm:$0xff]  }
 0x288   :  { %v5725_v41 = vpop.f32.mrf.mxu1  ;;  %6018 = vmatprep.subr.bf16.mxu1 %v9125_v4  ;;  %v9174_v4 = vld [vmem:[%s13316_s7 + $0x1148] ss:$24 sps:$4 sm:$0xff]   ;;  %v9185_v6 = vld [vmem:[%s13316_s7 + $0x132c] ss:$24 sps:$4 sm:$0xff]  }
 0x289   :  { %v9183_v41 = vld [vmem:[%s13316_s7 + $0x1328] ss:$24 sps:$4 sm:$0xff]  }
 0x28a   :  { %5988 = vmatpush1.bf16.msra.mxu0 %v9120_v7  ;;  %v9182_v7 = vld [vmem:[%s13316_s7 + $0x111c] ss:$24 sps:$4 sm:$0xff]  }
 0x28b   :  { %6019 = vmatpush1.bf16.msra.mxu1 %v9123_v13  ;;  %5989 = vmatprep.subr.bf16.mxu0 %v9128_v15 }
 0x28c   :  { %6020 = vmatprep.subr.bf16.mxu1 %v9131_v18 }
 0x28e   :  { %5990 = vmatpush2.bf16.msra.mxu0 %v9126_v20  ;;  %v9180_v20 = vld [vmem:[%s13316_s7 + $0x1118] ss:$24 sps:$4 sm:$0xff]  }
 0x28f   :  { %6021 = vmatpush1.bf16.msra.mxu1 %v9129_v24  ;;  %5991 = vmatprep.subr.bf16.mxu0 %v9134_v32  ;;  %v9191_v24 = vld [vmem:[%s13316_s7 + $0x12fc] ss:$24 sps:$4 sm:$0xff]   ;;  %v9188_v32 = vld [vmem:[%s13316_s7 + $0x10ec] ss:$24 sps:$4 sm:$0xff]  }
 0x290   :  { %6022 = vmatprep.subr.bf16.mxu1 %v9137_v26 }
 0x292   :  { %5992 = vmatpush2.bf16.msra.mxu0 %v9132_v27  ;;  %v9189_v27 = vld [vmem:[%s13316_s7 + $0x12f8] ss:$24 sps:$4 sm:$0xff]  }
 0x293   :  { %6023 = vmatpush1.bf16.msra.mxu1 %v9135_v28  ;;  %5993 = vmatprep.subr.bf16.mxu0 %v9140_v34  ;;  %v9186_v34 = vld [vmem:[%s13316_s7 + $0x10e8] ss:$24 sps:$4 sm:$0xff]  }
 0x294   :  { %6024 = vmatprep.subr.bf16.mxu1 %v9143_v21  ;;  %v9194_v21 = vld [vmem:[%s13316_s7 + $0x10bc] ss:$24 sps:$4 sm:$0xff]  }
 0x296   :  { %5994 = vmatpush2.bf16.msra.mxu0 %v9138_v8  ;;  %v9195_v8 = vld [vmem:[%s13316_s7 + $0x12c8] ss:$24 sps:$4 sm:$0xff]  }
 0x297   :  { %6025 = vmatpush1.bf16.msra.mxu1 %v9141_v36  ;;  %5995 = vmatprep.subr.bf16.mxu0 %v9146_v37  ;;  %v9192_v36 = vld [vmem:[%s13316_s7 + $0x10b8] ss:$24 sps:$4 sm:$0xff]   ;;  %v9203_v37 = vld [vmem:[%s13316_s7 + $0x129c] ss:$24 sps:$4 sm:$0xff]  }
 0x298   :  { %6026 = vmatprep.subr.bf16.mxu1 %v9149_v45  ;;  %v9200_v45 = vld [vmem:[%s13316_s7 + $0x108c] ss:$24 sps:$4 sm:$0xff]  }
 0x29a   :  { %5996 = vmatpush2.bf16.msra.mxu0 %v9144_v46  ;;  %v9201_v46 = vld [vmem:[%s13316_s7 + $0x1298] ss:$24 sps:$4 sm:$0xff]  }
 0x29b   :  { %6027 = vmatpush1.bf16.msra.mxu1 %v9147_v3  ;;  %5997 = vmatprep.subr.bf16.mxu0 %v9152_v19  ;;  %v9198_v3 = vld [vmem:[%s13316_s7 + $0x1088] ss:$24 sps:$4 sm:$0xff]   ;;  %v9206_v19 = vld [vmem:[%s13316_s7 + $0x126c] ss:$24 sps:$4 sm:$0xff]  }
 0x29c   :  { %6028 = vmatprep.subr.bf16.mxu1 %v9155_v47  ;;  %v9209_v47 = vld [vmem:[%s13316_s7 + $0x165c] ss:$24 sps:$4 sm:$0xff]  }
 0x29e   :  { %5998 = vmatpush2.bf16.msra.mxu0 %v9150_v25  ;;  %v9204_v25 = vld [vmem:[%s13316_s7 + $0x1268] ss:$24 sps:$4 sm:$0xff]  }
 0x29f   :  { %6029 = vmatpush1.bf16.msra.mxu1 %v9153_v49  ;;  %5999 = vmatprep.subr.bf16.mxu0 %v9158_v0  ;;  %v9207_v49 = vld [vmem:[%s13316_s7 + $0x1658] ss:$24 sps:$4 sm:$0xff]   ;;  %v9212_v0 = vld [vmem:[%s13316_s7 + $0x123c] ss:$24 sps:$4 sm:$0xff]  }
 0x2a0   :  { %6030 = vmatprep.subr.bf16.mxu1 %v9161_v50  ;;  %v9215_v50 = vld [vmem:[%s13316_s7 + $0x162c] ss:$24 sps:$4 sm:$0xff]  }
 0x2a2   :  { %6000 = vmatpush2.bf16.msra.mxu0 %v9156_v53 }
 0x2a3   :  { %6031 = vmatpush2.bf16.msra.mxu1 %v9159_v54  ;;  %6001 = vmatprep.subr.bf16.mxu0 %v9164_v30  ;;  %v9210_v54 = vld [vmem:[%s13316_s7 + $0x1238] ss:$24 sps:$4 sm:$0xff]  }
 0x2a4   :  { %6032 = vmatprep.subr.bf16.mxu1 %v9167_v17  ;;  %v9213_v17 = vld [vmem:[%s13316_s7 + $0x1628] ss:$24 sps:$4 sm:$0xff]  }
 0x2a6   :  { %6002 = vmatpush2.bf16.msra.mxu0 %v9162_v55  ;;  %v9218_v55 = vld [vmem:[%s13316_s7 + $0x120c] ss:$24 sps:$4 sm:$0xff]  }
 0x2a7   :  { %6033 = vmatpush2.bf16.msra.mxu1 %v9165_v56  ;;  %6003 = vmatprep.subr.bf16.mxu0 %v9170_v59  ;;  %v9221_v59 = vld [vmem:[%s13316_s7 + $0x15fc] ss:$24 sps:$4 sm:$0xff]  }
 0x2a8   :  { %6034 = vmatprep.subr.bf16.mxu1 %v9173_v60 }
 0x2aa   :  { %6004 = vmatpush2.bf16.msra.mxu0 %v9168_v38 }
 0x2ab   :  { %6035 = vmatpush2.bf16.msra.mxu1 %v9171_v61  ;;  %6055 = vmatprep.subr.bf16.mxu0 %v9179_v63  ;;  %v9216_v61 = vld [vmem:[%s13316_s7 + $0x1208] ss:$24 sps:$4 sm:$0xff]   ;;  %v9219_v63 = vld [vmem:[%s13316_s7 + $0x15f8] ss:$24 sps:$4 sm:$0xff]  }
 0x2ac   :  { %6036 = vmatprep.subr.bf16.mxu1 %v9176_v1  ;;  %v9224_v1 = vld [vmem:[%s13316_s7 + $0x14dc] ss:$24 sps:$4 sm:$0xff]  }
 0x2ad   :  { %v5761_v13 = vpop.f32.mrf.mxu0  ;;  %6006 = vmatmul.mubr.bf16.vlgmr.msra.gmra.mxu0 %v10974_v10 }
 0x2ae   :  { %v5762_v15 = vadd.f32 %v5761_v13, %v11671_v62  ;;  %6056 = vmatpush1.bf16.msra.mxu0 %v9177_v2  ;;  %6087 = vmatprep.mubr.bf16.mxu0 %v10976_v11  ;;  %v9230_v13 = vld [vmem:[%s13316_s7 + $0x14ac] ss:$24 sps:$4 sm:$0xff]  }
 0x2af   :  { %6037 = vmatpush2.bf16.msra.mxu1 %v9174_v4  ;;  %v5763_v18 = vpop.f32.mrf.mxu0  ;;  %6057 = vmatprep.subr.bf16.mxu0 %v9185_v6  ;;  %v9227_v4 = vld [vmem:[%s13316_s7 + $0x15cc] ss:$24 sps:$4 sm:$0xff]   ;;  %v9222_v6 = vld [vmem:[%s13316_s7 + $0x14d8] ss:$24 sps:$4 sm:$0xff]  }
 0x2b0   :  { %v5764_v62 = vadd.f32 %v5763_v18, %v11683_v5  ;;  %6038 = vmatprep.subr.bf16.mxu1 %v9182_v7  ;;  %v9197_v5 = vld [vmem:[%s13316_s7 + $0x12cc] ss:$24 sps:$4 sm:$0xff]   ;;  %v9225_v7 = vld [vmem:[%s13316_s7 + $0x15c8] ss:$24 sps:$4 sm:$0xff]   ;;  %v9231_v18 = vld [vmem:[%s13316_s7 + $0x1598] ss:$24 sps:$4 sm:$0xff]  }
 0x2b1   :  { %v5765_v26 = vpop.f32.mrf.mxu0 }
 0x2b2   :  { %6058 = vmatpush1.bf16.msra.mxu0 %v9183_v41  ;;  %v9228_v41 = vld [vmem:[%s13316_s7 + $0x14a8] ss:$24 sps:$4 sm:$0xff]   ;;  %v9242_v26 = vld [vmem:[%s13316_s7 + $0x144c] ss:$24 sps:$4 sm:$0xff]  }
 0x2b3   :  { %6039 = vmatpush2.bf16.msra.mxu1 %v9180_v20  ;;  %v5766_v28 = vpop.f32.mrf.mxu0  ;;  %6059 = vmatprep.subr.bf16.mxu0 %v9191_v24  ;;  %v9236_v20 = vld [vmem:[%s13316_s7 + $0x147c] ss:$24 sps:$4 sm:$0xff]   ;;  %v9239_v24 = vld [vmem:[%s13316_s7 + $0x156c] ss:$24 sps:$4 sm:$0xff]  }
 0x2b4   :  { %6040 = vmatprep.subr.bf16.mxu1 %v9188_v32  ;;  %v9237_v32 = vld [vmem:[%s13316_s7 + $0x1568] ss:$24 sps:$4 sm:$0xff]  }
 0x2b5   :  { %v9240_v28 = vld [vmem:[%s13316_s7 + $0x1448] ss:$24 sps:$4 sm:$0xff]  }
 0x2b6   :  { %6060 = vmatpush1.bf16.msra.mxu0 %v9189_v27  ;;  %v9245_v27 = vld [vmem:[%s13316_s7 + $0x153c] ss:$24 sps:$4 sm:$0xff]  }
 0x2b7   :  { %6041 = vmatpush2.bf16.msra.mxu1 %v9186_v34  ;;  %6061 = vmatprep.subr.bf16.mxu0 %v9197_v5  ;;  %v9243_v34 = vld [vmem:[%s13316_s7 + $0x1538] ss:$24 sps:$4 sm:$0xff]   ;;  %v9248_v5 = vld [vmem:[%s13316_s7 + $0x141c] ss:$24 sps:$4 sm:$0xff]  }
 0x2b8   :  { %6042 = vmatprep.subr.bf16.mxu1 %v9194_v21  ;;  %v9251_v21 = vld [vmem:[%s13316_s7 + $0x150c] ss:$24 sps:$4 sm:$0xff]  }
 0x2ba   :  { %6062 = vmatpush1.bf16.msra.mxu0 %v9195_v8  ;;  %v9246_v8 = vld [vmem:[%s13316_s7 + $0x1418] ss:$24 sps:$4 sm:$0xff]  }
 0x2bb   :  { %6043 = vmatpush2.bf16.msra.mxu1 %v9192_v36  ;;  %6063 = vmatprep.subr.bf16.mxu0 %v9203_v37  ;;  %v9249_v36 = vld [vmem:[%s13316_s7 + $0x1508] ss:$24 sps:$4 sm:$0xff]   ;;  %v9254_v37 = vld [vmem:[%s13316_s7 + $0x13ec] ss:$24 sps:$4 sm:$0xff]  }
 0x2bc   :  { %6044 = vmatprep.subr.bf16.mxu1 %v9200_v45  ;;  %v9257_v45 = vld [vmem:[%s13316_s7 + $0x17dc] ss:$24 sps:$4 sm:$0xff]  }
 0x2be   :  { %6064 = vmatpush1.bf16.msra.mxu0 %v9201_v46  ;;  %v9252_v46 = vld [vmem:[%s13316_s7 + $0x13e8] ss:$24 sps:$4 sm:$0xff]  }
 0x2bf   :  { %6045 = vmatpush2.bf16.msra.mxu1 %v9198_v3  ;;  %6065 = vmatprep.subr.bf16.mxu0 %v9206_v19  ;;  %v9255_v3 = vld [vmem:[%s13316_s7 + $0x17d8] ss:$24 sps:$4 sm:$0xff]   ;;  %v9260_v19 = vld [vmem:[%s13316_s7 + $0x13bc] ss:$24 sps:$4 sm:$0xff]  }
 0x2c0   :  { %6096 = vmatprep.subr.bf16.mxu1 %v9209_v47  ;;  %v9263_v47 = vld [vmem:[%s13316_s7 + $0x17ac] ss:$24 sps:$4 sm:$0xff]  }
 0x2c2   :  { %v5802_v53 = vpop.f32.mrf.mxu1  ;;  %6047 = vmatmul.mubr.bf16.vlgmr.msra.gmra.mxu1 %v11041_v42  ;;  %6066 = vmatpush1.bf16.msra.mxu0 %v9204_v25  ;;  %v9258_v25 = vld [vmem:[%s13316_s7 + $0x13b8] ss:$24 sps:$4 sm:$0xff]  }
 0x2c3   :  { %v11873_v30 = vadd.f32 %v5802_v53, %v5762_v15  ;;  %6097 = vmatpush1.bf16.msra.mxu1 %v9207_v49  ;;  %6128 = vmatprep.mubr.bf16.mxu1 %v11049_v35  ;;  %v9233_v15 = vld [vmem:[%s13316_s7 + $0x159c] ss:$24 sps:$4 sm:$0xff]   ;;  %v9261_v49 = vld [vmem:[%s13316_s7 + $0x17a8] ss:$24 sps:$4 sm:$0xff]  }
 0x2c4   :  { %v5804_v56 = vpop.f32.mrf.mxu1  ;;  %6067 = vmatprep.subr.bf16.mxu0 %v9212_v0  ;;  %6098 = vmatprep.subr.bf16.mxu1 %v9215_v50  ;;  %v9266_v0 = vld [vmem:[%s13316_s7 + $0x138c] ss:$24 sps:$4 sm:$0xff]   ;;  %v9269_v50 = vld [vmem:[%s13316_s7 + $0x177c] ss:$24 sps:$4 sm:$0xff]   ;;  %v9264_v53 = vld [vmem:[%s13316_s7 + $0x1388] ss:$24 sps:$4 sm:$0xff]  }
 0x2c5   :  { %v11885_v60 = vadd.f32 %v5804_v56, %v5764_v62  ;;  %v9234_v62 = vld [vmem:[%s13316_s7 + $0x1478] ss:$24 sps:$4 sm:$0xff]  }
 0x2c6   :  { %v5806_v38 = vpop.f32.mrf.mxu1  ;;  %6068 = vmatpush1.bf16.msra.mxu0 %v9210_v54  ;;  %v9267_v54 = vld [vmem:[%s13316_s7 + $0x1778] ss:$24 sps:$4 sm:$0xff]  }
 0x2c7   :  { %6099 = vmatpush1.bf16.msra.mxu1 %v9213_v17  ;;  %6069 = vmatprep.subr.bf16.mxu0 %v9218_v55  ;;  %v9275_v17 = vld [vmem:[%s13316_s7 + $0x164] ss:$24 sps:$4 sm:$0xff]   ;;  %v9273_v56 = vld [vmem:[%s13316_s7 + $0x160] ss:$24 sps:$4 sm:$0xff]   ;;  %v9281_v38 = vld [vmem:[%s13316_s7 + $0x134] ss:$24 sps:$4 sm:$0xff]  }
 0x2c8   :  { %v5807_v2 = vpop.f32.mrf.mxu1  ;;  %6100 = vmatprep.subr.bf16.mxu1 %v9221_v59  ;;  %v9272_v55 = vld [vmem:[%s13316_s7 + $0x174c] ss:$24 sps:$4 sm:$0xff]   ;;  %v9270_v59 = vld [vmem:[%s13316_s7 + $0x1748] ss:$24 sps:$4 sm:$0xff]  }
 0x2ca   :  { %6070 = vmatpush1.bf16.msra.mxu0 %v9216_v61  ;;  %v9278_v61 = vld [vmem:[%s13316_s7 + $0x171c] ss:$24 sps:$4 sm:$0xff]  }
 0x2cb   :  { %6101 = vmatpush1.bf16.msra.mxu1 %v9219_v63  ;;  %6071 = vmatprep.subr.bf16.mxu0 %v9224_v1  ;;  %v9279_v1 = vld [vmem:[%s13316_s7 + $0x130] ss:$24 sps:$4 sm:$0xff]  }
 0x2cc   :  { %6102 = vmatprep.subr.bf16.mxu1 %v9227_v4  ;;  %v9276_v4 = vld [vmem:[%s13316_s7 + $0x1718] ss:$24 sps:$4 sm:$0xff]  }
 0x2ce   :  { %6072 = vmatpush2.bf16.msra.mxu0 %v9222_v6  ;;  %v9287_v6 = vld [vmem:[%s13316_s7 + $0x104] ss:$24 sps:$4 sm:$0xff]  }
 0x2cf   :  { %6103 = vmatpush1.bf16.msra.mxu1 %v9225_v7  ;;  %6073 = vmatprep.subr.bf16.mxu0 %v9230_v13  ;;  %v9285_v13 = vld [vmem:[%s13316_s7 + $0x100] ss:$24 sps:$4 sm:$0xff]  }
 0x2d0   :  { %6104 = vmatprep.subr.bf16.mxu1 %v9233_v15 }
 0x2d2   :  { %6074 = vmatpush2.bf16.msra.mxu0 %v9228_v41  ;;  %v9282_v41 = vld [vmem:[%s13316_s7 + $0x16e8] ss:$24 sps:$4 sm:$0xff]  }
 0x2d3   :  { %6105 = vmatpush1.bf16.msra.mxu1 %v9231_v18  ;;  %6075 = vmatprep.subr.bf16.mxu0 %v9236_v20  ;;  %v9293_v18 = vld [vmem:[%s13316_s7 + $0xd4] ss:$24 sps:$4 sm:$0xff]  }
 0x2d4   :  { %6106 = vmatprep.subr.bf16.mxu1 %v9239_v24  ;;  %v9290_v20 = vld [vmem:[%s13316_s7 + $0x16bc] ss:$24 sps:$4 sm:$0xff]   ;;  %v9291_v24 = vld [vmem:[%s13316_s7 + $0xd0] ss:$24 sps:$4 sm:$0xff]  }
 0x2d6   :  { %6076 = vmatpush2.bf16.msra.mxu0 %v9234_v62  ;;  %v9288_v62 = vld [vmem:[%s13316_s7 + $0x16b8] ss:$24 sps:$4 sm:$0xff]  }
 0x2d7   :  { %6107 = vmatpush1.bf16.msra.mxu1 %v9237_v32  ;;  %6077 = vmatprep.subr.bf16.mxu0 %v9242_v26  ;;  %v9299_v32 = vld [vmem:[%s13316_s7 + $0xa4] ss:$24 sps:$4 sm:$0xff]  }
 0x2d8   :  { %6108 = vmatprep.subr.bf16.mxu1 %v9245_v27  ;;  %v9296_v26 = vld [vmem:[%s13316_s7 + $0x168c] ss:$24 sps:$4 sm:$0xff]   ;;  %v9297_v27 = vld [vmem:[%s13316_s7 + $0xa0] ss:$24 sps:$4 sm:$0xff]  }
 0x2da   :  { %6078 = vmatpush2.bf16.msra.mxu0 %v9240_v28  ;;  %v9294_v28 = vld [vmem:[%s13316_s7 + $0x1688] ss:$24 sps:$4 sm:$0xff]  }
 0x2db   :  { %6109 = vmatpush1.bf16.msra.mxu1 %v9243_v34  ;;  %6079 = vmatprep.subr.bf16.mxu0 %v9248_v5  ;;  %v9302_v34 = vld [vmem:[%s13316_s7 + $0x74] ss:$24 sps:$4 sm:$0xff]   ;;  %v9305_v5 = vld [vmem:[%s13316_s7 + $0x464] ss:$24 sps:$4 sm:$0xff]  }
 0x2dc   :  { %6110 = vmatprep.subr.bf16.mxu1 %v9251_v21  ;;  %v9300_v21 = vld [vmem:[%s13316_s7 + $0x70] ss:$24 sps:$4 sm:$0xff]  }
 0x2de   :  { %6080 = vmatpush2.bf16.msra.mxu0 %v9246_v8  ;;  %v9303_v8 = vld [vmem:[%s13316_s7 + $0x460] ss:$24 sps:$4 sm:$0xff]  }
 0x2df   :  { %6111 = vmatpush1.bf16.msra.mxu1 %v9249_v36  ;;  %6081 = vmatprep.subr.bf16.mxu0 %v9254_v37  ;;  %v9308_v36 = vld [vmem:[%s13316_s7 + $0x44] ss:$24 sps:$4 sm:$0xff]   ;;  %v9311_v37 = vld [vmem:[%s13316_s7 + $0x434] ss:$24 sps:$4 sm:$0xff]  }
 0x2e0   :  { %6112 = vmatprep.subr.bf16.mxu1 %v9257_v45 }
 0x2e2   :  { %6082 = vmatpush2.bf16.msra.mxu0 %v9252_v46 }
 0x2e3   :  { %6113 = vmatpush2.bf16.msra.mxu1 %v9255_v3  ;;  %6083 = vmatprep.subr.bf16.mxu0 %v9260_v19  ;;  %v9306_v3 = vld [vmem:[%s13316_s7 + $0x40] ss:$24 sps:$4 sm:$0xff]  }
 0x2e4   :  { %6114 = vmatprep.subr.bf16.mxu1 %v9263_v47 }
 0x2e6   :  { %6084 = vmatpush2.bf16.msra.mxu0 %v9258_v25  ;;  %v9309_v25 = vld [vmem:[%s13316_s7 + $0x430] ss:$24 sps:$4 sm:$0xff]  }
 0x2e7   :  { %6115 = vmatpush2.bf16.msra.mxu1 %v9261_v49  ;;  %6085 = vmatprep.subr.bf16.mxu0 %v9266_v0 }
 0x2e8   :  { %6116 = vmatprep.subr.bf16.mxu1 %v9269_v50 }
 0x2ea   :  { %6086 = vmatpush2.bf16.msra.mxu0 %v9264_v53  ;;  %v9315_v53 = vld [vmem:[%s13316_s7 + $0x400] ss:$24 sps:$4 sm:$0xff]  }
 0x2eb   :  { %6117 = vmatpush2.bf16.msra.mxu1 %v9267_v54  ;;  %6137 = vmatprep.subr.bf16.mxu0 %v9275_v17  ;;  %v9320_v54 = vld [vmem:[%s13316_s7 + $0x2e4] ss:$24 sps:$4 sm:$0xff]  }
 0x2ec   :  { %6118 = vmatprep.subr.bf16.mxu1 %v9272_v55  ;;  %v9323_v55 = vld [vmem:[%s13316_s7 + $0x3d4] ss:$24 sps:$4 sm:$0xff]  }
 0x2ed   :  { %v5843_v63 = vpop.f32.mrf.mxu0  ;;  %6088 = vmatmul.mubr.bf16.vlgmr.msra.gmra.mxu0 %v11182_v44 }
 0x2ee   :  { %6138 = vmatpush1.bf16.msra.mxu0 %v9273_v56  ;;  %6169 = vmatprep.mubr.bf16.mxu0 %v10383_v39  ;;  %v9284_v39 = vld [vmem:[%s13316_s7 + $0x16ec] ss:$24 sps:$4 sm:$0xff]   ;;  %v5844_v45 = vadd.f32 %v5843_v63, %v11164_v33  ;;  %v9318_v56 = vld [vmem:[%s13316_s7 + $0x2e0] ss:$24 sps:$4 sm:$0xff]   ;;  %v9324_v63 = vld [vmem:[%s13316_s7 + $0x2b0] ss:$24 sps:$4 sm:$0xff]  }
 0x2ef   :  { %6119 = vmatpush2.bf16.msra.mxu1 %v9270_v59  ;;  %v5845_v2 = vpop.f32.mrf.mxu0  ;;  %6139 = vmatprep.subr.bf16.mxu0 %v9281_v38  ;;  %v9314_v33 = vld [vmem:[%s13316_s7 + $0x14] ss:$24 sps:$4 sm:$0xff]   ;;  %v9321_v59 = vld [vmem:[%s13316_s7 + $0x3d0] ss:$24 sps:$4 sm:$0xff]  }
 0x2f0   :  { %6120 = vmatprep.subr.bf16.mxu1 %v9278_v61  ;;  %v5846_v19 = vadd.f32 %v5845_v2, %v11178_v40  ;;  %v9317_v40 = vld [vmem:[%s13316_s7 + $0x404] ss:$24 sps:$4 sm:$0xff]   ;;  %v9326_v38 = vld [vmem:[%s13316_s7 + $0x2b4] ss:$24 sps:$4 sm:$0xff]  }
 0x2f1   :  { %v5847_v7 = vpop.f32.mrf.mxu0  ;;  %v9329_v61 = vld [vmem:[%s13316_s7 + $0x3a4] ss:$24 sps:$4 sm:$0xff]  }
 0x2f2   :  { %6140 = vmatpush1.bf16.msra.mxu0 %v9279_v1  ;;  %v9327_v1 = vld [vmem:[%s13316_s7 + $0x3a0] ss:$24 sps:$4 sm:$0xff]   ;;  %v9332_v2 = vld [vmem:[%s13316_s7 + $0x284] ss:$24 sps:$4 sm:$0xff]   ;;  %v9338_v7 = vld [vmem:[%s13316_s7 + $0x254] ss:$24 sps:$4 sm:$0xff]  }
 0x2f3   :  { %6121 = vmatpush2.bf16.msra.mxu1 %v9276_v4  ;;  %v5848_v15 = vpop.f32.mrf.mxu0  ;;  %6141 = vmatprep.subr.bf16.mxu0 %v9287_v6  ;;  %v9335_v4 = vld [vmem:[%s13316_s7 + $0x374] ss:$24 sps:$4 sm:$0xff]   ;;  %v9330_v6 = vld [vmem:[%s13316_s7 + $0x280] ss:$24 sps:$4 sm:$0xff]  }
 0x2f4   :  { %6122 = vmatprep.subr.bf16.mxu1 %v9284_v39  ;;  %v9333_v39 = vld [vmem:[%s13316_s7 + $0x370] ss:$24 sps:$4 sm:$0xff]  }
 0x2f5   :  { %v9336_v15 = vld [vmem:[%s13316_s7 + $0x250] ss:$24 sps:$4 sm:$0xff]  }
 0x2f6   :  { %6142 = vmatpush1.bf16.msra.mxu0 %v9285_v13  ;;  %v9341_v13 = vld [vmem:[%s13316_s7 + $0x344] ss:$24 sps:$4 sm:$0xff]  }
 0x2f7   :  { %6123 = vmatpush2.bf16.msra.mxu1 %v9282_v41  ;;  %6143 = vmatprep.subr.bf16.mxu0 %v9293_v18  ;;  %v9339_v41 = vld [vmem:[%s13316_s7 + $0x340] ss:$24 sps:$4 sm:$0xff]   ;;  %v9344_v18 = vld [vmem:[%s13316_s7 + $0x224] ss:$24 sps:$4 sm:$0xff]  }
 0x2f8   :  { %6124 = vmatprep.subr.bf16.mxu1 %v9290_v20  ;;  %v9347_v20 = vld [vmem:[%s13316_s7 + $0x314] ss:$24 sps:$4 sm:$0xff]  }
 0x2fa   :  { %6144 = vmatpush1.bf16.msra.mxu0 %v9291_v24  ;;  %v9342_v24 = vld [vmem:[%s13316_s7 + $0x220] ss:$24 sps:$4 sm:$0xff]  }
 0x2fb   :  { %6125 = vmatpush2.bf16.msra.mxu1 %v9288_v62  ;;  %6145 = vmatprep.subr.bf16.mxu0 %v9299_v32  ;;  %v9345_v62 = vld [vmem:[%s13316_s7 + $0x310] ss:$24 sps:$4 sm:$0xff]   ;;  %v9350_v32 = vld [vmem:[%s13316_s7 + $0x1f4] ss:$24 sps:$4 sm:$0xff]  }
 0x2fc   :  { %6126 = vmatprep.subr.bf16.mxu1 %v9296_v26  ;;  %v9353_v26 = vld [vmem:[%s13316_s7 + $0x5e4] ss:$24 sps:$4 sm:$0xff]  }
 0x2fe   :  { %6146 = vmatpush1.bf16.msra.mxu0 %v9297_v27  ;;  %v9348_v27 = vld [vmem:[%s13316_s7 + $0x1f0] ss:$24 sps:$4 sm:$0xff]  }
 0x2ff   :  { %6127 = vmatpush2.bf16.msra.mxu1 %v9294_v28  ;;  %6147 = vmatprep.subr.bf16.mxu0 %v9302_v34  ;;  %v9351_v28 = vld [vmem:[%s13316_s7 + $0x5e0] ss:$24 sps:$4 sm:$0xff]   ;;  %v9356_v34 = vld [vmem:[%s13316_s7 + $0x1c4] ss:$24 sps:$4 sm:$0xff]  }
 0x300   :  { %6178 = vmatprep.subr.bf16.mxu1 %v9305_v5  ;;  %v9359_v5 = vld [vmem:[%s13316_s7 + $0x5b4] ss:$24 sps:$4 sm:$0xff]  }
 0x302   :  { %v5884_v46 = vpop.f32.mrf.mxu1  ;;  %6129 = vmatmul.mubr.bf16.vlgmr.msra.gmra.mxu1 %v11255_v16  ;;  %6148 = vmatpush1.bf16.msra.mxu0 %v9300_v21  ;;  %v9354_v21 = vld [vmem:[%s13316_s7 + $0x1c0] ss:$24 sps:$4 sm:$0xff]  }
 0x303   :  { %v12075_v47 = vadd.f32 %v5884_v46, %v5844_v45  ;;  %6179 = vmatpush1.bf16.msra.mxu1 %v9303_v8  ;;  %6210 = vmatprep.mubr.bf16.mxu1 %v10395_v43  ;;  %v9312_v43 = vld [vmem:[%s13316_s7 + $0x10] ss:$24 sps:$4 sm:$0xff]   ;;  %v9363_v46 = vld [vmem:[%s13316_s7 + $0x580] ss:$24 sps:$4 sm:$0xff]  }
 0x304   :  { %v5886_v49 = vpop.f32.mrf.mxu1  ;;  %6149 = vmatprep.subr.bf16.mxu0 %v9308_v36  ;;  %6180 = vmatprep.subr.bf16.mxu1 %v9311_v37  ;;  %v9357_v8 = vld [vmem:[%s13316_s7 + $0x5b0] ss:$24 sps:$4 sm:$0xff]   ;;  %v9362_v36 = vld [vmem:[%s13316_s7 + $0x194] ss:$24 sps:$4 sm:$0xff]   ;;  %v9365_v37 = vld [vmem:[%s13316_s7 + $0x584] ss:$24 sps:$4 sm:$0xff]  }
 0x305   :  { %v12087_v0 = vadd.f32 %v5886_v49, %v5846_v19  ;;  %v9360_v45 = vld [vmem:[%s13316_s7 + $0x190] ss:$24 sps:$4 sm:$0xff]   ;;  %v9368_v19 = vld [vmem:[%s13316_s7 + $0x554] ss:$24 sps:$4 sm:$0xff]  }
 0x306   :  { %v5888_v50 = vpop.f32.mrf.mxu1  ;;  %6150 = vmatpush1.bf16.msra.mxu0 %v9306_v3  ;;  %v9371_v3 = vld [vmem:[%s13316_s7 + $0x764] ss:$24 sps:$4 sm:$0xff]   ;;  %v9377_v49 = vld [vmem:[%s13316_s7 + $0x734] ss:$24 sps:$4 sm:$0xff]  }
 0x307   :  { %6181 = vmatpush1.bf16.msra.mxu1 %v9309_v25  ;;  %6151 = vmatprep.subr.bf16.mxu0 %v9314_v33  ;;  %v9369_v25 = vld [vmem:[%s13316_s7 + $0x760] ss:$24 sps:$4 sm:$0xff]   ;;  %v9366_v33 = vld [vmem:[%s13316_s7 + $0x550] ss:$24 sps:$4 sm:$0xff]  }
 0x308   :  { %v5889_v17 = vpop.f32.mrf.mxu1  ;;  %6182 = vmatprep.subr.bf16.mxu1 %v9317_v40  ;;  %v9374_v40 = vld [vmem:[%s13316_s7 + $0x524] ss:$24 sps:$4 sm:$0xff]  }
 0x309   :  { %v9372_v17 = vld [vmem:[%s13316_s7 + $0x520] ss:$24 sps:$4 sm:$0xff]  }
 0x30a   :  { %6152 = vmatpush1.bf16.msra.mxu0 %v9312_v43 }
 0x30b   :  { %6183 = vmatpush1.bf16.msra.mxu1 %v9315_v53  ;;  %6153 = vmatprep.subr.bf16.mxu0 %v9320_v54  ;;  %v9375_v53 = vld [vmem:[%s13316_s7 + $0x730] ss:$24 sps:$4 sm:$0xff]  }
 0x30c   :  { %6184 = vmatprep.subr.bf16.mxu1 %v9323_v55 }
 0x30e   :  { %6154 = vmatpush2.bf16.msra.mxu0 %v9318_v56  ;;  %v9381_v56 = vld [vmem:[%s13316_s7 + $0x700] ss:$24 sps:$4 sm:$0xff]  }
 0x30f   :  { %6185 = vmatpush1.bf16.msra.mxu1 %v9321_v59  ;;  %6155 = vmatprep.subr.bf16.mxu0 %v9326_v38  ;;  %v9378_v38 = vld [vmem:[%s13316_s7 + $0x4f0] ss:$24 sps:$4 sm:$0xff]  }
 0x310   :  { %6186 = vmatprep.subr.bf16.mxu1 %v9329_v61  ;;  %v9386_v61 = vld [vmem:[%s13316_s7 + $0x4c4] ss:$24 sps:$4 sm:$0xff]  }
 0x312   :  { %6156 = vmatpush2.bf16.msra.mxu0 %v9324_v63  ;;  %v9387_v63 = vld [vmem:[%s13316_s7 + $0x6d0] ss:$24 sps:$4 sm:$0xff]  }
 0x313   :  { %6187 = vmatpush1.bf16.msra.mxu1 %v9327_v1  ;;  %6157 = vmatprep.subr.bf16.mxu0 %v9332_v2  ;;  %v9384_v1 = vld [vmem:[%s13316_s7 + $0x4c0] ss:$24 sps:$4 sm:$0xff]   ;;  %v9395_v2 = vld [vmem:[%s13316_s7 + $0x6a4] ss:$24 sps:$4 sm:$0xff]  }
 0x314   :  { %6188 = vmatprep.subr.bf16.mxu1 %v9335_v4  ;;  %v9392_v4 = vld [vmem:[%s13316_s7 + $0x494] ss:$24 sps:$4 sm:$0xff]  }
 0x316   :  { %6158 = vmatpush2.bf16.msra.mxu0 %v9330_v6  ;;  %v9393_v6 = vld [vmem:[%s13316_s7 + $0x6a0] ss:$24 sps:$4 sm:$0xff]  }
 0x317   :  { %6189 = vmatpush1.bf16.msra.mxu1 %v9333_v39  ;;  %6159 = vmatprep.subr.bf16.mxu0 %v9338_v7  ;;  %v9390_v39 = vld [vmem:[%s13316_s7 + $0x490] ss:$24 sps:$4 sm:$0xff]   ;;  %v9398_v7 = vld [vmem:[%s13316_s7 + $0x674] ss:$24 sps:$4 sm:$0xff]  }
 0x318   :  { %6190 = vmatprep.subr.bf16.mxu1 %v9341_v13  ;;  %v9401_v13 = vld [vmem:[%s13316_s7 + $0xa64] ss:$24 sps:$4 sm:$0xff]  }
 0x31a   :  { %6160 = vmatpush2.bf16.msra.mxu0 %v9336_v15  ;;  %v9396_v15 = vld [vmem:[%s13316_s7 + $0x670] ss:$24 sps:$4 sm:$0xff]  }
 0x31b   :  { %6191 = vmatpush1.bf16.msra.mxu1 %v9339_v41  ;;  %6161 = vmatprep.subr.bf16.mxu0 %v9344_v18  ;;  %v9399_v41 = vld [vmem:[%s13316_s7 + $0xa60] ss:$24 sps:$4 sm:$0xff]   ;;  %v9404_v18 = vld [vmem:[%s13316_s7 + $0x644] ss:$24 sps:$4 sm:$0xff]  }
 0x31c   :  { %6192 = vmatprep.subr.bf16.mxu1 %v9347_v20  ;;  %v9407_v20 = vld [vmem:[%s13316_s7 + $0xa34] ss:$24 sps:$4 sm:$0xff]  }
 0x31e   :  { %6162 = vmatpush2.bf16.msra.mxu0 %v9342_v24 }
 0x31f   :  { %6193 = vmatpush1.bf16.msra.mxu1 %v9345_v62  ;;  %6163 = vmatprep.subr.bf16.mxu0 %v9350_v32  ;;  %v9402_v62 = vld [vmem:[%s13316_s7 + $0x640] ss:$24 sps:$4 sm:$0xff]  }
 0x320   :  { %6194 = vmatprep.subr.bf16.mxu1 %v9353_v26  ;;  %v9405_v26 = vld [vmem:[%s13316_s7 + $0xa30] ss:$24 sps:$4 sm:$0xff]  }
 0x322   :  { %6164 = vmatpush2.bf16.msra.mxu0 %v9348_v27  ;;  %v9410_v27 = vld [vmem:[%s13316_s7 + $0x614] ss:$24 sps:$4 sm:$0xff]  }
 0x323   :  { %6195 = vmatpush2.bf16.msra.mxu1 %v9351_v28  ;;  %6165 = vmatprep.subr.bf16.mxu0 %v9356_v34 }
 0x324   :  { %6196 = vmatprep.subr.bf16.mxu1 %v9359_v5 }
 0x326   :  { %6166 = vmatpush2.bf16.msra.mxu0 %v9354_v21  ;;  %v9411_v21 = vld [vmem:[%s13316_s7 + $0xa00] ss:$24 sps:$4 sm:$0xff]  }
 0x327   :  { %6197 = vmatpush2.bf16.msra.mxu1 %v9357_v8  ;;  %6167 = vmatprep.subr.bf16.mxu0 %v9362_v36  ;;  %v9416_v8 = vld [vmem:[%s13316_s7 + $0x8e4] ss:$24 sps:$4 sm:$0xff]  }
 0x328   :  { %6198 = vmatprep.subr.bf16.mxu1 %v9365_v37  ;;  %v9419_v37 = vld [vmem:[%s13316_s7 + $0x9d4] ss:$24 sps:$4 sm:$0xff]  }
 0x32a   :  { %6168 = vmatpush2.bf16.msra.mxu0 %v9360_v45  ;;  %v9414_v45 = vld [vmem:[%s13316_s7 + $0x8e0] ss:$24 sps:$4 sm:$0xff]  }
 0x32b   :  { %6199 = vmatpush2.bf16.msra.mxu1 %v9363_v46  ;;  %6219 = vmatprep.subr.bf16.mxu0 %v9371_v3  ;;  %v9417_v46 = vld [vmem:[%s13316_s7 + $0x9d0] ss:$24 sps:$4 sm:$0xff]   ;;  %v9422_v3 = vld [vmem:[%s13316_s7 + $0x8b4] ss:$24 sps:$4 sm:$0xff]  }
 0x32c   :  { %6200 = vmatprep.subr.bf16.mxu1 %v9368_v19  ;;  %v9425_v19 = vld [vmem:[%s13316_s7 + $0x9a4] ss:$24 sps:$4 sm:$0xff]  }
 0x32d   :  { %v5925_v50 = vpop.f32.mrf.mxu0  ;;  %6170 = vmatmul.mubr.bf16.vlgmr.msra.gmra.mxu0 %v10538_v29  ;;  %v9383_v29 = vld [vmem:[%s13316_s7 + $0x704] ss:$24 sps:$4 sm:$0xff]  }
 0x32e   :  { %v5926_v43 = vadd.f32 %v5925_v50, %v12075_v47  ;;  %6220 = vmatpush1.bf16.msra.mxu0 %v9369_v25  ;;  %6251 = vmatprep.mubr.bf16.mxu0 %v10540_v31  ;;  %v9380_v31 = vld [vmem:[%s13316_s7 + $0x4f4] ss:$24 sps:$4 sm:$0xff]   ;;  %v9420_v25 = vld [vmem:[%s13316_s7 + $0x8b0] ss:$24 sps:$4 sm:$0xff]   ;;  %v9426_v50 = vld [vmem:[%s13316_s7 + $0x880] ss:$24 sps:$4 sm:$0xff]  }
 0x32f   :  { %6201 = vmatpush2.bf16.msra.mxu1 %v9366_v33  ;;  %v5927_v54 = vpop.f32.mrf.mxu0  ;;  %6221 = vmatprep.subr.bf16.mxu0 %v9377_v49  ;;  %v9423_v33 = vld [vmem:[%s13316_s7 + $0x9a0] ss:$24 sps:$4 sm:$0xff]   ;;  %v9428_v49 = vld [vmem:[%s13316_s7 + $0x884] ss:$24 sps:$4 sm:$0xff]  }
 0x330   :  { %v5928_v47 = vadd.f32 %v5927_v54, %v12087_v0  ;;  %6202 = vmatprep.subr.bf16.mxu1 %v9374_v40  ;;  %v9389_v0 = vld [vmem:[%s13316_s7 + $0x6d4] ss:$24 sps:$4 sm:$0xff]   ;;  %v9437_v54 = vld [vmem:[%s13316_s7 + $0x944] ss:$24 sps:$4 sm:$0xff]  }
 0x331   :  { %v5929_v55 = vpop.f32.mrf.mxu0  ;;  %v9431_v40 = vld [vmem:[%s13316_s7 + $0x974] ss:$24 sps:$4 sm:$0xff]  }
 0x332   :  { %6222 = vmatpush1.bf16.msra.mxu0 %v9375_v53  ;;  %v9434_v53 = vld [vmem:[%s13316_s7 + $0x854] ss:$24 sps:$4 sm:$0xff]   ;;  %v9438_v55 = vld [vmem:[%s13316_s7 + $0x820] ss:$24 sps:$4 sm:$0xff]  }
 0x333   :  { %6203 = vmatpush2.bf16.msra.mxu1 %v9372_v17  ;;  %v5930_v59 = vpop.f32.mrf.mxu0  ;;  %6223 = vmatprep.subr.bf16.mxu0 %v9383_v29  ;;  %v9432_v17 = vld [vmem:[%s13316_s7 + $0x850] ss:$24 sps:$4 sm:$0xff]   ;;  %v9435_v29 = vld [vmem:[%s13316_s7 + $0x940] ss:$24 sps:$4 sm:$0xff]  }
 0x334   :  { %6204 = vmatprep.subr.bf16.mxu1 %v9380_v31  ;;  %v9443_v31 = vld [vmem:[%s13316_s7 + $0x914] ss:$24 sps:$4 sm:$0xff]  }
 0x335   :  { %v9446_v59 = vld [vmem:[%s13316_s7 + $0x7f4] ss:$24 sps:$4 sm:$0xff]  }
 0x336   :  { %6224 = vmatpush1.bf16.msra.mxu0 %v9381_v56  ;;  %v9441_v56 = vld [vmem:[%s13316_s7 + $0x910] ss:$24 sps:$4 sm:$0xff]  }
 0x337   :  { %6205 = vmatpush2.bf16.msra.mxu1 %v9378_v38  ;;  %6225 = vmatprep.subr.bf16.mxu0 %v9389_v0  ;;  %v9449_v38 = vld [vmem:[%s13316_s7 + $0xbe4] ss:$24 sps:$4 sm:$0xff]   ;;  %v9444_v0 = vld [vmem:[%s13316_s7 + $0x7f0] ss:$24 sps:$4 sm:$0xff]  }
 0x338   :  { %6206 = vmatprep.subr.bf16.mxu1 %v9386_v61  ;;  %v9447_v61 = vld [vmem:[%s13316_s7 + $0xbe0] ss:$24 sps:$4 sm:$0xff]  }
 0x33a   :  { %6226 = vmatpush1.bf16.msra.mxu0 %v9387_v63  ;;  %v9452_v63 = vld [vmem:[%s13316_s7 + $0x7c4] ss:$24 sps:$4 sm:$0xff]  }
 0x33b   :  { %6207 = vmatpush2.bf16.msra.mxu1 %v9384_v1  ;;  %6227 = vmatprep.subr.bf16.mxu0 %v9395_v2  ;;  %v9455_v1 = vld [vmem:[%s13316_s7 + $0xbb4] ss:$24 sps:$4 sm:$0xff]   ;;  %v9450_v2 = vld [vmem:[%s13316_s7 + $0x7c0] ss:$24 sps:$4 sm:$0xff]  }
 0x33c   :  { %6208 = vmatprep.subr.bf16.mxu1 %v9392_v4  ;;  %v9453_v4 = vld [vmem:[%s13316_s7 + $0xbb0] ss:$24 sps:$4 sm:$0xff]  }
 0x33e   :  { %6228 = vmatpush1.bf16.msra.mxu0 %v9393_v6  ;;  %v9458_v6 = vld [vmem:[%s13316_s7 + $0x794] ss:$24 sps:$4 sm:$0xff]  }
 0x33f   :  { %6209 = vmatpush2.bf16.msra.mxu1 %v9390_v39  ;;  %6229 = vmatprep.subr.bf16.mxu0 %v9398_v7  ;;  %v9461_v39 = vld [vmem:[%s13316_s7 + $0xb84] ss:$24 sps:$4 sm:$0xff]   ;;  %v9456_v7 = vld [vmem:[%s13316_s7 + $0x790] ss:$24 sps:$4 sm:$0xff]  }
 0x340   :  { %6260 = vmatprep.subr.bf16.mxu1 %v9401_v13  ;;  %v9459_v13 = vld [vmem:[%s13316_s7 + $0xb80] ss:$24 sps:$4 sm:$0xff]  }
 0x342   :  { %v5966_v24 = vpop.f32.mrf.mxu1  ;;  %6211 = vmatmul.mubr.bf16.vlgmr.msra.gmra.mxu1 %v10611_v57  ;;  %6230 = vmatpush1.bf16.msra.mxu0 %v9396_v15  ;;  %v9413_v57 = vld [vmem:[%s13316_s7 + $0xa04] ss:$24 sps:$4 sm:$0xff]  }
 0x343   :  { %v12277_v32 = vadd.f32 %v5966_v24, %v5926_v43  ;;  %6261 = vmatpush1.bf16.msra.mxu1 %v9399_v41  ;;  %6292 = vmatprep.mubr.bf16.mxu1 %v10613_v58  ;;  %v9408_v58 = vld [vmem:[%s13316_s7 + $0x610] ss:$24 sps:$4 sm:$0xff]   ;;  %v9467_v15 = vld [vmem:[%s13316_s7 + $0xd64] ss:$24 sps:$4 sm:$0xff]   ;;  %v9464_v41 = vld [vmem:[%s13316_s7 + $0xb54] ss:$24 sps:$4 sm:$0xff]  }
 0x344   :  { %v5968_v28 = vpop.f32.mrf.mxu1  ;;  %6231 = vmatprep.subr.bf16.mxu0 %v9404_v18  ;;  %6262 = vmatprep.subr.bf16.mxu1 %v9407_v20  ;;  %v9429_v43 = vld [vmem:[%s13316_s7 + $0x970] ss:$24 sps:$4 sm:$0xff]   ;;  %v9465_v18 = vld [vmem:[%s13316_s7 + $0xd60] ss:$24 sps:$4 sm:$0xff]   ;;  %v9473_v24 = vld [vmem:[%s13316_s7 + $0xd34] ss:$24 sps:$4 sm:$0xff]  }
 0x345   :  { %v12289_v34 = vadd.f32 %v5968_v28, %v5928_v47  ;;  %v9440_v47 = vld [vmem:[%s13316_s7 + $0x824] ss:$24 sps:$4 sm:$0xff]   ;;  %v9462_v20 = vld [vmem:[%s13316_s7 + $0xb50] ss:$24 sps:$4 sm:$0xff]  }
 0x346   :  { %v5970_v5 = vpop.f32.mrf.mxu1  ;;  %6232 = vmatpush1.bf16.msra.mxu0 %v9402_v62  ;;  %v9470_v62 = vld [vmem:[%s13316_s7 + $0xb24] ss:$24 sps:$4 sm:$0xff]   ;;  %v9471_v28 = vld [vmem:[%s13316_s7 + $0xd30] ss:$24 sps:$4 sm:$0xff]  }
 0x347   :  { %6263 = vmatpush1.bf16.msra.mxu1 %v9405_v26  ;;  %6233 = vmatprep.subr.bf16.mxu0 %v9410_v27  ;;  %v9468_v5 = vld [vmem:[%s13316_s7 + $0xb20] ss:$24 sps:$4 sm:$0xff]  }
 0x348   :  { %v5971_v36 = vpop.f32.mrf.mxu1  ;;  %6264 = vmatprep.subr.bf16.mxu1 %v9413_v57 }
 0x349   :  { %v9474_v36 = vld [vmem:[%s13316_s7 + $0xaf0] ss:$24 sps:$4 sm:$0xff]  }
 0x34a   :  { %6234 = vmatpush1.bf16.msra.mxu0 %v9408_v58 }
 0x34b   :  { %6265 = vmatpush1.bf16.msra.mxu1 %v9411_v21  ;;  %6235 = vmatprep.subr.bf16.mxu0 %v9416_v8  ;;  %v9477_v21 = vld [vmem:[%s13316_s7 + $0xd00] ss:$24 sps:$4 sm:$0xff]  }
 0x34c   :  { %6266 = vmatprep.subr.bf16.mxu1 %v9419_v37  ;;  %v9482_v37 = vld [vmem:[%s13316_s7 + $0xac4] ss:$24 sps:$4 sm:$0xff]  }
 0x34e   :  { %6236 = vmatpush2.bf16.msra.mxu0 %v9414_v45  ;;  %v9483_v45 = vld [vmem:[%s13316_s7 + $0xcd0] ss:$24 sps:$4 sm:$0xff]  }
 0x34f   :  { %6267 = vmatpush1.bf16.msra.mxu1 %v9417_v46  ;;  %6237 = vmatprep.subr.bf16.mxu0 %v9422_v3  ;;  %v9480_v46 = vld [vmem:[%s13316_s7 + $0xac0] ss:$24 sps:$4 sm:$0xff]   ;;  %v9491_v3 = vld [vmem:[%s13316_s7 + $0xca4] ss:$24 sps:$4 sm:$0xff]  }
 0x350   :  { %6268 = vmatprep.subr.bf16.mxu1 %v9425_v19  ;;  %v9488_v19 = vld [vmem:[%s13316_s7 + $0xa94] ss:$24 sps:$4 sm:$0xff]  }
 0x352   :  { %6238 = vmatpush2.bf16.msra.mxu0 %v9420_v25  ;;  %v9489_v25 = vld [vmem:[%s13316_s7 + $0xca0] ss:$24 sps:$4 sm:$0xff]  }
 0x353   :  { %6269 = vmatpush1.bf16.msra.mxu1 %v9423_v33  ;;  %6239 = vmatprep.subr.bf16.mxu0 %v9428_v49  ;;  %v9486_v33 = vld [vmem:[%s13316_s7 + $0xa90] ss:$24 sps:$4 sm:$0xff]   ;;  %v9494_v49 = vld [vmem:[%s13316_s7 + $0xc74] ss:$24 sps:$4 sm:$0xff]  }
 0x354   :  { %6270 = vmatprep.subr.bf16.mxu1 %v9431_v40  ;;  %v9497_v40 = vld [vmem:[%s13316_s7 + $0x1064] ss:$24 sps:$4 sm:$0xff]  }
 0x356   :  { %6240 = vmatpush2.bf16.msra.mxu0 %v9426_v50  ;;  %v9492_v50 = vld [vmem:[%s13316_s7 + $0xc70] ss:$24 sps:$4 sm:$0xff]  }
 0x357   :  { %6271 = vmatpush1.bf16.msra.mxu1 %v9429_v43  ;;  %6241 = vmatprep.subr.bf16.mxu0 %v9434_v53  ;;  %v9495_v43 = vld [vmem:[%s13316_s7 + $0x1060] ss:$24 sps:$4 sm:$0xff]   ;;  %v9500_v53 = vld [vmem:[%s13316_s7 + $0xc44] ss:$24 sps:$4 sm:$0xff]  }
 0x358   :  { %6272 = vmatprep.subr.bf16.mxu1 %v9437_v54  ;;  %v9503_v54 = vld [vmem:[%s13316_s7 + $0x1034] ss:$24 sps:$4 sm:$0xff]  }
 0x35a   :  { %6242 = vmatpush2.bf16.msra.mxu0 %v9432_v17 }
 0x35b   :  { %6273 = vmatpush1.bf16.msra.mxu1 %v9435_v29  ;;  %6243 = vmatprep.subr.bf16.mxu0 %v9440_v47  ;;  %v9498_v29 = vld [vmem:[%s13316_s7 + $0xc40] ss:$24 sps:$4 sm:$0xff]  }
 0x35c   :  { %6274 = vmatprep.subr.bf16.mxu1 %v9443_v31  ;;  %v9501_v31 = vld [vmem:[%s13316_s7 + $0x1030] ss:$24 sps:$4 sm:$0xff]  }
 0x35e   :  { %6244 = vmatpush2.bf16.msra.mxu0 %v9438_v55  ;;  %v9506_v55 = vld [vmem:[%s13316_s7 + $0xc14] ss:$24 sps:$4 sm:$0xff]  }
 0x35f   :  { %6275 = vmatpush1.bf16.msra.mxu1 %v9441_v56  ;;  %6245 = vmatprep.subr.bf16.mxu0 %v9446_v59 }
 0x360   :  { %6276 = vmatprep.subr.bf16.mxu1 %v9449_v38 }
 0x362   :  { %6246 = vmatpush2.bf16.msra.mxu0 %v9444_v0  ;;  %v9507_v0 = vld [vmem:[%s13316_s7 + $0x1000] ss:$24 sps:$4 sm:$0xff]  }
 0x363   :  { %6277 = vmatpush2.bf16.msra.mxu1 %v9447_v61  ;;  %6247 = vmatprep.subr.bf16.mxu0 %v9452_v63  ;;  %v9512_v61 = vld [vmem:[%s13316_s7 + $0xee4] ss:$24 sps:$4 sm:$0xff]  }
 0x364   :  { %6278 = vmatprep.subr.bf16.mxu1 %v9455_v1  ;;  %v9515_v1 = vld [vmem:[%s13316_s7 + $0xfd4] ss:$24 sps:$4 sm:$0xff]  }
 0x366   :  { %6248 = vmatpush2.bf16.msra.mxu0 %v9450_v2  ;;  %v9510_v2 = vld [vmem:[%s13316_s7 + $0xee0] ss:$24 sps:$4 sm:$0xff]  }
 0x367   :  { %6279 = vmatpush2.bf16.msra.mxu1 %v9453_v4  ;;  %6249 = vmatprep.subr.bf16.mxu0 %v9458_v6  ;;  %v9513_v4 = vld [vmem:[%s13316_s7 + $0xfd0] ss:$24 sps:$4 sm:$0xff]   ;;  %v9518_v6 = vld [vmem:[%s13316_s7 + $0xeb4] ss:$24 sps:$4 sm:$0xff]  }
 0x368   :  { %6280 = vmatprep.subr.bf16.mxu1 %v9461_v39  ;;  %v9521_v39 = vld [vmem:[%s13316_s7 + $0xfa4] ss:$24 sps:$4 sm:$0xff]  }
 0x36a   :  { %6250 = vmatpush2.bf16.msra.mxu0 %v9456_v7  ;;  %v9516_v7 = vld [vmem:[%s13316_s7 + $0xeb0] ss:$24 sps:$4 sm:$0xff]  }
 0x36b   :  { %6281 = vmatpush2.bf16.msra.mxu1 %v9459_v13  ;;  %6301 = vmatprep.subr.bf16.mxu0 %v9467_v15  ;;  %v9519_v13 = vld [vmem:[%s13316_s7 + $0xfa0] ss:$24 sps:$4 sm:$0xff]   ;;  %v9524_v15 = vld [vmem:[%s13316_s7 + $0xe84] ss:$24 sps:$4 sm:$0xff]  }
 0x36c   :  { %6282 = vmatprep.subr.bf16.mxu1 %v9464_v41  ;;  %v9527_v41 = vld [vmem:[%s13316_s7 + $0xf74] ss:$24 sps:$4 sm:$0xff]  }
 0x36d   :  { %v6007_v26 = vpop.f32.mrf.mxu0  ;;  %6252 = vmatmul.mubr.bf16.vlgmr.msra.gmra.mxu0 %v10756_v51  ;;  %v9479_v51 = vld [vmem:[%s13316_s7 + $0xd04] ss:$24 sps:$4 sm:$0xff]  }
 0x36e   :  { %v6008_v27 = vadd.f32 %v6007_v26, %v12277_v32  ;;  %6302 = vmatpush1.bf16.msra.mxu0 %v9465_v18  ;;  %6333 = vmatprep.mubr.bf16.mxu0 %v10758_v52  ;;  %v9476_v52 = vld [vmem:[%s13316_s7 + $0xaf4] ss:$24 sps:$4 sm:$0xff]   ;;  %v9522_v18 = vld [vmem:[%s13316_s7 + $0xe80] ss:$24 sps:$4 sm:$0xff]   ;;  %v9528_v26 = vld [vmem:[%s13316_s7 + $0xe50] ss:$24 sps:$4 sm:$0xff]  }
 0x36f   :  { %6283 = vmatpush2.bf16.msra.mxu1 %v9462_v20  ;;  %v6009_v57 = vpop.f32.mrf.mxu0  ;;  %6303 = vmatprep.subr.bf16.mxu0 %v9473_v24  ;;  %v9525_v20 = vld [vmem:[%s13316_s7 + $0xf70] ss:$24 sps:$4 sm:$0xff]   ;;  %v9530_v24 = vld [vmem:[%s13316_s7 + $0xe54] ss:$24 sps:$4 sm:$0xff]  }
 0x370   :  { %v6010_v32 = vadd.f32 %v6009_v57, %v12289_v34  ;;  %6284 = vmatprep.subr.bf16.mxu1 %v9470_v62  ;;  %v9485_v34 = vld [vmem:[%s13316_s7 + $0xcd4] ss:$24 sps:$4 sm:$0xff]   ;;  %v9533_v62 = vld [vmem:[%s13316_s7 + $0xf44] ss:$24 sps:$4 sm:$0xff]  }
 0x371   :  { %v6011_v58 = vpop.f32.mrf.mxu0  ;;  %v9539_v57 = vld [vmem:[%s13316_s7 + $0xf14] ss:$24 sps:$4 sm:$0xff]  }
 0x372   :  { %6304 = vmatpush1.bf16.msra.mxu0 %v9471_v28  ;;  %v9536_v28 = vld [vmem:[%s13316_s7 + $0xe24] ss:$24 sps:$4 sm:$0xff]   ;;  %v9540_v58 = vld [vmem:[%s13316_s7 + $0xdf0] ss:$24 sps:$4 sm:$0xff]  }
 0x373   :  { %6285 = vmatpush2.bf16.msra.mxu1 %v9468_v5  ;;  %v6012_v8 = vpop.f32.mrf.mxu0  ;;  %6305 = vmatprep.subr.bf16.mxu0 %v9479_v51  ;;  %v9534_v5 = vld [vmem:[%s13316_s7 + $0xe20] ss:$24 sps:$4 sm:$0xff]   ;;  %v9537_v51 = vld [vmem:[%s13316_s7 + $0xf10] ss:$24 sps:$4 sm:$0xff]  }
 0x374   :  { %6286 = vmatprep.subr.bf16.mxu1 %v9476_v52  ;;  %v9545_v52 = vld [vmem:[%s13316_s7 + $0x11e4] ss:$24 sps:$4 sm:$0xff]  }
 0x375   :  { %v9548_v8 = vld [vmem:[%s13316_s7 + $0xdc4] ss:$24 sps:$4 sm:$0xff]  }
 0x376   :  { %6306 = vmatpush1.bf16.msra.mxu0 %v9477_v21  ;;  %v9543_v21 = vld [vmem:[%s13316_s7 + $0x11e0] ss:$24 sps:$4 sm:$0xff]  }
 0x377   :  { %6287 = vmatpush2.bf16.msra.mxu1 %v9474_v36  ;;  %6307 = vmatprep.subr.bf16.mxu0 %v9485_v34  ;;  %v9551_v36 = vld [vmem:[%s13316_s7 + $0x11b4] ss:$24 sps:$4 sm:$0xff]   ;;  %v9546_v34 = vld [vmem:[%s13316_s7 + $0xdc0] ss:$24 sps:$4 sm:$0xff]  }
 0x378   :  { %6288 = vmatprep.subr.bf16.mxu1 %v9482_v37  ;;  %v9549_v37 = vld [vmem:[%s13316_s7 + $0x11b0] ss:$24 sps:$4 sm:$0xff]  }
 0x37a   :  { %6308 = vmatpush1.bf16.msra.mxu0 %v9483_v45  ;;  %v9554_v45 = vld [vmem:[%s13316_s7 + $0xd94] ss:$24 sps:$4 sm:$0xff]  }
 0x37b   :  { %6289 = vmatpush2.bf16.msra.mxu1 %v9480_v46  ;;  %6309 = vmatprep.subr.bf16.mxu0 %v9491_v3  ;;  %v9557_v46 = vld [vmem:[%s13316_s7 + $0x1184] ss:$24 sps:$4 sm:$0xff]   ;;  %v9552_v3 = vld [vmem:[%s13316_s7 + $0xd90] ss:$24 sps:$4 sm:$0xff]  }
 0x37c   :  { %6290 = vmatprep.subr.bf16.mxu1 %v9488_v19  ;;  %v9555_v19 = vld [vmem:[%s13316_s7 + $0x1180] ss:$24 sps:$4 sm:$0xff]  }
 0x37e   :  { %6310 = vmatpush1.bf16.msra.mxu0 %v9489_v25  ;;  %v9563_v25 = vld [vmem:[%s13316_s7 + $0x1364] ss:$24 sps:$4 sm:$0xff]  }
 0x37f   :  { %6291 = vmatpush2.bf16.msra.mxu1 %v9486_v33  ;;  %6311 = vmatprep.subr.bf16.mxu0 %v9494_v49  ;;  %v9560_v33 = vld [vmem:[%s13316_s7 + $0x1154] ss:$24 sps:$4 sm:$0xff]   ;;  %v9561_v49 = vld [vmem:[%s13316_s7 + $0x1360] ss:$24 sps:$4 sm:$0xff]  }
 0x380   :  { %6342 = vmatprep.subr.bf16.mxu1 %v9497_v40  ;;  %v9558_v40 = vld [vmem:[%s13316_s7 + $0x1150] ss:$24 sps:$4 sm:$0xff]  }
 0x382   :  { %v6048_v17 = vpop.f32.mrf.mxu1  ;;  %6293 = vmatmul.mubr.bf16.vlgmr.msra.gmra.mxu1 %v10829_v12  ;;  %6312 = vmatpush1.bf16.msra.mxu0 %v9492_v50  ;;  %v9509_v12 = vld [vmem:[%s13316_s7 + $0x1004] ss:$24 sps:$4 sm:$0xff]   ;;  %v9569_v50 = vld [vmem:[%s13316_s7 + $0x1334] ss:$24 sps:$4 sm:$0xff]  }
 0x383   :  { %v12479_v47 = vadd.f32 %v6048_v17, %v6008_v27  ;;  %6343 = vmatpush1.bf16.msra.mxu1 %v9495_v43  ;;  %6374 = vmatprep.mubr.bf16.mxu1 %v10834_v14  ;;  %v9504_v14 = vld [vmem:[%s13316_s7 + $0xc10] ss:$24 sps:$4 sm:$0xff]   ;;  %v9531_v27 = vld [vmem:[%s13316_s7 + $0xf40] ss:$24 sps:$4 sm:$0xff]   ;;  %v9566_v43 = vld [vmem:[%s13316_s7 + $0x1124] ss:$24 sps:$4 sm:$0xff]  }
 0x384   :  { %v6050_v56 = vpop.f32.mrf.mxu1  ;;  %6313 = vmatprep.subr.bf16.mxu0 %v9500_v53  ;;  %6344 = vmatprep.subr.bf16.mxu1 %v9503_v54  ;;  %v9567_v17 = vld [vmem:[%s13316_s7 + $0x1330] ss:$24 sps:$4 sm:$0xff]  }
 0x385   :  { %v12491_v59 = vadd.f32 %v6050_v56, %v6010_v32  ;;  %v9542_v32 = vld [vmem:[%s13316_s7 + $0xdf4] ss:$24 sps:$4 sm:$0xff]   ;;  %v9573_v56 = vld [vmem:[%s13316_s7 + $0x1300] ss:$24 sps:$4 sm:$0xff]  }
 0x386   :  { %v6052_v38 = vpop.f32.mrf.mxu1  ;;  %6314 = vmatpush1.bf16.msra.mxu0 %v9498_v29 }
 0x387   :  { %6345 = vmatpush1.bf16.msra.mxu1 %v9501_v31  ;;  %6315 = vmatprep.subr.bf16.mxu0 %v9506_v55  ;;  %v9564_v31 = vld [vmem:[%s13316_s7 + $0x1120] ss:$24 sps:$4 sm:$0xff]   ;;  %v9570_v38 = vld [vmem:[%s13316_s7 + $0x10f0] ss:$24 sps:$4 sm:$0xff]  }
 0x388   :  { %v6053_v63 = vpop.f32.mrf.mxu1  ;;  %6346 = vmatprep.subr.bf16.mxu1 %v9509_v12 }
 0x389   :  { %v9587_v63 = vld [vmem:[%s13316_s7 + $0x12a4] ss:$24 sps:$4 sm:$0xff]  }
 0x38a   :  { %6316 = vmatpush1.bf16.msra.mxu0 %v9504_v14  ;;  %v9578_v14 = vld [vmem:[%s13316_s7 + $0x10c4] ss:$24 sps:$4 sm:$0xff]  }
 0x38b   :  { %6347 = vmatpush1.bf16.msra.mxu1 %v9507_v0  ;;  %6317 = vmatprep.subr.bf16.mxu0 %v9512_v61  ;;  %v9579_v0 = vld [vmem:[%s13316_s7 + $0x12d0] ss:$24 sps:$4 sm:$0xff]   ;;  %v9576_v61 = vld [vmem:[%s13316_s7 + $0x10c0] ss:$24 sps:$4 sm:$0xff]  }
 0x38c   :  { %6348 = vmatprep.subr.bf16.mxu1 %v9515_v1  ;;  %v9584_v1 = vld [vmem:[%s13316_s7 + $0x1094] ss:$24 sps:$4 sm:$0xff]  }
 0x38e   :  { %6318 = vmatpush2.bf16.msra.mxu0 %v9510_v2  ;;  %v9585_v2 = vld [vmem:[%s13316_s7 + $0x12a0] ss:$24 sps:$4 sm:$0xff]  }
 0x38f   :  { %6349 = vmatpush1.bf16.msra.mxu1 %v9513_v4  ;;  %6319 = vmatprep.subr.bf16.mxu0 %v9518_v6  ;;  %v9582_v4 = vld [vmem:[%s13316_s7 + $0x1090] ss:$24 sps:$4 sm:$0xff]   ;;  %v9590_v6 = vld [vmem:[%s13316_s7 + $0x1274] ss:$24 sps:$4 sm:$0xff]  }
 0x390   :  { %6350 = vmatprep.subr.bf16.mxu1 %v9521_v39  ;;  %v9593_v39 = vld [vmem:[%s13316_s7 + $0x1664] ss:$24 sps:$4 sm:$0xff]  }
 0x392   :  { %6320 = vmatpush2.bf16.msra.mxu0 %v9516_v7  ;;  %v9588_v7 = vld [vmem:[%s13316_s7 + $0x1270] ss:$24 sps:$4 sm:$0xff]  }
 0x393   :  { %6351 = vmatpush1.bf16.msra.mxu1 %v9519_v13  ;;  %6321 = vmatprep.subr.bf16.mxu0 %v9524_v15  ;;  %v9591_v13 = vld [vmem:[%s13316_s7 + $0x1660] ss:$24 sps:$4 sm:$0xff]   ;;  %v9596_v15 = vld [vmem:[%s13316_s7 + $0x1244] ss:$24 sps:$4 sm:$0xff]  }
 0x394   :  { %6352 = vmatprep.subr.bf16.mxu1 %v9527_v41  ;;  %v9599_v41 = vld [vmem:[%s13316_s7 + $0x1634] ss:$24 sps:$4 sm:$0xff]  }
 0x396   :  { %6322 = vmatpush2.bf16.msra.mxu0 %v9522_v18 }
 0x397   :  { %6353 = vmatpush1.bf16.msra.mxu1 %v9525_v20  ;;  %6323 = vmatprep.subr.bf16.mxu0 %v9530_v24  ;;  %v9594_v20 = vld [vmem:[%s13316_s7 + $0x1240] ss:$24 sps:$4 sm:$0xff]  }
 0x398   :  { %6354 = vmatprep.subr.bf16.mxu1 %v9533_v62  ;;  %v9597_v62 = vld [vmem:[%s13316_s7 + $0x1630] ss:$24 sps:$4 sm:$0xff]  }
 0x39a   :  { %6324 = vmatpush2.bf16.msra.mxu0 %v9528_v26  ;;  %v9602_v26 = vld [vmem:[%s13316_s7 + $0x1214] ss:$24 sps:$4 sm:$0xff]  }
 0x39b   :  { %6355 = vmatpush1.bf16.msra.mxu1 %v9531_v27  ;;  %6325 = vmatprep.subr.bf16.mxu0 %v9536_v28 }
 0x39c   :  { %6356 = vmatprep.subr.bf16.mxu1 %v9539_v57 }
 0x39e   :  { %6326 = vmatpush2.bf16.msra.mxu0 %v9534_v5  ;;  %v9603_v5 = vld [vmem:[%s13316_s7 + $0x1600] ss:$24 sps:$4 sm:$0xff]  }
 0x39f   :  { %6357 = vmatpush1.bf16.msra.mxu1 %v9537_v51  ;;  %6327 = vmatprep.subr.bf16.mxu0 %v9542_v32  ;;  %v9608_v51 = vld [vmem:[%s13316_s7 + $0x14e4] ss:$24 sps:$4 sm:$0xff]  }
 0x3a0   :  { %6358 = vmatprep.subr.bf16.mxu1 %v9545_v52  ;;  %v9611_v52 = vld [vmem:[%s13316_s7 + $0x15d4] ss:$24 sps:$4 sm:$0xff]  }
 0x3a2   :  { %6328 = vmatpush2.bf16.msra.mxu0 %v9540_v58  ;;  %v9606_v58 = vld [vmem:[%s13316_s7 + $0x14e0] ss:$24 sps:$4 sm:$0xff]  }
 0x3a3   :  { %6359 = vmatpush2.bf16.msra.mxu1 %v9543_v21  ;;  %6329 = vmatprep.subr.bf16.mxu0 %v9548_v8  ;;  %v9609_v21 = vld [vmem:[%s13316_s7 + $0x15d0] ss:$24 sps:$4 sm:$0xff]   ;;  %v9614_v8 = vld [vmem:[%s13316_s7 + $0x14b4] ss:$24 sps:$4 sm:$0xff]  }
 0x3a4   :  { %6360 = vmatprep.subr.bf16.mxu1 %v9551_v36  ;;  %v9617_v36 = vld [vmem:[%s13316_s7 + $0x15a4] ss:$24 sps:$4 sm:$0xff]  }
 0x3a6   :  { %6330 = vmatpush2.bf16.msra.mxu0 %v9546_v34  ;;  %v9612_v34 = vld [vmem:[%s13316_s7 + $0x14b0] ss:$24 sps:$4 sm:$0xff]  }
 0x3a7   :  { %6361 = vmatpush2.bf16.msra.mxu1 %v9549_v37  ;;  %6331 = vmatprep.subr.bf16.mxu0 %v9554_v45  ;;  %v9615_v37 = vld [vmem:[%s13316_s7 + $0x15a0] ss:$24 sps:$4 sm:$0xff]   ;;  %v9620_v45 = vld [vmem:[%s13316_s7 + $0x1484] ss:$24 sps:$4 sm:$0xff]  }
 0x3a8   :  { %6362 = vmatprep.subr.bf16.mxu1 %v9557_v46  ;;  %v9623_v46 = vld [vmem:[%s13316_s7 + $0x1574] ss:$24 sps:$4 sm:$0xff]  }
 0x3aa   :  { %6332 = vmatpush2.bf16.msra.mxu0 %v9552_v3  ;;  %v9618_v3 = vld [vmem:[%s13316_s7 + $0x1480] ss:$24 sps:$4 sm:$0xff]  }
 0x3ab   :  { %6363 = vmatpush2.bf16.msra.mxu1 %v9555_v19  ;;  %6383 = vmatprep.subr.bf16.mxu0 %v9563_v25  ;;  %v9621_v19 = vld [vmem:[%s13316_s7 + $0x1570] ss:$24 sps:$4 sm:$0xff]   ;;  %v9626_v25 = vld [vmem:[%s13316_s7 + $0x1454] ss:$24 sps:$4 sm:$0xff]  }
 0x3ac   :  { %6364 = vmatprep.subr.bf16.mxu1 %v9560_v33  ;;  %v9629_v33 = vld [vmem:[%s13316_s7 + $0x1544] ss:$24 sps:$4 sm:$0xff]  }
 0x3ad   :  { %v6089_v53 = vpop.f32.mrf.mxu0  ;;  %6334 = vmatmul.mubr.bf16.vlgmr.msra.gmra.mxu0 %v10974_v10  ;;  %v9575_v10 = vld [vmem:[%s13316_s7 + $0x1304] ss:$24 sps:$4 sm:$0xff]  }
 0x3ae   :  { %v6090_v54 = vadd.f32 %v6089_v53, %v12479_v47  ;;  %6384 = vmatpush1.bf16.msra.mxu0 %v9561_v49  ;;  %6415 = vmatprep.mubr.bf16.mxu0 %v10976_v11  ;;  %v9572_v11 = vld [vmem:[%s13316_s7 + $0x10f4] ss:$24 sps:$4 sm:$0xff]   ;;  %v9624_v49 = vld [vmem:[%s13316_s7 + $0x1450] ss:$24 sps:$4 sm:$0xff]   ;;  %v9630_v53 = vld [vmem:[%s13316_s7 + $0x1420] ss:$24 sps:$4 sm:$0xff]  }
 0x3af   :  { %6365 = vmatpush2.bf16.msra.mxu1 %v9558_v40  ;;  %v6091_v29 = vpop.f32.mrf.mxu0  ;;  %6385 = vmatprep.subr.bf16.mxu0 %v9569_v50  ;;  %v9627_v40 = vld [vmem:[%s13316_s7 + $0x1540] ss:$24 sps:$4 sm:$0xff]   ;;  %v9632_v50 = vld [vmem:[%s13316_s7 + $0x1424] ss:$24 sps:$4 sm:$0xff]  }
 0x3b0   :  { %v6092_v47 = vadd.f32 %v6091_v29, %v12491_v59  ;;  %6366 = vmatprep.subr.bf16.mxu1 %v9566_v43  ;;  %v9581_v59 = vld [vmem:[%s13316_s7 + $0x12d4] ss:$24 sps:$4 sm:$0xff]   ;;  %v9641_v29 = vld [vmem:[%s13316_s7 + $0x17e4] ss:$24 sps:$4 sm:$0xff]  }
 0x3b1   :  { %v6093_v55 = vpop.f32.mrf.mxu0  ;;  %v9635_v43 = vld [vmem:[%s13316_s7 + $0x1514] ss:$24 sps:$4 sm:$0xff]  }
 0x3b2   :  { %6386 = vmatpush1.bf16.msra.mxu0 %v9567_v17  ;;  %v9638_v17 = vld [vmem:[%s13316_s7 + $0x13f4] ss:$24 sps:$4 sm:$0xff]   ;;  %v9642_v55 = vld [vmem:[%s13316_s7 + $0x13c0] ss:$24 sps:$4 sm:$0xff]  }
 0x3b3   :  { %6367 = vmatpush2.bf16.msra.mxu1 %v9564_v31  ;;  %v6094_v12 = vpop.f32.mrf.mxu0  ;;  %6387 = vmatprep.subr.bf16.mxu0 %v9575_v10  ;;  %v9636_v31 = vld [vmem:[%s13316_s7 + $0x13f0] ss:$24 sps:$4 sm:$0xff]   ;;  %v9639_v10 = vld [vmem:[%s13316_s7 + $0x17e0] ss:$24 sps:$4 sm:$0xff]  }
 0x3b4   :  { %6368 = vmatprep.subr.bf16.mxu1 %v9572_v11  ;;  %v9647_v11 = vld [vmem:[%s13316_s7 + $0x17b4] ss:$24 sps:$4 sm:$0xff]  }
 0x3b5   :  { %v9650_v12 = vld [vmem:[%s13316_s7 + $0x1394] ss:$24 sps:$4 sm:$0xff]  }
 0x3b6   :  { %6388 = vmatpush1.bf16.msra.mxu0 %v9573_v56  ;;  %v9645_v56 = vld [vmem:[%s13316_s7 + $0x17b0] ss:$24 sps:$4 sm:$0xff]  }
 0x3b7   :  { %6369 = vmatpush2.bf16.msra.mxu1 %v9570_v38  ;;  %6389 = vmatprep.subr.bf16.mxu0 %v9581_v59  ;;  %v12791_v38 = vld.sshfl [vmem:[%s13339_s21] sm:$0x33 pattern:$0x76325410]  ;;  %v9653_v59 = vld [vmem:[%s13316_s7 + $0x1784] ss:$24 sps:$4 sm:$0xff]  }
 0x3b8   :  { %6370 = vmatprep.subr.bf16.mxu1 %v9578_v14  ;;  %v9648_v14 = vld [vmem:[%s13316_s7 + $0x1390] ss:$24 sps:$4 sm:$0xff]  }
 0x3ba   :  { %6390 = vmatpush1.bf16.msra.mxu0 %v9579_v0  ;;  %v12801_v0 = vcombine.high %v12791_v38, %v12791_v38 }
 0x3bb   :  { %6371 = vmatpush2.bf16.msra.mxu1 %v9576_v61  ;;  %6391 = vmatprep.subr.bf16.mxu0 %v9587_v63  ;;  %v9651_v61 = vld [vmem:[%s13316_s7 + $0x1780] ss:$24 sps:$4 sm:$0xff]   ;;  %v9659_v63 = vld [vmem:[%s13318_s9 + $0x154] ss:$24 sps:$4 sm:$0xff]  }
 0x3bc   :  { %6372 = vmatprep.subr.bf16.mxu1 %v9584_v1  ;;  %v9656_v1 = vld [vmem:[%s13316_s7 + $0x1754] ss:$24 sps:$4 sm:$0xff]  }
 0x3be   :  { %6392 = vmatpush1.bf16.msra.mxu0 %v9585_v2  ;;  %v9657_v2 = vld [vmem:[%s13318_s9 + $0x150] ss:$24 sps:$4 sm:$0xff]  }
 0x3bf   :  { %6373 = vmatpush2.bf16.msra.mxu1 %v9582_v4  ;;  %6393 = vmatprep.subr.bf16.mxu0 %v9590_v6  ;;  %v12817_v4 = vpack.c.bf16 %v12801_v0, %v12801_v0  ;;  %v9654_v6 = vld [vmem:[%s13316_s7 + $0x1750] ss:$24 sps:$4 sm:$0xff]  }
 0x3c0   :  { %6424 = vmatprep.subr.bf16.mxu1 %v9593_v39  ;;  %v9665_v39 = vld [vmem:[%s13318_s9 + $0x124] ss:$24 sps:$4 sm:$0xff]  }
 0x3c2   :  { %v6130_v18 = vpop.f32.mrf.mxu1  ;;  %6375 = vmatmul.mubr.bf16.vlgmr.msra.gmra.mxu1 %v11041_v42  ;;  %6394 = vmatpush1.bf16.msra.mxu0 %v9588_v7  ;;  %v9605_v42 = vld [vmem:[%s13316_s7 + $0x1604] ss:$24 sps:$4 sm:$0xff]  }
 0x3c3   :  { %v12681_v24 = vadd.f32 %v6130_v18, %v6090_v54  ;;  %6425 = vmatpush1.bf16.msra.mxu1 %v9591_v13  ;;  %6456 = vmatprep.mubr.bf16.mxu1 %v11049_v35  ;;  %v9600_v35 = vld [vmem:[%s13316_s7 + $0x1210] ss:$24 sps:$4 sm:$0xff]   ;;  %v9662_v7 = vld [vmem:[%s13316_s7 + $0x1724] ss:$24 sps:$4 sm:$0xff]   ;;  %v9660_v18 = vld [vmem:[%s13316_s7 + $0x1720] ss:$24 sps:$4 sm:$0xff]  }
 0x3c4   :  { %v6132_v27 = vpop.f32.mrf.mxu1  ;;  %6395 = vmatprep.subr.bf16.mxu0 %v9596_v15  ;;  %6426 = vmatprep.subr.bf16.mxu1 %v9599_v41  ;;  %v9633_v54 = vld [vmem:[%s13316_s7 + $0x1510] ss:$24 sps:$4 sm:$0xff]   ;;  %v9663_v15 = vld [vmem:[%s13318_s9 + $0x120] ss:$24 sps:$4 sm:$0xff]  }
 0x3c5   :  { %v12693_v28 = vadd.f32 %v6132_v27, %v6092_v47  ;;  %v9644_v47 = vld [vmem:[%s13316_s7 + $0x13c4] ss:$24 sps:$4 sm:$0xff]  }
 0x3c6   :  { %v6134_v57 = vpop.f32.mrf.mxu1  ;;  %6396 = vmatpush1.bf16.msra.mxu0 %v9594_v20  ;;  %v9671_v20 = vld [vmem:[%s13318_s9 + $0xf4] ss:$24 sps:$4 sm:$0xff]  }
 0x3c7   :  { %6427 = vmatpush1.bf16.msra.mxu1 %v9597_v62  ;;  %6397 = vmatprep.subr.bf16.mxu0 %v9602_v26  ;;  %v9669_v26 = vld [vmem:[%s13318_s9 + $0xf0] ss:$24 sps:$4 sm:$0xff]   ;;  %v9677_v57 = vld [vmem:[%s13318_s9 + $0xc4] ss:$24 sps:$4 sm:$0xff]  }
 0x3c8   :  { %v6135_v32 = vpop.f32.mrf.mxu1  ;;  %6428 = vmatprep.subr.bf16.mxu1 %v9605_v42  ;;  %v9666_v42 = vld [vmem:[%s13316_s7 + $0x16f0] ss:$24 sps:$4 sm:$0xff]  }
 0x3c9   :  { %v9683_v32 = vld [vmem:[%s13318_s9 + $0x94] ss:$24 sps:$4 sm:$0xff]  }
 0x3ca   :  { %6398 = vmatpush1.bf16.msra.mxu0 %v9600_v35  ;;  %v9674_v35 = vld [vmem:[%s13316_s7 + $0x16c4] ss:$24 sps:$4 sm:$0xff]  }
 0x3cb   :  { %6429 = vmatpush1.bf16.msra.mxu1 %v9603_v5  ;;  %6399 = vmatprep.subr.bf16.mxu0 %v9608_v51  ;;  %v9675_v5 = vld [vmem:[%s13318_s9 + $0xc0] ss:$24 sps:$4 sm:$0xff]  }
 0x3cc   :  { %6430 = vmatprep.subr.bf16.mxu1 %v9611_v52  ;;  %v9672_v51 = vld [vmem:[%s13316_s7 + $0x16c0] ss:$24 sps:$4 sm:$0xff]   ;;  %v9680_v52 = vld [vmem:[%s13316_s7 + $0x1694] ss:$24 sps:$4 sm:$0xff]  }
 0x3ce   :  { %6400 = vmatpush2.bf16.msra.mxu0 %v9606_v58  ;;  %v9681_v58 = vld [vmem:[%s13318_s9 + $0x90] ss:$24 sps:$4 sm:$0xff]  }
 0x3cf   :  { %6431 = vmatpush1.bf16.msra.mxu1 %v9609_v21  ;;  %6401 = vmatprep.subr.bf16.mxu0 %v9614_v8  ;;  %v9678_v21 = vld [vmem:[%s13316_s7 + $0x1690] ss:$24 sps:$4 sm:$0xff]   ;;  %v9686_v8 = vld [vmem:[%s13318_s9 + $0x64] ss:$24 sps:$4 sm:$0xff]  }
 0x3d0   :  { %6432 = vmatprep.subr.bf16.mxu1 %v9617_v36  ;;  %v9689_v36 = vld [vmem:[%s13318_s9 + $0x15c] ss:$24 sps:$4 sm:$0xff]  }
 0x3d2   :  { %6402 = vmatpush2.bf16.msra.mxu0 %v9612_v34  ;;  %v9684_v34 = vld [vmem:[%s13318_s9 + $0x60] ss:$24 sps:$4 sm:$0xff]  }
 0x3d3   :  { %6433 = vmatpush1.bf16.msra.mxu1 %v9615_v37  ;;  %6403 = vmatprep.subr.bf16.mxu0 %v9620_v45  ;;  %v9687_v37 = vld [vmem:[%s13318_s9 + $0x158] ss:$24 sps:$4 sm:$0xff]   ;;  %v9692_v45 = vld [vmem:[%s13318_s9 + $0x34] ss:$24 sps:$4 sm:$0xff]  }
 0x3d4   :  { %6434 = vmatprep.subr.bf16.mxu1 %v9623_v46  ;;  %v9695_v46 = vld [vmem:[%s13318_s9 + $0x12c] ss:$24 sps:$4 sm:$0xff]  }
 0x3d6   :  { %6404 = vmatpush2.bf16.msra.mxu0 %v9618_v3 }
 0x3d7   :  { %6435 = vmatpush1.bf16.msra.mxu1 %v9621_v19  ;;  %6405 = vmatprep.subr.bf16.mxu0 %v9626_v25  ;;  %v9690_v25 = vld [vmem:[%s13318_s9 + $0x30] ss:$24 sps:$4 sm:$0xff]  }
 0x3d8   :  { %6436 = vmatprep.subr.bf16.mxu1 %v9629_v33 }
 0x3da   :  { %6406 = vmatpush2.bf16.msra.mxu0 %v9624_v49 }
 0x3db   :  { %6437 = vmatpush1.bf16.msra.mxu1 %v9627_v40  ;;  %6407 = vmatprep.subr.bf16.mxu0 %v9632_v50  ;;  %v9693_v40 = vld [vmem:[%s13318_s9 + $0x128] ss:$24 sps:$4 sm:$0xff]   ;;  %v9701_v50 = vld [vmem:[%s13318_s9 + $0xfc] ss:$24 sps:$4 sm:$0xff]  }
 0x3dc   :  { %6438 = vmatprep.subr.bf16.mxu1 %v9635_v43 }
 0x3de   :  { %6408 = vmatpush2.bf16.msra.mxu0 %v9630_v53  ;;  %v9696_v53 = vld [vmem:[%s13318_s9] ss:$24 sps:$4 sm:$0xff]  }
 0x3df   :  { %6439 = vmatpush1.bf16.msra.mxu1 %v9633_v54  ;;  %6409 = vmatprep.subr.bf16.mxu0 %v9638_v17  ;;  %v9699_v54 = vld [vmem:[%s13318_s9 + $0xf8] ss:$24 sps:$4 sm:$0xff]   ;;  %v9704_v17 = vld [vmem:[%s13318_s9 + $0x2d4] ss:$24 sps:$4 sm:$0xff]  }
 0x3e0   :  { %6440 = vmatprep.subr.bf16.mxu1 %v9641_v29 }
 0x3e2   :  { %6410 = vmatpush2.bf16.msra.mxu0 %v9636_v31  ;;  %v9707_v31 = vld [vmem:[%s13318_s9 + $0xcc] ss:$24 sps:$4 sm:$0xff]  }
 0x3e3   :  { %6441 = vmatpush2.bf16.msra.mxu1 %v9639_v10  ;;  %6411 = vmatprep.subr.bf16.mxu0 %v9644_v47  ;;  %v9702_v10 = vld [vmem:[%s13318_s9 + $0x2d0] ss:$24 sps:$4 sm:$0xff]  }
 0x3e4   :  { %6442 = vmatprep.subr.bf16.mxu1 %v9647_v11  ;;  %v9705_v47 = vld [vmem:[%s13318_s9 + $0xc8] ss:$24 sps:$4 sm:$0xff]   ;;  %v9710_v11 = vld [vmem:[%s13318_s9 + $0x2a4] ss:$24 sps:$4 sm:$0xff]  }
 0x3e6   :  { %6412 = vmatpush2.bf16.msra.mxu0 %v9642_v55  ;;  %v9713_v55 = vld [vmem:[%s13318_s9 + $0x9c] ss:$24 sps:$4 sm:$0xff]  }
 0x3e7   :  { %6443 = vmatpush2.bf16.msra.mxu1 %v9645_v56  ;;  %6413 = vmatprep.subr.bf16.mxu0 %v9650_v12  ;;  %v9708_v56 = vld [vmem:[%s13318_s9 + $0x2a0] ss:$24 sps:$4 sm:$0xff]  }
 0x3e8   :  { %6444 = vmatprep.subr.bf16.mxu1 %v9653_v59  ;;  %v9711_v12 = vld [vmem:[%s13318_s9 + $0x98] ss:$24 sps:$4 sm:$0xff]   ;;  %v9716_v59 = vld [vmem:[%s13318_s9 + $0x274] ss:$24 sps:$4 sm:$0xff]  }
 0x3ea   :  { %6414 = vmatpush2.bf16.msra.mxu0 %v9648_v14  ;;  %v9719_v14 = vld [vmem:[%s13318_s9 + $0x6c] ss:$24 sps:$4 sm:$0xff]  }
 0x3eb   :  { %6445 = vmatpush2.bf16.msra.mxu1 %v9651_v61  ;;  %7125 = vmatprep.subr.bf16.mxu0 %v9659_v63  ;;  %v9714_v61 = vld [vmem:[%s13318_s9 + $0x270] ss:$24 sps:$4 sm:$0xff]  }
 0x3ec   :  { %6446 = vmatprep.subr.bf16.mxu1 %v9656_v1  ;;  %v9717_v63 = vld [vmem:[%s13318_s9 + $0x68] ss:$24 sps:$4 sm:$0xff]   ;;  %v9722_v1 = vld [vmem:[%s13318_s9 + $0x244] ss:$24 sps:$4 sm:$0xff]  }
 0x3ed   :  { %v6171_v13 = vpop.f32.mrf.mxu0  ;;  %6416 = vmatmul.mubr.bf16.vlgmr.msra.gmra.mxu0 %v11182_v44  ;;  %v9668_v44 = vld [vmem:[%s13316_s7 + $0x16f4] ss:$24 sps:$4 sm:$0xff]   ;;  %s7537_s7 = sshll.u32 %s9915_s0, 4  ;;  %s7538_s7 = int_to_ptr.vmem [resolvable:$true] %s7537_s7 }
 0x3ee   :  { %7126 = vmatpush1.bf16.msra.mxu0 %v9657_v2  ;;  %7157 = vmatprep.mubr.bf16.mxu0 %v12817_v4  ;;  %v6172_v3 = vadd.f32 %v6171_v13, %v11240_v9  ;;  %v9698_v9 = vld [vmem:[%s13318_s9 + $0x4] ss:$24 sps:$4 sm:$0xff]  }
 0x3ef   :  { %6447 = vmatpush2.bf16.msra.mxu1 %v9654_v6  ;;  %v6173_v41 = vpop.f32.mrf.mxu0  ;;  %7127 = vmatprep.subr.bf16.mxu0 %v9665_v39  ;;  %v9725_v2 = vld [vmem:[%s13318_s9 + $0x3c] ss:$24 sps:$4 sm:$0xff]   ;;  %v9720_v6 = vld [vmem:[%s13318_s9 + $0x240] ss:$24 sps:$4 sm:$0xff]   ;;  %v9731_v13 = vld [vmem:[%s13318_s9 + $0xc] ss:$24 sps:$4 sm:$0xff]  }
 0x3f0   :  { %6448 = vmatprep.subr.bf16.mxu1 %v9662_v7  ;;  %v6174_v33 = vadd.f32 %v6173_v41, %v11251_v48  ;;  %v9723_v39 = vld [vmem:[%s13318_s9 + $0x38] ss:$24 sps:$4 sm:$0xff]   ;;  %v9728_v7 = vld [vmem:[%s13318_s9 + $0x214] ss:$24 sps:$4 sm:$0xff]   ;;  %v9729_v41 = vld [vmem:[%s13318_s9 + $0x8] ss:$24 sps:$4 sm:$0xff]  }
 0x3f1   :  { %v6175_v62 = vpop.f32.mrf.mxu0 }
 0x3f2   :  { %7128 = vmatpush1.bf16.msra.mxu0 %v9663_v15  ;;  %v9726_v15 = vld [vmem:[%s13318_s9 + $0x210] ss:$24 sps:$4 sm:$0xff]  }
 0x3f3   :  { %6449 = vmatpush2.bf16.msra.mxu1 %v9660_v18  ;;  %v6176_v27 = vpop.f32.mrf.mxu0  ;;  %7129 = vmatprep.subr.bf16.mxu0 %v9671_v20  ;;  %v9734_v18 = vld [vmem:[%s13318_s9 + $0x1e4] ss:$24 sps:$4 sm:$0xff]   ;;  %v9735_v62 = vld [vmem:[%s13318_s9 + $0x2d8] ss:$24 sps:$4 sm:$0xff]  }
 0x3f4   :  { %6450 = vmatprep.subr.bf16.mxu1 %v9668_v44  ;;  %v9737_v20 = vld [vmem:[%s13318_s9 + $0x2dc] ss:$24 sps:$4 sm:$0xff]   ;;  %v9732_v44 = vld [vmem:[%s13318_s9 + $0x1e0] ss:$24 sps:$4 sm:$0xff]   ;;  %v9743_v27 = vld [vmem:[%s13318_s9 + $0x2ac] ss:$24 sps:$4 sm:$0xff]  }
 0x3f6   :  { %7130 = vmatpush1.bf16.msra.mxu0 %v9669_v26  ;;  %v9740_v26 = vld [vmem:[%s13318_s9 + $0x1b4] ss:$24 sps:$4 sm:$0xff]  }
 0x3f7   :  { %6451 = vmatpush2.bf16.msra.mxu1 %v9666_v42  ;;  %7131 = vmatprep.subr.bf16.mxu0 %v9677_v57  ;;  %v9738_v42 = vld [vmem:[%s13318_s9 + $0x1b0] ss:$24 sps:$4 sm:$0xff]  }
 0x3f8   :  { %6452 = vmatprep.subr.bf16.mxu1 %v9674_v35  ;;  %v9741_v57 = vld [vmem:[%s13318_s9 + $0x2a8] ss:$24 sps:$4 sm:$0xff]   ;;  %v9746_v35 = vld [vmem:[%s13318_s9 + $0x184] ss:$24 sps:$4 sm:$0xff]  }
 0x3fa   :  { %7132 = vmatpush1.bf16.msra.mxu0 %v9675_v5  ;;  %v9749_v5 = vld [vmem:[%s13318_s9 + $0x27c] ss:$24 sps:$4 sm:$0xff]  }
 0x3fb   :  { %6453 = vmatpush2.bf16.msra.mxu1 %v9672_v51  ;;  %7133 = vmatprep.subr.bf16.mxu0 %v9683_v32  ;;  %v9744_v51 = vld [vmem:[%s13318_s9 + $0x180] ss:$24 sps:$4 sm:$0xff]  }
 0x3fc   :  { %6454 = vmatprep.subr.bf16.mxu1 %v9680_v52  ;;  %v9747_v32 = vld [vmem:[%s13318_s9 + $0x278] ss:$24 sps:$4 sm:$0xff]   ;;  %v9755_v52 = vld [vmem:[%s13318_s9 + $0x164] ss:$24 sps:$4 sm:$0xff]  }
 0x3fe   :  { %7134 = vmatpush1.bf16.msra.mxu0 %v9681_v58  ;;  %v9752_v58 = vld [vmem:[%s13318_s9 + $0x24c] ss:$24 sps:$4 sm:$0xff]  }
 0x3ff   :  { %6455 = vmatpush2.bf16.msra.mxu1 %v9678_v21  ;;  %7135 = vmatprep.subr.bf16.mxu0 %v9686_v8  ;;  %v13020_v21 = vpack.c.bf16 %v12791_v38, %v12791_v38  ;;  %v9753_v8 = vld [vmem:[%s13318_s9 + $0x160] ss:$24 sps:$4 sm:$0xff]  }
 0x400   :  { %7166 = vmatprep.subr.bf16.mxu1 %v9689_v36  ;;  %v9750_v36 = vld [vmem:[%s13318_s9 + $0x248] ss:$24 sps:$4 sm:$0xff]  }
 0x402   :  { %v6212_v19 = vpop.f32.mrf.mxu1  ;;  %6457 = vmatmul.mubr.bf16.vlgmr.msra.gmra.mxu1 %v11255_v16  ;;  %7136 = vmatpush1.bf16.msra.mxu0 %v9684_v34  ;;  %v9761_v34 = vld [vmem:[%s13318_s9 + $0x134] ss:$24 sps:$4 sm:$0xff]  }
 0x403   :  { %v12896_v49 = vadd.f32 %v6212_v19, %v6172_v3  ;;  %7167 = vmatpush1.bf16.msra.mxu1 %v9687_v37  ;;  %7137 = vmatprep.subr.bf16.mxu0 %v9692_v45  ;;  %v9758_v37 = vld [vmem:[%s13318_s9 + $0x21c] ss:$24 sps:$4 sm:$0xff]   ;;  %v9759_v3 = vld [vmem:[%s13318_s9 + $0x130] ss:$24 sps:$4 sm:$0xff]  }
 0x404   :  { %v6214_v16 = vpop.f32.mrf.mxu1  ;;  %7168 = vmatprep.subr.bf16.mxu1 %v9695_v46  ;;  %7198 = vmatprep.mubr.bf16.mxu1 %v12817_v4 }
 0x405   :  { %v12908_v48 = vadd.f32 %v6214_v16, %v6174_v33  ;;  %v9767_v33 = vld [vmem:[%s13318_s9 + $0x104] ss:$24 sps:$4 sm:$0xff]  }
 0x406   :  { %v6216_v43 = vpop.f32.mrf.mxu1  ;;  %7138 = vmatpush1.bf16.msra.mxu0 %v9690_v25  ;;  %v9756_v25 = vld [vmem:[%s13318_s9 + $0x218] ss:$24 sps:$4 sm:$0xff]  }
 0x407   :  { %7169 = vmatpush1.bf16.msra.mxu1 %v9693_v40  ;;  %7139 = vmatprep.subr.bf16.mxu0 %v9698_v9  ;;  %v9764_v40 = vld [vmem:[%s13318_s9 + $0x1ec] ss:$24 sps:$4 sm:$0xff]   ;;  %v9770_v43 = vld [vmem:[%s13318_s9 + $0x1bc] ss:$24 sps:$4 sm:$0xff]  }
 0x408   :  { %v6217_v29 = vpop.f32.mrf.mxu1  ;;  %7170 = vmatprep.subr.bf16.mxu1 %v9701_v50  ;;  %v9762_v50 = vld [vmem:[%s13318_s9 + $0x1e8] ss:$24 sps:$4 sm:$0xff]  }
 0x409   :  { %v9776_v29 = vld [vmem:[%s13318_s9 + $0x18c] ss:$24 sps:$4 sm:$0xff]  }
 0x40a   :  { %7140 = vmatpush1.bf16.msra.mxu0 %v9696_v53  ;;  %v9771_v53 = vld [vmem:[%s13318_s9 + $0xd0] ss:$24 sps:$4 sm:$0xff]  }
 0x40b   :  { %7171 = vmatpush1.bf16.msra.mxu1 %v9699_v54  ;;  %7141 = vmatprep.subr.bf16.mxu0 %v9704_v17  ;;  %v9768_v54 = vld [vmem:[%s13318_s9 + $0x1b8] ss:$24 sps:$4 sm:$0xff]   ;;  %v9779_v17 = vld [vmem:[%s13318_s9 + $0xa4] ss:$24 sps:$4 sm:$0xff]  }
 0x40c   :  { %7172 = vmatprep.subr.bf16.mxu1 %v9707_v31  ;;  %v9777_v31 = vld [vmem:[%s13318_s9 + $0xa0] ss:$24 sps:$4 sm:$0xff]  }
 0x40e   :  { %7142 = vmatpush2.bf16.msra.mxu0 %v9702_v10  ;;  %v9774_v10 = vld [vmem:[%s13318_s9 + $0x188] ss:$24 sps:$4 sm:$0xff]  }
 0x40f   :  { %7173 = vmatpush1.bf16.msra.mxu1 %v9705_v47  ;;  %7143 = vmatprep.subr.bf16.mxu0 %v9710_v11  ;;  %v9782_v47 = vld [vmem:[%s13318_s9 + $0x74] ss:$24 sps:$4 sm:$0xff]   ;;  %v9780_v11 = vld [vmem:[%s13318_s9 + $0x70] ss:$24 sps:$4 sm:$0xff]  }
 0x410   :  { %7174 = vmatprep.subr.bf16.mxu1 %v9713_v55  ;;  %v9785_v55 = vld [vmem:[%s13318_s9 + $0x44] ss:$24 sps:$4 sm:$0xff]  }
 0x412   :  { %7144 = vmatpush2.bf16.msra.mxu0 %v9708_v56 }
 0x413   :  { %7175 = vmatpush1.bf16.msra.mxu1 %v9711_v12  ;;  %7145 = vmatprep.subr.bf16.mxu0 %v9716_v59  ;;  %v9783_v12 = vld [vmem:[%s13318_s9 + $0x40] ss:$24 sps:$4 sm:$0xff]  }
 0x414   :  { %7176 = vmatprep.subr.bf16.mxu1 %v9719_v14  ;;  %v9788_v14 = vld [vmem:[%s13318_s9 + $0x14] ss:$24 sps:$4 sm:$0xff]  }
 0x416   :  { %7146 = vmatpush2.bf16.msra.mxu0 %v9714_v61 }
 0x417   :  { %7177 = vmatpush1.bf16.msra.mxu1 %v9717_v63  ;;  %7147 = vmatprep.subr.bf16.mxu0 %v9722_v1 }
 0x418   :  { %7178 = vmatprep.subr.bf16.mxu1 %v9725_v2  ;;  %v9786_v2 = vld [vmem:[%s13318_s9 + $0x10] ss:$24 sps:$4 sm:$0xff]  }
 0x41a   :  { %7148 = vmatpush2.bf16.msra.mxu0 %v9720_v6  ;;  %v9791_v6 = vld [vmem:[%s13318_s9 + $0x2e4] ss:$24 sps:$4 sm:$0xff]  }
 0x41b   :  { %7179 = vmatpush1.bf16.msra.mxu1 %v9723_v39  ;;  %7149 = vmatprep.subr.bf16.mxu0 %v9728_v7  ;;  %v9789_v7 = vld [vmem:[%s13318_s9 + $0x2e0] ss:$24 sps:$4 sm:$0xff]  }
 0x41c   :  { %7180 = vmatprep.subr.bf16.mxu1 %v9731_v13  ;;  %v9794_v13 = vld [vmem:[%s13318_s9 + $0x2b4] ss:$24 sps:$4 sm:$0xff]  }
 0x41e   :  { %7150 = vmatpush2.bf16.msra.mxu0 %v9726_v15  ;;  %v9792_v15 = vld [vmem:[%s13318_s9 + $0x2b0] ss:$24 sps:$4 sm:$0xff]  }
 0x41f   :  { %7181 = vmatpush1.bf16.msra.mxu1 %v9729_v41  ;;  %7151 = vmatprep.subr.bf16.mxu0 %v9734_v18  ;;  %v9797_v41 = vld [vmem:[%s13318_s9 + $0x284] ss:$24 sps:$4 sm:$0xff]   ;;  %v9795_v18 = vld [vmem:[%s13318_s9 + $0x280] ss:$24 sps:$4 sm:$0xff]  }
 0x420   :  { %7182 = vmatprep.subr.bf16.mxu1 %v9737_v20  ;;  %v9800_v20 = vld [vmem:[%s13318_s9 + $0x254] ss:$24 sps:$4 sm:$0xff]  }
 0x422   :  { %7152 = vmatpush2.bf16.msra.mxu0 %v9732_v44  ;;  %v9798_v44 = vld [vmem:[%s13318_s9 + $0x250] ss:$24 sps:$4 sm:$0xff]  }
 0x423   :  { %7183 = vmatpush2.bf16.msra.mxu1 %v9735_v62  ;;  %7153 = vmatprep.subr.bf16.mxu0 %v9740_v26  ;;  %v9803_v62 = vld [vmem:[%s13318_s9 + $0x224] ss:$24 sps:$4 sm:$0xff]   ;;  %v9801_v26 = vld [vmem:[%s13318_s9 + $0x220] ss:$24 sps:$4 sm:$0xff]  }
 0x424   :  { %7184 = vmatprep.subr.bf16.mxu1 %v9743_v27  ;;  %v9806_v27 = vld [vmem:[%s13318_s9 + $0x1f4] ss:$24 sps:$4 sm:$0xff]  }
 0x426   :  { %7154 = vmatpush2.bf16.msra.mxu0 %v9738_v42  ;;  %v9804_v42 = vld [vmem:[%s13318_s9 + $0x1f0] ss:$24 sps:$4 sm:$0xff]  }
 0x427   :  { %7185 = vmatpush2.bf16.msra.mxu1 %v9741_v57  ;;  %7155 = vmatprep.subr.bf16.mxu0 %v9746_v35  ;;  %v9809_v57 = vld [vmem:[%s13318_s9 + $0x1c4] ss:$24 sps:$4 sm:$0xff]   ;;  %v9807_v35 = vld [vmem:[%s13318_s9 + $0x1c0] ss:$24 sps:$4 sm:$0xff]  }
 0x428   :  { %7186 = vmatprep.subr.bf16.mxu1 %v9749_v5  ;;  %v9812_v5 = vld [vmem:[%s13318_s9 + $0x194] ss:$24 sps:$4 sm:$0xff]  }
 0x42a   :  { %7156 = vmatpush2.bf16.msra.mxu0 %v9744_v51  ;;  %v9810_v51 = vld [vmem:[%s13318_s9 + $0x190] ss:$24 sps:$4 sm:$0xff]  }
 0x42b   :  { %7187 = vmatpush2.bf16.msra.mxu1 %v9747_v32  ;;  %7207 = vmatprep.subr.bf16.mxu0 %v9755_v52 }
 0x42c   :  { %7188 = vmatprep.subr.bf16.mxu1 %v9752_v58 }
 0x42d   :  { %v6253_v45 = vpop.f32.mrf.mxu0  ;;  %7158 = vmatmul.mubr.bf16.vlgmr.msra.gmra.mxu0 %v13020_v21 }
 0x42e   :  { %v6254_v46 = vadd.f32 %v6253_v45, %v12896_v49  ;;  %7208 = vmatpush1.bf16.msra.mxu0 %v9753_v8  ;;  %7239 = vmatprep.mubr.bf16.mxu0 %v12817_v4  ;;  %v9765_v4 = vld [vmem:[%s13318_s9 + $0x100] ss:$24 sps:$4 sm:$0xff]  }
 0x42f   :  { %7189 = vmatpush2.bf16.msra.mxu1 %v9750_v36  ;;  %v6255_v19 = vpop.f32.mrf.mxu0  ;;  %7209 = vmatprep.subr.bf16.mxu0 %v9761_v34 }
 0x430   :  { %v6256_v49 = vadd.f32 %v6255_v19, %v12908_v48  ;;  %7190 = vmatprep.subr.bf16.mxu1 %v9758_v37  ;;  %v9773_v48 = vld [vmem:[%s13318_s9 + $0xd4] ss:$24 sps:$4 sm:$0xff]  }
 0x431   :  { %v6257_v9 = vpop.f32.mrf.mxu0 }
 0x432   :  { %7210 = vmatpush1.bf16.msra.mxu0 %v9759_v3 }
 0x433   :  { %7191 = vmatpush2.bf16.msra.mxu1 %v9756_v25  ;;  %v6258_v16 = vpop.f32.mrf.mxu0  ;;  %7211 = vmatprep.subr.bf16.mxu0 %v9767_v33  ;;  %v7321_v33 = vld [vmem:[%s13321_s12 + $0xf8] sm:$0xff] }
 0x434   :  { %7192 = vmatprep.subr.bf16.mxu1 %v9764_v40  ;;  %v7304_v40 = vld [vmem:[%s13321_s12 + $0x70] sm:$0xff] }
 0x436   :  { %7212 = vmatpush1.bf16.msra.mxu0 %v9765_v4 }
 0x437   :  { %7193 = vmatpush2.bf16.msra.mxu1 %v9762_v50  ;;  %7213 = vmatprep.subr.bf16.mxu0 %v9773_v48 }
 0x438   :  { %7194 = vmatprep.subr.bf16.mxu1 %v9770_v43  ;;  %v7319_v43 = vld [vmem:[%s13321_s12 + $0xe8] sm:$0xff] }
 0x43a   :  { %7214 = vmatpush1.bf16.msra.mxu0 %v9771_v53 }
 0x43b   :  { %7195 = vmatpush2.bf16.msra.mxu1 %v9768_v54  ;;  %7215 = vmatprep.subr.bf16.mxu0 %v9779_v17  ;;  %v7303_v54 = vld [vmem:[%s13321_s12 + $0x68] sm:$0xff]  ;;  %v7318_v17 = vld [vmem:[%s13321_s12 + $0xe0] sm:$0xff] }
 0x43c   :  { %7196 = vmatprep.subr.bf16.mxu1 %v9776_v29  ;;  %v7302_v29 = vld [vmem:[%s13321_s12 + $0x60] sm:$0xff] }
 0x43e   :  { %7216 = vmatpush1.bf16.msra.mxu0 %v9777_v31  ;;  %v7317_v31 = vld [vmem:[%s13321_s12 + $0xd8] sm:$0xff] }
 0x43f   :  { %7197 = vmatpush2.bf16.msra.mxu1 %v9774_v10  ;;  %7217 = vmatprep.subr.bf16.mxu0 %v9782_v47  ;;  %v7301_v10 = vld [vmem:[%s13321_s12 + $0x58] sm:$0xff]  ;;  %v7316_v47 = vld [vmem:[%s13321_s12 + $0xd0] sm:$0xff] }
 0x440   :  { %8445 = vmatprep.subr.mxu1 %v7321_v33 }
 0x442   :  { %v6294_v56 = vpop.f32.mrf.mxu1  ;;  %7199 = vmatmul.mubr.bf16.vlgmr.msra.gmra.mxu1 %v13020_v21  ;;  %7218 = vmatpush1.bf16.msra.mxu0 %v9780_v11  ;;  %v7300_v11 = vld [vmem:[%s13321_s12 + $0x50] sm:$0xff] }
 0x443   :  { %v6295_v59 = vadd.f32 %v6294_v56, %v6254_v46  ;;  %7219 = vmatprep.subr.bf16.mxu0 %v9785_v55  ;;  %v7315_v55 = vld [vmem:[%s13321_s12 + $0xc8] sm:$0xff] }
 0x444   :  { %v6296_v61 = vpop.f32.mrf.mxu1  ;;  %v7299_v56 = vld [vmem:[%s13321_s12 + $0x48] sm:$0xff] }
 0x445   :  { %v6297_v63 = vadd.f32 %v6296_v61, %v6256_v49  ;;  %v7305_v49 = vld [vmem:[%s13321_s12 + $0x78] sm:$0xff] }
 0x446   :  { %v6298_v1 = vpop.f32.mrf.mxu1  ;;  %7220 = vmatpush1.bf16.msra.mxu0 %v9783_v12  ;;  %8446 = vmatpush3.msra.mxu1 %v7305_v49  ;;  %v7314_v12 = vld [vmem:[%s13321_s12 + $0xc0] sm:$0xff]  ;;  %v7297_v61 = vld [vmem:[%s13321_s12 + $0x38] sm:$0xff] }
 0x447   :  { %7221 = vmatprep.subr.bf16.mxu0 %v9788_v14  ;;  %v7313_v14 = vld [vmem:[%s13321_s12 + $0xb8] sm:$0xff]  ;;  %v7296_v1 = vld [vmem:[%s13321_s12 + $0x30] sm:$0xff] }
 0x448   :  { %v6299_v39 = vpop.f32.mrf.mxu1 }
 0x44a   :  { %7222 = vmatpush1.bf16.msra.mxu0 %v9786_v2  ;;  %v7311_v2 = vld [vmem:[%s13321_s12 + $0xa8] sm:$0xff] }
 0x44b   :  { %7223 = vmatprep.subr.bf16.mxu0 %v9791_v6  ;;  %v7295_v6 = vld [vmem:[%s13321_s12 + $0x28] sm:$0xff] }
 0x44e   :  { %7224 = vmatpush2.bf16.msra.mxu0 %v9789_v7  ;;  %v7310_v7 = vld [vmem:[%s13321_s12 + $0xa0] sm:$0xff] }
 0x44f   :  { %7225 = vmatprep.subr.bf16.mxu0 %v9794_v13 }
 0x452   :  { %7226 = vmatpush2.bf16.msra.mxu0 %v9792_v15  ;;  %v7294_v15 = vld [vmem:[%s13321_s12 + $0x20] sm:$0xff] }
 0x453   :  { %7227 = vmatprep.subr.bf16.mxu0 %v9797_v41 }
 0x456   :  { %7228 = vmatpush2.bf16.msra.mxu0 %v9795_v18  ;;  %v7309_v18 = vld [vmem:[%s13321_s12 + $0x98] sm:$0xff] }
 0x457   :  { %7229 = vmatprep.subr.bf16.mxu0 %v9800_v20 }
 0x45a   :  { %7230 = vmatpush2.bf16.msra.mxu0 %v9798_v44  ;;  %v7293_v44 = vld [vmem:[%s13321_s12 + $0x18] sm:$0xff] }
 0x45b   :  { %7231 = vmatprep.subr.bf16.mxu0 %v9803_v62 }
 0x45e   :  { %7232 = vmatpush2.bf16.msra.mxu0 %v9801_v26  ;;  %v7308_v26 = vld [vmem:[%s13321_s12 + $0x90] sm:$0xff] }
 0x45f   :  { %7233 = vmatprep.subr.bf16.mxu0 %v9806_v27  ;;  %v7292_v27 = vld [vmem:[%s13321_s12 + $0x10] sm:$0xff] }
 0x462   :  { %7234 = vmatpush2.bf16.msra.mxu0 %v9804_v42 }
 0x463   :  { %7235 = vmatprep.subr.bf16.mxu0 %v9809_v57  ;;  %v7307_v57 = vld [vmem:[%s13321_s12 + $0x88] sm:$0xff] }
 0x466   :  { %7236 = vmatpush2.bf16.msra.mxu0 %v9807_v35  ;;  %v7291_v35 = vld [vmem:[%s13321_s12 + $0x8] sm:$0xff] }
 0x467   :  { %7237 = vmatprep.subr.bf16.mxu0 %v9812_v5  ;;  %v7306_v5 = vld [vmem:[%s13321_s12 + $0x80] sm:$0xff] }
 0x46a   :  { %7238 = vmatpush2.bf16.msra.mxu0 %v9810_v51  ;;  %v7290_v51 = vld [vmem:[%s13321_s12] sm:$0xff] }
 0x46d   :  { %v6335_v32 = vpop.f32.mrf.mxu0  ;;  %7240 = vmatmul.mubr.bf16.vlgmr.msra.gmra.mxu0 %v13020_v21  ;;  %v7320_v21 = vld [vmem:[%s13321_s12 + $0xf0] sm:$0xff] }
 0x46e   :  { %v6336_v52 = vadd.f32 %v6335_v32, %v6295_v59  ;;  %8447 = vmatprep.subr.mxu1 %v7320_v21  ;;  %v7298_v59 = vld [vmem:[%s13321_s12 + $0x40] sm:$0xff] }
 0x46f   :  { %v6337_v58 = vpop.f32.mrf.mxu0  ;;  %8448 = vmatpush3.msra.mxu1 %v7304_v40 }
 0x470   :  { %v6338_v8 = vadd.f32 %v6337_v58, %v6297_v63  ;;  %8449 = vmatprep.subr.mxu1 %v7319_v43  ;;  %v7312_v63 = vld [vmem:[%s13321_s12 + $0xb0] sm:$0xff] }
 0x471   :  { %v6339_v36 = vpop.f32.mrf.mxu0  ;;  %8450 = vmatpush3.msra.mxu1 %v7303_v54 }
 0x472   :  { %8451 = vmatprep.subr.mxu1 %v7318_v17  ;;  %v6613_v36 = vld [vmem:[%s13320_s11] sm:$0x3f]  ;;  %v6481_v17 = vsub.s32 3, %v10227_v23 }
 0x473   :  { %v6340_v34 = vpop.f32.mrf.mxu0  ;;  %8452 = vmatpush3.msra.mxu1 %v7302_v29 }
 0x474   :  { %8453 = vmatprep.subr.mxu1 %v7317_v31  ;;  %v6469_v34 = vsub.s32 0, %v10227_v23 }
 0x475   :  { %8454 = vmatpush3.msra.mxu1 %v7301_v10 }
 0x476   :  { %8455 = vmatprep.subr.mxu1 %v7316_v47  ;;  %v6630_v47 = vrot.slane %v6613_v36, %v6481_v17 }
 0x477   :  { %8456 = vmatpush3.msra.mxu1 %v7300_v11 }
 0x478   :  { %8457 = vmatprep.subr.mxu1 %v7315_v55 }
 0x479   :  { %8458 = vmatpush3.msra.mxu1 %v7299_v56 }
 0x47a   :  { %8459 = vmatprep.subr.mxu1 %v7314_v12 }
 0x47b   :  { %8460 = vmatpush3.msra.mxu1 %v7298_v59 }
 0x47c   :  { %8461 = vmatprep.subr.mxu1 %v7313_v14 }
 0x47d   :  { %8462 = vmatpush3.msra.mxu1 %v7297_v61 }
 0x47e   :  { %8463 = vmatprep.subr.mxu1 %v7312_v63 }
 0x47f   :  { %8464 = vmatpush3.msra.mxu1 %v7296_v1 }
 0x480   :  { %8465 = vmatprep.subr.mxu1 %v7311_v2 }
 0x481   :  { %8466 = vmatpush3.msra.mxu1 %v7295_v6 }
 0x482   :  { %v6376_v37 = vpop.f32.mrf.mxu1  ;;  %8467 = vmatprep.subr.mxu1 %v7310_v7 }
 0x483   :  { %v6377_v45 = vadd.f32 %v6376_v37, %v6336_v52  ;;  %8468 = vmatpush3.msra.mxu1 %v7294_v15  ;;  %v6465_v37 = vld [vmem:[%s13319_s10] sm:$0x3f] }
 0x484   :  { %v6378_v46 = vpop.f32.mrf.mxu1  ;;  %8469 = vmatprep.subr.mxu1 %v7309_v18  ;;  %v6482_v11 = vrot.slane %v6465_v37, %v6481_v17 }
 0x485   :  { %v6379_v3 = vadd.f32 %v6378_v46, %v6338_v8  ;;  %8470 = vmatpush3.msra.mxu1 %v7293_v44  ;;  %v6618_v46 = vrot.slane %v6613_v36, %v6469_v34 }
 0x486   :  { %v6380_v19 = vpop.f32.mrf.mxu1  ;;  %8471 = vmatprep.subr.mxu1 %v7308_v26  ;;  %v6500_v56 = vadd.f32 %v6482_v11, %v12693_v28 }
 0x487   :  { %8472 = vmatpush3.msra.mxu1 %v7292_v27 }
 0x488   :  { %v6381_v25 = vpop.f32.mrf.mxu1  ;;  %8473 = vmatprep.subr.mxu1 %v7307_v57 }
 0x489   :  { %8474 = vmatpush3.msra.mxu1 %v7291_v35 }
 0x48a   :  { %8475 = vmatprep.subr.mxu1 %v7306_v5 }
 0x48b   :  { %8476 = vmatpush3.msra.mxu1 %v7290_v51 }
 0x48c   :  { %8491 = vmatprep.subr.mxu1 %v9909_v22 }
 0x4ad   :  { %v6417_v9 = vpop.f32.mrf.mxu0 }
 0x4ae   :  { %v6418_v4 = vadd.f32 %v6417_v9, %v6377_v45  ;;  %v6473_v45 = vsub.s32 1, %v10227_v23 }
 0x4af   :  { %v6419_v16 = vpop.f32.mrf.mxu0 }
 0x4b0   :  { %v6420_v50 = vadd.f32 %v6419_v16, %v6379_v3  ;;  %v6470_v3 = vrot.slane %v6465_v37, %v6469_v34  ;;  %v6622_v19 = vrot.slane %v6613_v36, %v6473_v45  ;;  %v6474_v25 = vrot.slane %v6465_v37, %v6473_v45 }
 0x4b1   :  { %v6421_v48 = vpop.f32.mrf.mxu0 }
 0x4b2   :  { %v6497_v21 = vadd.f32 %v6470_v3, %v11873_v30 }
 0x4b3   :  { %v6422_v53 = vpop.f32.mrf.mxu0 }
 0x4b4   :  { %v6477_v53 = vsub.s32 2, %v10227_v23 }
 0x4b6   :  { %v6626_v31 = vrot.slane %v6613_v36, %v6477_v53  ;;  %v6478_v10 = vrot.slane %v6465_v37, %v6477_v53  ;;  %v8438_v53 = vld [vmem:[%s13322_s13] ss:$0 sm:$0xff] }
 0x4b8   :  { %v6499_v55 = vadd.f32 %v6478_v10, %v12681_v24  ;;  %v6489_v24 = vsub.s32 5, %v10227_v23  ;;  %v7499_v10 = vld [vmem:[%s13325_s16] sm:$0xff] }
 0x4ba   :  { %v6638_v44 = vrot.slane %v6613_v36, %v6489_v24  ;;  %v6490_v26 = vrot.slane %v6465_v37, %v6489_v24 }
 0x4c2   :  { %v6458_v39 = vpop.f32.mrf.mxu1 }
 0x4c3   :  { %v13217_v13 = vadd.f32 %v6458_v39, %v6418_v4  ;;  %v6498_v4 = vadd.f32 %v6474_v25, %v11885_v60  ;;  %v6485_v39 = vsub.s32 4, %v10227_v23 }
 0x4c4   :  { %v6460_v41 = vpop.f32.mrf.mxu1 }
 0x4c5   :  { %v13225_v20 = vadd.f32 %v6460_v41, %v6420_v50  ;;  %v6634_v15 = vrot.slane %v6613_v36, %v6485_v39  ;;  %v6486_v28 = vrot.slane %v6465_v37, %v6485_v39 }
 0x4c6   :  { %v6462_v62 = vpop.f32.mrf.mxu1 }
 0x4c7   :  { %v6501_v5 = vadd.f32 %v6486_v28, %v13217_v13  ;;  %v6502_v23 = vadd.f32 %v6490_v26, %v13225_v20 }
 0x4c8   :  { %v6463_v42 = vpop.f32.mrf.mxu1 }
 0x4ed   :  { %v7159_v32 = vpop.f32.mrf.mxu0 }
 0x4ee   :  { %v7160_v33 = vadd.f32 %v7159_v32, %v6618_v46 }
 0x4ef   :  { %v7161_v52 = vpop.f32.mrf.mxu0 }
 0x4f0   :  { %v7162_v40 = vadd.f32 %v7161_v52, %v6622_v19  ;;  %v7248_v16 = vadd.f32 %v7160_v33, %v6497_v21 }
 0x4f1   :  { %v7163_v58 = vpop.f32.mrf.mxu0 }
 0x4f2   :  { %v7249_v48 = vadd.f32 %v7162_v40, %v6498_v4  ;;  %v8434_v54 = vmul.f32 -1.442695, %v7248_v16  ;;  %v7404_v16 = vld [vmem:[%s13323_s14 + $0x20] sm:$0xff] }
 0x4f3   :  { %v7164_v8 = vpop.f32.mrf.mxu0 }
 0x4f4   :  { %v8435_v29 = vmul.f32 -1.442695, %v7249_v48  ;;  %9823 = vpow2.f32 %v8434_v54  ;;  %v7400_v48 = vld [vmem:[%s13323_s14] sm:$0xff] }
 0x4f6   :  { %9825 = vpow2.f32 %v8435_v29 }
 0x501   :  { %v9824_v63 = vpop.eup %9823 }
 0x502   :  { %v7200_v49 = vpop.f32.mrf.mxu1  ;;  %v7256_v2 = vadd.f32 1.0, %v9824_v63 }
 0x503   :  { %v7201_v30 = vadd.f32 %v7200_v49, %v6626_v31  ;;  %v9826_v1 = vpop.eup %9825 }
 0x504   :  { %v7202_v9 = vpop.f32.mrf.mxu1  ;;  %v7257_v6 = vadd.f32 1.0, %v9826_v1 }
 0x505   :  { %v7203_v60 = vadd.f32 %v7202_v9, %v6630_v47  ;;  %v7262_v12 = vadd.f32 %v7201_v30, %v6499_v55  ;;  %v7501_v47 = vsel %vm7500_vm5, %v7499_v10, 0.0 }
 0x506   :  { %v7204_v50 = vpop.f32.mrf.mxu1 }
 0x507   :  { %v7263_v59 = vadd.f32 %v7203_v60, %v6500_v56  ;;  %v8436_v14 = vmul.f32 -1.442695, %v7262_v12  ;;  %v7401_v50 = vld [vmem:[%s13323_s14 + $0x8] sm:$0xff] }
 0x508   :  { %v7205_v43 = vpop.f32.mrf.mxu1 }
 0x509   :  { %v8437_v61 = vmul.f32 -1.442695, %v7263_v59  ;;  %9827 = vpow2.f32 %v8436_v14 }
 0x50b   :  { %9829 = vpow2.f32 %v8437_v61 }
 0x50c   :  { %9831 = vrcp.f32 %v7256_v2 }
 0x50d   :  { %9833 = vrcp.f32 %v7257_v6 }
 0x516   :  { %v9828_v7 = vpop.eup %9827 }
 0x517   :  { %v7270_v18 = vadd.f32 1.0, %v9828_v7 }
 0x518   :  { %v9830_v41 = vpop.eup %9829 }
 0x519   :  { %v7271_v27 = vadd.f32 1.0, %v9830_v41  ;;  %v9832_v57 = vpop.eup %9831  ;;  %9835 = vrcp.f32 %v7270_v18 }
 0x51a   :  { %v9834_v52 = vpop.eup %9833 }
 0x51b   :  { %9837 = vrcp.f32 %v7271_v27 }
 0x526   :  { %v9836_v37 = vpop.eup %9835 }
 0x527   :  { %v7282_v3 = vsub.f32 1.0, %v9836_v37  ;;  %v7286_v33 = vmul.f32 %v9836_v37, %v12791_v38  ;;  %v7403_v38 = vld [vmem:[%s13323_s14 + $0x18] sm:$0xff] }
 0x528   :  { %v9838_v46 = vpop.eup %9837 }
 0x529   :  { %v7283_v25 = vsub.f32 1.0, %v9838_v46  ;;  %v7287_v40 = vmul.f32 %v9838_v46, %v12801_v0  ;;  %v7402_v0 = vld [vmem:[%s13323_s14 + $0x10] sm:$0xff]  ;;  %s9914_s14 = smov [#allocation5]  }
 0x52a   :  { %s7527_s13 = sshll.u32 %s9914_s14, 4  ;;  %s7528_s13 = int_to_ptr.vmem [resolvable:$true] %s7527_s13 }
 0x52b   :  { %s9845_s8 = scalar_lea.vmem %s7528_s13, 16  ;;  %s9849_s16 = scalar_lea.vmem %s7528_s13, 32 }
 0x52c   :  { %p9846_p0 = scmp.ne.s32.totalorder %s7528_s13, %s9845_s8  ;;  %p9850_p1 = scmp.lt.s32.totalorder %s7528_s13, %s7528_s13 }
 0x52d   :  { %v7241_v62 = vpop.f32.mrf.mxu0  ;;  %p9851_p2 = scmp.lt.s32.totalorder %s9849_s16, %s9845_s8 }
 0x52e   :  { %v7242_v42 = vadd.f32 %v7241_v62, %v6634_v15 }
 0x52f   :  { %v7243_v35 = vpop.f32.mrf.mxu0  ;;  %p9852_p3 = por %p9851_p2, %p9850_p1 }
 0x530   :  { %v7276_v51 = vmul.f32 %v9832_v57, %v7242_v42  ;;  %v7244_v32 = vadd.f32 %v7243_v35, %v6638_v44 }
 0x531   :  { %v7245_v58 = vpop.f32.mrf.mxu0  ;;  %p9853_p4 = pnand %p9852_p3, %p9846_p0 }
 0x532   :  { %v7278_v8 = vadd.f32 %v7276_v51, %v6501_v5  ;;  %v7277_v34 = vmul.f32 %v9834_v52, %v7244_v32 }
 0x533   :  { %v7246_v45 = vpop.f32.mrf.mxu0 }
 0x534   :  { %9839 = vtanh.f32 %v7278_v8  ;;  %v7279_v36 = vadd.f32 %v7277_v34, %v6502_v23 }
 0x536   :  { %9841 = vtanh.f32 %v7279_v36 }
 0x541   :  { %v9840_v19 = vpop.eup %9839 }
 0x542   :  { %v7284_v13 = vmul.f32 %v9840_v19, %v7282_v3 }
 0x543   :  { %v9842_v49 = vpop.eup %9841 }
 0x544   :  { %v7285_v21 = vmul.f32 %v9842_v49, %v7283_v25  ;;  %v7288_v20 = vadd.f32 %v7286_v33, %v7284_v13 }
 0x546   :  { %v7289_v9 = vadd.f32 %v7287_v40, %v7285_v21 }
 0x548   :  { %7393 = vmatprep.mubr.f32.mxu1 %v7289_v9  ;;  %v7489_v4 = vcombine.low %v7288_v20, %v7289_v9 }
 0x549   :  { %7394 = vmatmul.mubr.f32.vlgmr.msra.gmra.mxu1 %v7288_v20 }
 0x54a   :  { %8501 = vmatprep.mubr.msk.f32.mxu1 %vm9910_vm1, %v9909_v22  ;;  %8441 = vst.sshfl [vmem:[#allocation7] sm:$0x33 pattern:$0x76325410] %v7489_v4  ;;  %8492 = vmatpush3.msra.mxu1 %v7404_v16 }
 0x54b   :  { %8493 = vmatprep.subr.mxu1 %v9909_v22 }
 0x54c   :  { %8494 = vmatpush3.msra.mxu1 %v7403_v38 }
 0x54d   :  { %8495 = vmatprep.subr.mxu1 %v9909_v22 }
 0x54e   :  { %8496 = vmatpush3.msra.mxu1 %v7402_v0 }
 0x54f   :  { %8497 = vmatprep.subr.mxu1 %v9909_v22 }
 0x550   :  { %8498 = vmatpush3.msra.mxu1 %v7401_v50 }
 0x551   :  { %8499 = vmatprep.subr.mxu1 %v9909_v22  ;;  %v7502_v22 = vrot.slane %v7501_v47, 4 }
 0x552   :  { %8500 = vmatpush3.msra.mxu1 %v7400_v48 }
 0x553   :  { %v7503_v11 = vadd.f32 %v7502_v22, %v7501_v47 }
 0x555   :  { %v7504_v30 = vrot.slane %v7503_v11, 2 }
 0x557   :  { %v7505_v55 = vadd.f32 %v7504_v30, %v7503_v11 }
 0x559   :  { %v7506_v60 = vrot.slane %v7505_v55, 1 }
 0x55b   :  { %v7507_v56 = vadd.f32 %v7506_v60, %v7505_v55 }
 0x55d   :  { %v8442_v12 = vadd.f32 -1.0, %v7507_v56 }
 0x55f   :  { %7510 = vst.msk [vmem:[#allocation5] sm:$0x1] %vm7509_vm6, %v8442_v12 }
 0x609   :  { %v8477_v43 = vpop.f32.mrf.mxu1 }
 0x60b   :  { %v8478_v54 = vpop.f32.mrf.mxu1 }
 0x60c   :  { %v8479_v17 = vadd.f32 %v8478_v54, %v8477_v43 }
 0x60e   :  { %v7396_v29 = vadd.f32 %v8479_v17, %v8438_v53 }
 0x610   :  { %9843 = vtanh.f32 %v7396_v29 }
 0x61d   :  { %v9844_v31 = vpop.eup %9843 }
 0x61e   :  { %8502 = vmatmul.mubr.msk.f32.vlgmr.msra.gmra.mxu1 %vm78_vm0, %v9844_v31 }
 0x61f   :  { %9856 = shalt.err (!%p9853_p4)
}
 0x620   :  { %7530 = dma.vmem_to_hbm [thread:$0]  %s7528_s13, 16, %s13327_s18, [#allocation6]  }
 0x621   :  { %s9865_s1 = scalar_lea.vmem %s7538_s7, 64  ;;  %p9870_p6 = scmp.lt.s32.totalorder %s7538_s7, %s7538_s7 }
 0x622   :  { %p9866_p5 = scmp.ne.s32.totalorder %s7538_s7, %s9865_s1  ;;  %p9871_p7 = scmp.lt.s32.totalorder %s9865_s1, %s9865_s1 }
 0x624   :  { %p9872_p8 = por %p9871_p7, %p9870_p6 }
 0x626   :  { %p9873_p9 = pnand %p9872_p8, %p9866_p5 }
 0x628   :  { %9876 = shalt.err (!%p9873_p9)
}
 0x629   :  { %7540 = dma.vmem_to_hbm [thread:$0]  %s7538_s7, 64, %s13328_s19, [#allocation6]   ;;  %v8439_v59 = vld [vmem:[%s13324_s15] ss:$0 sm:$0xff]  ;;  %vm7485_vm7 = vcmask 25600  }
 0x62a   :  { %s9916_s10 = smov [#allocation3]  }
 0x62b   :  { %s7517_s11 = sshll.u32 %s9916_s10, 4  ;;  %s7518_s11 = int_to_ptr.vmem [resolvable:$true] %s7517_s11 }
 0x62c   :  { %s9885_s18 = scalar_lea.vmem %s7518_s11, 32  ;;  %p9890_p11 = scmp.lt.s32.totalorder %s7518_s11, %s7518_s11 }
 0x62d   :  { %p9886_p10 = scmp.ne.s32.totalorder %s7518_s11, %s9885_s18  ;;  %p9891_p12 = scmp.lt.s32.totalorder %s9885_s18, %s9885_s18 }
 0x62f   :  { %p9892_p13 = por %p9891_p12, %p9890_p11 }
 0x631   :  { %p9893_p0 = pnand %p9892_p13, %p9886_p10 }
 0x6de   :  { %v7481_v14 = vpop.f32.mrf.mxu1 }
 0x6df   :  { %v7482_v61 = vadd.f32 %v8439_v59, %v7481_v14 }
 0x6e0   :  { %v8503_v63 = vpop.f32.mrf.mxu1 }
 0x6e1   :  { %7486 = vst.msk [vmem:[#allocation3] sm:$0x3] %vm7485_vm7, %v7482_v61 }
 0x6e2   :  { %9896 = shalt.err (!%p9893_p0)
}
 0x6e3   :  { %7520 = dma.vmem_to_hbm [thread:$0]  %s7518_s11, 32, %s13326_s17, [#allocation4]  }
 0x6e4   :  { %9905 = dma.done.wait [#allocation4], 32  }
 0x6e5   :  { %9906 = vsyncadd [#allocation4], 4294967264 }
 0x6e6   :  { %9907 = dma.done.wait [#allocation6], 80  }
 0x6e7   :  { %9908 = vsyncadd [#allocation6], 4294967216 }
 0x6e8   :  { %7550 = vsyncpa [#allocation4], 1 }
 0x6e9   :  { %7551 = vsyncpa [#allocation6], 1 }

</bundles_post_ra>
